<compile_context>
chip_gen: v6e
topology: v6e:2x2x1
jax: 0.10.0
libtpu: 0.0.40
codegen_flags: <defaults>
</compile_context>

<pallas_src>
import numpy as np
import jax
import jax.numpy as jnp
from jax import lax
from jax.experimental import pallas as pl
from jax.experimental.pallas import tpu as pltpu

# ----------------------------- configuration --------------------------------
B = 2            # batch
C = 3            # image channels
H_IN = 32        # input spatial size (mini: 32 -> 7 patches/side)
SCALE = 7        # nn.Upsample(scale_factor=7)
POOL = 32        # nn.AvgPool2d(kernel_size=32)
H_OUT = (H_IN * SCALE) // POOL            # 7
NPATCH = H_OUT * H_OUT                    # 49
HW = H_IN * H_IN                          # 1024
WIDTH = 32       # mini transformer width
HEADS = 4
HEAD_DIM = WIDTH // HEADS                 # 8
EMBED = 16       # joint embedding dim
VOCAB = 64
CTX = 8          # text context length
IMG_SEQ = NPATCH + 1                      # 49 patches + class token = 50

# ---- layout of the consolidated "vector stack" (each row padded to 128 lanes)
R_LN_PRE_G, R_LN_PRE_B = 0, 1
R_LN_POST_G, R_LN_POST_B = 2, 3
R_LN_FIN_G, R_LN_FIN_B = 4, 5
R_IMG_BLK = 6            # 8 rows per encoder block (see below)
R_TXT_BLK = 14
N_VEC = 22
# per-block rows: +0 ln1_g, +1 ln1_b, +2 bqkv(96), +3 bo, +4 ln2_g, +5 ln2_b,
#                 +6 bfc(128), +7 bpj


# ------------------------ fused upsample + avgpool operator ------------------
def make_pool_weight(n_in, scale, pool):
    """1-D linear operator equivalent to nearest-upsample(scale) then avgpool(pool)."""
    n_out = (n_in * scale) // pool
    w = np.zeros((n_out, n_in), np.float32)
    for o in range(n_out):
        for u in range(o * pool, o * pool + pool):
            w[o, u // scale] += 1.0 / pool
    return w


# ------------------------------ in-kernel helpers ----------------------------
def _ln(x, g, b, eps=1e-5):
    mu = jnp.mean(x, axis=-1, keepdims=True)
    xc = x - mu
    var = jnp.mean(xc * xc, axis=-1, keepdims=True)
    return xc * lax.rsqrt(var + eps) * g + b


def _encoder(x, causal, w_big, wpj, V, base):
    """Pre-LN transformer block on a per-batch 2-D activation x: (seq, WIDTH).

    w_big (64,128) bf16: rows 0:32 lanes 0:96 = fused wqkv, lanes 96:128 = wo
    (head-stacked rows); rows 32:64 = wfc.  wpj (128,32) bf16.  V: f32 vector
    stack; `base` is the static row offset of this block's 8 vector rows.
    Activations / LN / softmax stay f32; bf16 only at MXU weight operands.
    """
    f32, bf16 = jnp.float32, jnp.bfloat16
    n = x.shape[0]

    ln1_g = V[base + 0:base + 1, 0:WIDTH]
    ln1_b = V[base + 1:base + 2, 0:WIDTH]
    bqkv  = V[base + 2:base + 3, 0:3 * WIDTH]
    bo    = V[base + 3:base + 4, 0:WIDTH]
    ln2_g = V[base + 4:base + 5, 0:WIDTH]
    ln2_b = V[base + 5:base + 6, 0:WIDTH]
    bfc   = V[base + 6:base + 7, 0:4 * WIDTH]
    bpj   = V[base + 7:base + 8, 0:WIDTH]

    wqkv = w_big[0:WIDTH, 0:3 * WIDTH]            # (32, 96)  bf16
    wo   = w_big[0:WIDTH, 3 * WIDTH:4 * WIDTH]    # (32, 32)  bf16, rows = heads*D
    wfc  = w_big[WIDTH:2 * WIDTH, :]              # (32, 128) bf16

    h = _ln(x, ln1_g, ln1_b)
    qkv = jnp.dot(h.astype(bf16), wqkv, preferred_element_type=f32) + bqkv   # (n, 96)

    bias = None
    if causal:
        ridx = lax.broadcasted_iota(jnp.int32, (n, n), 0)
        cidx = lax.broadcasted_iota(jnp.int32, (n, n), 1)
        bias = jnp.where(cidx <= ridx, 0.0, -1e9).astype(f32)   # additive mask, once

    scale = 1.0 / (HEAD_DIM ** 0.5)
    attn = jnp.zeros((n, WIDTH), f32)
    for hh in range(HEADS):                       # static unroll; static D=8 lane slices
        q = qkv[:, hh * HEAD_DIM:(hh + 1) * HEAD_DIM]
        k = qkv[:, WIDTH + hh * HEAD_DIM:WIDTH + (hh + 1) * HEAD_DIM]
        v = qkv[:, 2 * WIDTH + hh * HEAD_DIM:2 * WIDTH + (hh + 1) * HEAD_DIM]
        s = lax.dot_general(q, k, (((1,), (1,)), ((), ())),
                            preferred_element_type=f32) * scale              # (n, n)
        if causal:
            s = s + bias
        s = s - jnp.max(s, axis=-1, keepdims=True)
        p = jnp.exp(s)
        p = p * pl.reciprocal(jnp.sum(p, axis=-1, keepdims=True), approx=True)
        pv = jnp.dot(p, v, preferred_element_type=f32)                        # (n, 8)
        attn = attn + jnp.dot(pv.astype(bf16),
                              wo[hh * HEAD_DIM:(hh + 1) * HEAD_DIM, :],
                              preferred_element_type=f32)
    x = x + attn + bo

    h2 = _ln(x, ln2_g, ln2_b)
    u = jnp.dot(h2.astype(bf16), wfc, preferred_element_type=f32) + bfc       # (n, 128)
    u = u * jax.nn.sigmoid(1.702 * u)                                         # QuickGELU
    y = jnp.dot(u.astype(bf16), wpj, preferred_element_type=f32) + bpj        # (n, 32)
    return x + y


# ------------------------------- fused kernel --------------------------------
def fused_clip_kernel(x_ref, tok_ref, s_ref, pw_ref, ibase_ref, tpos_ref,
                      temb_ref, vec_ref, wi_ref, wpi_ref, wt_ref, wpt_ref,
                      proj_ref, oimg_ref, otxt_ref):
    """One grid step == one batch element; both towers + head for that element."""
    f32, bf16 = jnp.float32, jnp.bfloat16
    V = vec_ref[...]                                                          # (22, 128)

    def vrow(r, w):
        return V[r:r + 1, 0:w]

    # ------------------------------ image tower ------------------------------
    # patch embed first (32-lane RHS), then fused upsample(x7)+avgpool(32) as a
    # single shared (50,1024) bf16 operator (row 0 zero -> cls slot).
    emb_pre = jnp.dot(x_ref[...], pw_ref[...], preferred_element_type=f32)    # (1024, 32)
    x_img = ibase_ref[...] + jnp.dot(s_ref[...], emb_pre.astype(bf16),
                                     preferred_element_type=f32)              # (50, 32)
    x_img = _ln(x_img, vrow(R_LN_PRE_G, WIDTH), vrow(R_LN_PRE_B, WIDTH))      # ln_pre
    x_img = _encoder(x_img, False, wi_ref[...], wpi_ref[...], V, R_IMG_BLK)
    img_tok = x_img[0:1, :]                                                   # cls token

    # ------------------------------- text tower ------------------------------
    tok_i = tok_ref[...]                                                      # (CTX, 1) i32
    onehot = (tok_i == lax.broadcasted_iota(jnp.int32, (CTX, VOCAB), 1)
              ).astype(f32).astype(bf16)                                      # in-kernel gather
    x_txt = jnp.dot(onehot, temb_ref[...],
                    preferred_element_type=f32) + tpos_ref[...]               # (CTX, 32)
    x_txt = _encoder(x_txt, True, wt_ref[...], wpt_ref[...], V, R_TXT_BLK)
    # EOT token = first occurrence of the max token id (CLIP convention).
    tok_f = tok_i.astype(f32)
    mx = jnp.max(tok_f, axis=0, keepdims=True)                                # (1, 1)
    pos = lax.broadcasted_iota(jnp.int32, (CTX, 1), 0).astype(f32)
    first = jnp.min(jnp.where(tok_f == mx, pos, float(CTX)),
                    axis=0, keepdims=True)                                    # (1, 1)
    sel = (lax.broadcasted_iota(jnp.int32, (1, CTX), 1).astype(f32) == first
           ).astype(f32)                                                      # (1, CTX)
    txt_tok = jnp.dot(sel, x_txt, preferred_element_type=f32)                 # (1, 32)

    # ---------------------------------- head ---------------------------------
    proj = proj_ref[...]                                                      # (32, 32) bf16
    imf = jnp.dot(_ln(img_tok, vrow(R_LN_POST_G, WIDTH),
                      vrow(R_LN_POST_B, WIDTH)).astype(bf16),
                  proj[:, 0:EMBED], preferred_element_type=f32)               # (1, 16)
    txf = jnp.dot(_ln(txt_tok, vrow(R_LN_FIN_G, WIDTH),
                      vrow(R_LN_FIN_B, WIDTH)).astype(bf16),
                  proj[:, EMBED:2 * EMBED], preferred_element_type=f32)
    imf = imf * lax.rsqrt(jnp.sum(imf * imf, axis=-1, keepdims=True) + 1e-12)
    txf = txf * lax.rsqrt(jnp.sum(txf * txf, axis=-1, keepdims=True) + 1e-12)
    oimg_ref[...] = imf.reshape(1, 1, EMBED)
    otxt_ref[...] = txf.reshape(1, 1, EMBED)


# ------------------------------ parameter init -------------------------------
def init_params(key):
    keys = iter(jax.random.split(key, 24))

    def nrm(shape, std=0.02):
        return np.asarray(std * jax.random.normal(next(keys), shape), np.float32)

    def block_arrays():
        w_big = np.zeros((2 * WIDTH, 4 * WIDTH), np.float32)
        w_big[:WIDTH, 0:WIDTH] = nrm((WIDTH, WIDTH))               # wq (head-major lanes)
        w_big[:WIDTH, WIDTH:2 * WIDTH] = nrm((WIDTH, WIDTH))       # wk
        w_big[:WIDTH, 2 * WIDTH:3 * WIDTH] = nrm((WIDTH, WIDTH))   # wv
        w_big[:WIDTH, 3 * WIDTH:] = nrm((WIDTH, WIDTH))            # wo (head-stacked rows)
        w_big[WIDTH:, :] = nrm((WIDTH, 4 * WIDTH))                 # wfc
        wpj = nrm((4 * WIDTH, WIDTH))
        vec = np.zeros((8, 128), np.float32)
        vec[0, :WIDTH] = 1.0                                       # ln1_g
        vec[4, :WIDTH] = 1.0                                       # ln2_g
        return w_big, wpj, vec                                     # biases stay zero

    # fused upsample+avgpool: shared (50,1024) operator, row 0 = zeros (cls slot).
    wh = make_pool_weight(H_IN, SCALE, POOL)                       # (7, 32)
    s = np.kron(wh, wh)                                            # (49, 1024)
    s50 = np.zeros((IMG_SEQ, HW), np.float32)
    s50[1:, :] = s

    # TODO(synk): real module loads pretrained ViT-B/32 weights via clip.load;
    # replaced by deterministic random init of a structurally equivalent mini CLIP.
    patch_w = nrm((C, WIDTH))
    patch_b = np.zeros((1, WIDTH), np.float32)
    cls = nrm((1, WIDTH), 0.01)
    img_pos = nrm((IMG_SEQ, WIDTH), 0.01)
    txt_pos = nrm((CTX, WIDTH), 0.01)
    img_base = np.concatenate([cls + img_pos[0:1], img_pos[1:] + patch_b], axis=0)

    w_img, wpj_img, vec_img = block_arrays()
    w_txt, wpj_txt, vec_txt = block_arrays()

    vecs = np.zeros((N_VEC, 128), np.float32)
    vecs[R_LN_PRE_G, :WIDTH] = 1.0
    vecs[R_LN_POST_G, :WIDTH] = 1.0
    vecs[R_LN_FIN_G, :WIDTH] = 1.0
    vecs[R_IMG_BLK:R_IMG_BLK + 8] = vec_img
    vecs[R_TXT_BLK:R_TXT_BLK + 8] = vec_txt

    proj = np.zeros((WIDTH, 2 * EMBED), np.float32)
    proj[:, :EMBED] = nrm((WIDTH, EMBED))                          # image projection
    proj[:, EMBED:] = nrm((WIDTH, EMBED))                          # text projection

    tok_emb = nrm((VOCAB, WIDTH))

    bf16 = jnp.bfloat16
    return dict(
        s50=jnp.asarray(s50, bf16),
        patch_w=jnp.asarray(patch_w),
        img_base=jnp.asarray(img_base),
        txt_pos=jnp.asarray(txt_pos),
        tok_emb=jnp.asarray(tok_emb, bf16),
        vecs=jnp.asarray(vecs),
        w_img=jnp.asarray(w_img, bf16),
        wpj_img=jnp.asarray(wpj_img, bf16),
        w_txt=jnp.asarray(w_txt, bf16),
        wpj_txt=jnp.asarray(wpj_txt, bf16),
        proj=jnp.asarray(proj, bf16),
        logit_scale=jnp.full((1, 1), np.log(1.0 / 0.07), jnp.float32),
    )


# -------------------------------- forward ------------------------------------
def clip_loss_forward(image, text, p):
    # XLA preamble: channels-last + free reshapes; everything else runs in the
    # Pallas kernel (per-batch grid); tiny (B,E)@(E,B) logits epilogue in XLA.
    x2d = image.transpose(0, 2, 3, 1).reshape(B * HW, C)          # rows = b*1024 + h*32 + w
    tok_rows = text.reshape(B * CTX, 1)

    const2 = lambda i: (0, 0)
    in_specs = [
        pl.BlockSpec((HW, C), lambda i: (i, 0)),                  # per-batch image rows
        pl.BlockSpec((CTX, 1), lambda i: (i, 0)),                 # per-batch tokens
        pl.BlockSpec((IMG_SEQ, HW), const2),                      # s50
        pl.BlockSpec((C, WIDTH), const2),                         # patch_w
        pl.BlockSpec((IMG_SEQ, WIDTH), const2),                   # img_base (cls/pos/bias)
        pl.BlockSpec((CTX, WIDTH), const2),                       # txt_pos
        pl.BlockSpec((VOCAB, WIDTH), const2),                     # tok_emb
        pl.BlockSpec((N_VEC, 128), const2),                       # vector stack
        pl.BlockSpec((2 * WIDTH, 4 * WIDTH), const2),             # w_img
        pl.BlockSpec((4 * WIDTH, WIDTH), const2),                 # wpj_img
        pl.BlockSpec((2 * WIDTH, 4 * WIDTH), const2),             # w_txt
        pl.BlockSpec((4 * WIDTH, WIDTH), const2),                 # wpj_txt
        pl.BlockSpec((WIDTH, 2 * EMBED), const2),                 # packed projections
    ]
    out_specs = (
        pl.BlockSpec((1, 1, EMBED), lambda i: (i, 0, 0)),
        pl.BlockSpec((1, 1, EMBED), lambda i: (i, 0, 0)),
    )

    imf, txf = pl.pallas_call(
        fused_clip_kernel,
        out_shape=(jax.ShapeDtypeStruct((B, 1, EMBED), jnp.float32),
                   jax.ShapeDtypeStruct((B, 1, EMBED), jnp.float32)),
        grid=(B,),
        in_specs=in_specs,
        out_specs=out_specs,
        compiler_params=pltpu.CompilerParams(dimension_semantics=("parallel",)),
    )(x2d, tok_rows, p['s50'], p['patch_w'], p['img_base'], p['txt_pos'],
      p['tok_emb'], p['vecs'], p['w_img'], p['wpj_img'], p['w_txt'], p['wpj_txt'],
      p['proj'])

    imf = imf[:, 0, :]                                            # (B, EMBED)
    txf = txf[:, 0, :]
    scale = jnp.minimum(jnp.exp(p['logit_scale']), 100.0) * (1.0 / 100.0)  # CLIP clamp /100
    return 1.0 - scale * (imf @ txf.T)                            # (B, B)


# --------------------------------- main ---------------------------------------
if __name__ == "__main__":
    key = jax.random.PRNGKey(0)
    k_img, k_par = jax.random.split(key)
    image = jax.random.normal(k_img, (B, C, H_IN, H_IN), jnp.float32)
    text = jnp.array([[1, 5, 9, 2, 7, VOCAB - 1, 6, 2],
                      [3, 8, 4, VOCAB - 1, 2, 1, 7, 5]], dtype=jnp.int32)

    params = init_params(k_par)
    sim = jax.jit(clip_loss_forward)(image, text, params)
    sim = jax.block_until_ready(sim)

    assert sim.shape == (B, B), sim.shape
    assert bool(jnp.all(jnp.isfinite(sim)))
    print("KERNEL_OK")
</pallas_src>

<mosaic_0001>
module attributes {stable_mosaic.version = 11 : i64} {
  func.func @fused_clip_kernel(%arg0: i32, %arg1: memref<1024x3xf32, #tpu.memory_space<vmem>>, %arg2: memref<8x1xi32, #tpu.memory_space<vmem>>, %arg3: memref<50x1024xbf16, #tpu.memory_space<vmem>>, %arg4: memref<3x32xf32, #tpu.memory_space<vmem>>, %arg5: memref<50x32xf32, #tpu.memory_space<vmem>>, %arg6: memref<8x32xf32, #tpu.memory_space<vmem>>, %arg7: memref<64x32xbf16, #tpu.memory_space<vmem>>, %arg8: memref<22x128xf32, #tpu.memory_space<vmem>>, %arg9: memref<64x128xbf16, #tpu.memory_space<vmem>>, %arg10: memref<128x32xbf16, #tpu.memory_space<vmem>>, %arg11: memref<64x128xbf16, #tpu.memory_space<vmem>>, %arg12: memref<128x32xbf16, #tpu.memory_space<vmem>>, %arg13: memref<32x32xbf16, #tpu.memory_space<vmem>>, %arg14: memref<1x1x16xf32, #tpu.memory_space<vmem>>, %arg15: memref<1x1x16xf32, #tpu.memory_space<vmem>>) attributes {dimension_semantics = [#tpu.dimension_semantics<parallel>], iteration_bounds = array<i64: 2>, scalar_prefetch = 0 : i64, scratch_operands = 0 : i64, tpu.core_type = #tpu.core_type<tc>, window_params = [{transform_indices = @transform_0, window_bounds = array<i64: 1024, 3>}, {transform_indices = @transform_1, window_bounds = array<i64: 8, 1>}, {pipeline_mode = #tpu.pipeline_mode<synchronous>, transform_indices = @transform_2, window_bounds = array<i64: 50, 1024>}, {pipeline_mode = #tpu.pipeline_mode<synchronous>, transform_indices = @transform_3, window_bounds = array<i64: 3, 32>}, {pipeline_mode = #tpu.pipeline_mode<synchronous>, transform_indices = @transform_4, window_bounds = array<i64: 50, 32>}, {pipeline_mode = #tpu.pipeline_mode<synchronous>, transform_indices = @transform_5, window_bounds = array<i64: 8, 32>}, {pipeline_mode = #tpu.pipeline_mode<synchronous>, transform_indices = @transform_6, window_bounds = array<i64: 64, 32>}, {pipeline_mode = #tpu.pipeline_mode<synchronous>, transform_indices = @transform_7, window_bounds = array<i64: 22, 128>}, {pipeline_mode = #tpu.pipeline_mode<synchronous>, transform_indices = @transform_8, window_bounds = array<i64: 64, 128>}, {pipeline_mode = #tpu.pipeline_mode<synchronous>, transform_indices = @transform_9, window_bounds = array<i64: 128, 32>}, {pipeline_mode = #tpu.pipeline_mode<synchronous>, transform_indices = @transform_10, window_bounds = array<i64: 64, 128>}, {pipeline_mode = #tpu.pipeline_mode<synchronous>, transform_indices = @transform_11, window_bounds = array<i64: 128, 32>}, {pipeline_mode = #tpu.pipeline_mode<synchronous>, transform_indices = @transform_12, window_bounds = array<i64: 32, 32>}, {transform_indices = @transform_13, window_bounds = array<i64: 1, 1, 16>}, {transform_indices = @transform_14, window_bounds = array<i64: 1, 1, 16>}]} {
    %c0 = arith.constant 0 : index
    %c0_0 = arith.constant 0 : index
    %0 = vector.load %arg8[%c0, %c0_0] : memref<22x128xf32, #tpu.memory_space<vmem>>, vector<22x128xf32>
    %c0_1 = arith.constant 0 : index
    %c0_2 = arith.constant 0 : index
    %1 = vector.load %arg1[%c0_1, %c0_2] : memref<1024x3xf32, #tpu.memory_space<vmem>>, vector<1024x3xf32>
    %c0_3 = arith.constant 0 : index
    %c0_4 = arith.constant 0 : index
    %2 = vector.load %arg4[%c0_3, %c0_4] : memref<3x32xf32, #tpu.memory_space<vmem>>, vector<3x32xf32>
    %cst = arith.constant dense<0.000000e+00> : vector<1024x32xf32>
    %3 = tpu.matmul %1, %2, %cst {dimension_numbers = #tpu.dot_dimension_numbers<[1], [0], [0], [1], [0, 0, 1, 1], [], []>} : vector<1024x3xf32>, vector<3x32xf32>, vector<1024x32xf32> -> vector<1024x32xf32>
    %c0_5 = arith.constant 0 : index
    %c0_6 = arith.constant 0 : index
    %4 = vector.load %arg5[%c0_5, %c0_6] : memref<50x32xf32, #tpu.memory_space<vmem>>, vector<50x32xf32>
    %c0_7 = arith.constant 0 : index
    %c0_8 = arith.constant 0 : index
    %5 = vector.load %arg3[%c0_7, %c0_8] : memref<50x1024xbf16, #tpu.memory_space<vmem>>, vector<50x1024xbf16>
    %6 = arith.truncf %3 : vector<1024x32xf32> to vector<1024x32xbf16>
    %cst_9 = arith.constant dense<0.000000e+00> : vector<50x32xf32>
    %7 = tpu.matmul %5, %6, %cst_9 {dimension_numbers = #tpu.dot_dimension_numbers<[1], [0], [0], [1], [0, 0, 1, 1], [], []>} : vector<50x1024xbf16>, vector<1024x32xbf16>, vector<50x32xf32> -> vector<50x32xf32>
    %8 = arith.addf %4, %7 : vector<50x32xf32>
    %9 = vector.extract_strided_slice %0 {offsets = [0, 0], sizes = [1, 32], strides = [1, 1]} : vector<22x128xf32> to vector<1x32xf32>
    %10 = vector.extract_strided_slice %0 {offsets = [1, 0], sizes = [1, 32], strides = [1, 1]} : vector<22x128xf32> to vector<1x32xf32>
    %cst_10 = arith.constant dense<0.000000e+00> : vector<50xf32>
    %11 = vector.multi_reduction <add>, %8, %cst_10 [1] : vector<50x32xf32> to vector<50xf32>
    %12 = vector.shape_cast %11 : vector<50xf32> to vector<50x1xf32>
    %cst_11 = arith.constant 3.200000e+01 : f32
    %13 = vector.broadcast %cst_11 : f32 to vector<50x1xf32>
    %14 = arith.divf %12, %13 : vector<50x1xf32>
    %15 = vector.broadcast %14 : vector<50x1xf32> to vector<50x32xf32>
    %16 = arith.subf %8, %15 : vector<50x32xf32>
    %17 = arith.mulf %16, %16 : vector<50x32xf32>
    %cst_12 = arith.constant dense<0.000000e+00> : vector<50xf32>
    %18 = vector.multi_reduction <add>, %17, %cst_12 [1] : vector<50x32xf32> to vector<50xf32>
    %19 = vector.shape_cast %18 : vector<50xf32> to vector<50x1xf32>
    %cst_13 = arith.constant 3.200000e+01 : f32
    %20 = vector.broadcast %cst_13 : f32 to vector<50x1xf32>
    %21 = arith.divf %19, %20 : vector<50x1xf32>
    %cst_14 = arith.constant 9.99999974E-6 : f32
    %22 = vector.broadcast %cst_14 : f32 to vector<50x1xf32>
    %23 = arith.addf %21, %22 : vector<50x1xf32>
    %24 = math.rsqrt %23 : vector<50x1xf32>
    %25 = vector.broadcast %24 : vector<50x1xf32> to vector<50x32xf32>
    %26 = arith.mulf %16, %25 : vector<50x32xf32>
    %27 = vector.broadcast %9 : vector<1x32xf32> to vector<50x32xf32>
    %28 = arith.mulf %26, %27 : vector<50x32xf32>
    %29 = vector.broadcast %10 : vector<1x32xf32> to vector<50x32xf32>
    %30 = arith.addf %28, %29 : vector<50x32xf32>
    %c0_15 = arith.constant 0 : index
    %c0_16 = arith.constant 0 : index
    %31 = vector.load %arg9[%c0_15, %c0_16] : memref<64x128xbf16, #tpu.memory_space<vmem>>, vector<64x128xbf16>
    %c0_17 = arith.constant 0 : index
    %c0_18 = arith.constant 0 : index
    %32 = vector.load %arg10[%c0_17, %c0_18] : memref<128x32xbf16, #tpu.memory_space<vmem>>, vector<128x32xbf16>
    %33 = vector.extract_strided_slice %0 {offsets = [6, 0], sizes = [1, 32], strides = [1, 1]} : vector<22x128xf32> to vector<1x32xf32>
    %34 = vector.extract_strided_slice %0 {offsets = [7, 0], sizes = [1, 32], strides = [1, 1]} : vector<22x128xf32> to vector<1x32xf32>
    %35 = vector.extract_strided_slice %0 {offsets = [8, 0], sizes = [1, 96], strides = [1, 1]} : vector<22x128xf32> to vector<1x96xf32>
    %36 = vector.extract_strided_slice %0 {offsets = [9, 0], sizes = [1, 32], strides = [1, 1]} : vector<22x128xf32> to vector<1x32xf32>
    %37 = vector.extract_strided_slice %0 {offsets = [10, 0], sizes = [1, 32], strides = [1, 1]} : vector<22x128xf32> to vector<1x32xf32>
    %38 = vector.extract_strided_slice %0 {offsets = [11, 0], sizes = [1, 32], strides = [1, 1]} : vector<22x128xf32> to vector<1x32xf32>
    %39 = vector.extract_strided_slice %0 {offsets = [12, 0], sizes = [1, 128], strides = [1, 1]} : vector<22x128xf32> to vector<1x128xf32>
    %40 = vector.extract_strided_slice %0 {offsets = [13, 0], sizes = [1, 32], strides = [1, 1]} : vector<22x128xf32> to vector<1x32xf32>
    %41 = vector.extract_strided_slice %31 {offsets = [0, 0], sizes = [32, 96], strides = [1, 1]} : vector<64x128xbf16> to vector<32x96xbf16>
    %42 = vector.extract_strided_slice %31 {offsets = [0, 96], sizes = [32, 32], strides = [1, 1]} : vector<64x128xbf16> to vector<32x32xbf16>
    %43 = vector.extract_strided_slice %31 {offsets = [32, 0], sizes = [32, 128], strides = [1, 1]} : vector<64x128xbf16> to vector<32x128xbf16>
    %cst_19 = arith.constant dense<0.000000e+00> : vector<50xf32>
    %44 = vector.multi_reduction <add>, %30, %cst_19 [1] : vector<50x32xf32> to vector<50xf32>
    %45 = vector.shape_cast %44 : vector<50xf32> to vector<50x1xf32>
    %cst_20 = arith.constant 3.200000e+01 : f32
    %46 = vector.broadcast %cst_20 : f32 to vector<50x1xf32>
    %47 = arith.divf %45, %46 : vector<50x1xf32>
    %48 = vector.broadcast %47 : vector<50x1xf32> to vector<50x32xf32>
    %49 = arith.subf %30, %48 : vector<50x32xf32>
    %50 = arith.mulf %49, %49 : vector<50x32xf32>
    %cst_21 = arith.constant dense<0.000000e+00> : vector<50xf32>
    %51 = vector.multi_reduction <add>, %50, %cst_21 [1] : vector<50x32xf32> to vector<50xf32>
    %52 = vector.shape_cast %51 : vector<50xf32> to vector<50x1xf32>
    %cst_22 = arith.constant 3.200000e+01 : f32
    %53 = vector.broadcast %cst_22 : f32 to vector<50x1xf32>
    %54 = arith.divf %52, %53 : vector<50x1xf32>
    %cst_23 = arith.constant 9.99999974E-6 : f32
    %55 = vector.broadcast %cst_23 : f32 to vector<50x1xf32>
    %56 = arith.addf %54, %55 : vector<50x1xf32>
    %57 = math.rsqrt %56 : vector<50x1xf32>
    %58 = vector.broadcast %57 : vector<50x1xf32> to vector<50x32xf32>
    %59 = arith.mulf %49, %58 : vector<50x32xf32>
    %60 = vector.broadcast %33 : vector<1x32xf32> to vector<50x32xf32>
    %61 = arith.mulf %59, %60 : vector<50x32xf32>
    %62 = vector.broadcast %34 : vector<1x32xf32> to vector<50x32xf32>
    %63 = arith.addf %61, %62 : vector<50x32xf32>
    %64 = arith.truncf %63 : vector<50x32xf32> to vector<50x32xbf16>
    %cst_24 = arith.constant dense<0.000000e+00> : vector<50x96xf32>
    %65 = tpu.matmul %64, %41, %cst_24 {dimension_numbers = #tpu.dot_dimension_numbers<[1], [0], [0], [1], [0, 0, 1, 1], [], []>} : vector<50x32xbf16>, vector<32x96xbf16>, vector<50x96xf32> -> vector<50x96xf32>
    %66 = vector.broadcast %35 : vector<1x96xf32> to vector<50x96xf32>
    %67 = arith.addf %65, %66 : vector<50x96xf32>
    %cst_25 = arith.constant 0.000000e+00 : f32
    %68 = vector.broadcast %cst_25 : f32 to vector<50x32xf32>
    %69 = vector.extract_strided_slice %67 {offsets = [0, 0], sizes = [50, 8], strides = [1, 1]} : vector<50x96xf32> to vector<50x8xf32>
    %70 = vector.extract_strided_slice %67 {offsets = [0, 32], sizes = [50, 8], strides = [1, 1]} : vector<50x96xf32> to vector<50x8xf32>
    %71 = vector.extract_strided_slice %67 {offsets = [0, 64], sizes = [50, 8], strides = [1, 1]} : vector<50x96xf32> to vector<50x8xf32>
    %cst_26 = arith.constant dense<0.000000e+00> : vector<50x50xf32>
    %72 = tpu.matmul %69, %70, %cst_26 {dimension_numbers = #tpu.dot_dimension_numbers<[1], [1], [0], [0], [0, 0, 1, 0], [], []>} : vector<50x8xf32>, vector<50x8xf32>, vector<50x50xf32> -> vector<50x50xf32>
    %cst_27 = arith.constant 0.353553385 : f32
    %73 = vector.broadcast %cst_27 : f32 to vector<50x50xf32>
    %74 = arith.mulf %72, %73 : vector<50x50xf32>
    %cst_28 = arith.constant dense<0xFF800000> : vector<50xf32>
    %75 = vector.multi_reduction <maximumf>, %74, %cst_28 [1] : vector<50x50xf32> to vector<50xf32>
    %76 = vector.shape_cast %75 : vector<50xf32> to vector<50x1xf32>
    %77 = vector.broadcast %76 : vector<50x1xf32> to vector<50x50xf32>
    %78 = arith.subf %74, %77 : vector<50x50xf32>
    %79 = math.exp %78 : vector<50x50xf32>
    %cst_29 = arith.constant dense<0.000000e+00> : vector<50xf32>
    %80 = vector.multi_reduction <add>, %79, %cst_29 [1] : vector<50x50xf32> to vector<50xf32>
    %81 = vector.shape_cast %80 : vector<50xf32> to vector<50x1xf32>
    %82 = tpu.reciprocal %81 {approx = true} : vector<50x1xf32> -> vector<50x1xf32>
    %83 = vector.broadcast %82 : vector<50x1xf32> to vector<50x50xf32>
    %84 = arith.mulf %79, %83 : vector<50x50xf32>
    %cst_30 = arith.constant dense<0.000000e+00> : vector<50x8xf32>
    %85 = tpu.matmul %84, %71, %cst_30 {dimension_numbers = #tpu.dot_dimension_numbers<[1], [0], [0], [1], [0, 0, 1, 1], [], []>} : vector<50x50xf32>, vector<50x8xf32>, vector<50x8xf32> -> vector<50x8xf32>
    %86 = arith.truncf %85 : vector<50x8xf32> to vector<50x8xbf16>
    %87 = vector.extract_strided_slice %42 {offsets = [0, 0], sizes = [8, 32], strides = [1, 1]} : vector<32x32xbf16> to vector<8x32xbf16>
    %cst_31 = arith.constant dense<0.000000e+00> : vector<50x32xf32>
    %88 = tpu.matmul %86, %87, %cst_31 {dimension_numbers = #tpu.dot_dimension_numbers<[1], [0], [0], [1], [0, 0, 1, 1], [], []>} : vector<50x8xbf16>, vector<8x32xbf16>, vector<50x32xf32> -> vector<50x32xf32>
    %89 = arith.addf %68, %88 : vector<50x32xf32>
    %90 = vector.extract_strided_slice %67 {offsets = [0, 8], sizes = [50, 8], strides = [1, 1]} : vector<50x96xf32> to vector<50x8xf32>
    %91 = vector.extract_strided_slice %67 {offsets = [0, 40], sizes = [50, 8], strides = [1, 1]} : vector<50x96xf32> to vector<50x8xf32>
    %92 = vector.extract_strided_slice %67 {offsets = [0, 72], sizes = [50, 8], strides = [1, 1]} : vector<50x96xf32> to vector<50x8xf32>
    %cst_32 = arith.constant dense<0.000000e+00> : vector<50x50xf32>
    %93 = tpu.matmul %90, %91, %cst_32 {dimension_numbers = #tpu.dot_dimension_numbers<[1], [1], [0], [0], [0, 0, 1, 0], [], []>} : vector<50x8xf32>, vector<50x8xf32>, vector<50x50xf32> -> vector<50x50xf32>
    %cst_33 = arith.constant 0.353553385 : f32
    %94 = vector.broadcast %cst_33 : f32 to vector<50x50xf32>
    %95 = arith.mulf %93, %94 : vector<50x50xf32>
    %cst_34 = arith.constant dense<0xFF800000> : vector<50xf32>
    %96 = vector.multi_reduction <maximumf>, %95, %cst_34 [1] : vector<50x50xf32> to vector<50xf32>
    %97 = vector.shape_cast %96 : vector<50xf32> to vector<50x1xf32>
    %98 = vector.broadcast %97 : vector<50x1xf32> to vector<50x50xf32>
    %99 = arith.subf %95, %98 : vector<50x50xf32>
    %100 = math.exp %99 : vector<50x50xf32>
    %cst_35 = arith.constant dense<0.000000e+00> : vector<50xf32>
    %101 = vector.multi_reduction <add>, %100, %cst_35 [1] : vector<50x50xf32> to vector<50xf32>
    %102 = vector.shape_cast %101 : vector<50xf32> to vector<50x1xf32>
    %103 = tpu.reciprocal %102 {approx = true} : vector<50x1xf32> -> vector<50x1xf32>
    %104 = vector.broadcast %103 : vector<50x1xf32> to vector<50x50xf32>
    %105 = arith.mulf %100, %104 : vector<50x50xf32>
    %cst_36 = arith.constant dense<0.000000e+00> : vector<50x8xf32>
    %106 = tpu.matmul %105, %92, %cst_36 {dimension_numbers = #tpu.dot_dimension_numbers<[1], [0], [0], [1], [0, 0, 1, 1], [], []>} : vector<50x50xf32>, vector<50x8xf32>, vector<50x8xf32> -> vector<50x8xf32>
    %107 = arith.truncf %106 : vector<50x8xf32> to vector<50x8xbf16>
    %108 = vector.extract_strided_slice %42 {offsets = [8, 0], sizes = [8, 32], strides = [1, 1]} : vector<32x32xbf16> to vector<8x32xbf16>
    %cst_37 = arith.constant dense<0.000000e+00> : vector<50x32xf32>
    %109 = tpu.matmul %107, %108, %cst_37 {dimension_numbers = #tpu.dot_dimension_numbers<[1], [0], [0], [1], [0, 0, 1, 1], [], []>} : vector<50x8xbf16>, vector<8x32xbf16>, vector<50x32xf32> -> vector<50x32xf32>
    %110 = arith.addf %89, %109 : vector<50x32xf32>
    %111 = vector.extract_strided_slice %67 {offsets = [0, 16], sizes = [50, 8], strides = [1, 1]} : vector<50x96xf32> to vector<50x8xf32>
    %112 = vector.extract_strided_slice %67 {offsets = [0, 48], sizes = [50, 8], strides = [1, 1]} : vector<50x96xf32> to vector<50x8xf32>
    %113 = vector.extract_strided_slice %67 {offsets = [0, 80], sizes = [50, 8], strides = [1, 1]} : vector<50x96xf32> to vector<50x8xf32>
    %cst_38 = arith.constant dense<0.000000e+00> : vector<50x50xf32>
    %114 = tpu.matmul %111, %112, %cst_38 {dimension_numbers = #tpu.dot_dimension_numbers<[1], [1], [0], [0], [0, 0, 1, 0], [], []>} : vector<50x8xf32>, vector<50x8xf32>, vector<50x50xf32> -> vector<50x50xf32>
    %cst_39 = arith.constant 0.353553385 : f32
    %115 = vector.broadcast %cst_39 : f32 to vector<50x50xf32>
    %116 = arith.mulf %114, %115 : vector<50x50xf32>
    %cst_40 = arith.constant dense<0xFF800000> : vector<50xf32>
    %117 = vector.multi_reduction <maximumf>, %116, %cst_40 [1] : vector<50x50xf32> to vector<50xf32>
    %118 = vector.shape_cast %117 : vector<50xf32> to vector<50x1xf32>
    %119 = vector.broadcast %118 : vector<50x1xf32> to vector<50x50xf32>
    %120 = arith.subf %116, %119 : vector<50x50xf32>
    %121 = math.exp %120 : vector<50x50xf32>
    %cst_41 = arith.constant dense<0.000000e+00> : vector<50xf32>
    %122 = vector.multi_reduction <add>, %121, %cst_41 [1] : vector<50x50xf32> to vector<50xf32>
    %123 = vector.shape_cast %122 : vector<50xf32> to vector<50x1xf32>
    %124 = tpu.reciprocal %123 {approx = true} : vector<50x1xf32> -> vector<50x1xf32>
    %125 = vector.broadcast %124 : vector<50x1xf32> to vector<50x50xf32>
    %126 = arith.mulf %121, %125 : vector<50x50xf32>
    %cst_42 = arith.constant dense<0.000000e+00> : vector<50x8xf32>
    %127 = tpu.matmul %126, %113, %cst_42 {dimension_numbers = #tpu.dot_dimension_numbers<[1], [0], [0], [1], [0, 0, 1, 1], [], []>} : vector<50x50xf32>, vector<50x8xf32>, vector<50x8xf32> -> vector<50x8xf32>
    %128 = arith.truncf %127 : vector<50x8xf32> to vector<50x8xbf16>
    %129 = vector.extract_strided_slice %42 {offsets = [16, 0], sizes = [8, 32], strides = [1, 1]} : vector<32x32xbf16> to vector<8x32xbf16>
    %cst_43 = arith.constant dense<0.000000e+00> : vector<50x32xf32>
    %130 = tpu.matmul %128, %129, %cst_43 {dimension_numbers = #tpu.dot_dimension_numbers<[1], [0], [0], [1], [0, 0, 1, 1], [], []>} : vector<50x8xbf16>, vector<8x32xbf16>, vector<50x32xf32> -> vector<50x32xf32>
    %131 = arith.addf %110, %130 : vector<50x32xf32>
    %132 = vector.extract_strided_slice %67 {offsets = [0, 24], sizes = [50, 8], strides = [1, 1]} : vector<50x96xf32> to vector<50x8xf32>
    %133 = vector.extract_strided_slice %67 {offsets = [0, 56], sizes = [50, 8], strides = [1, 1]} : vector<50x96xf32> to vector<50x8xf32>
    %134 = vector.extract_strided_slice %67 {offsets = [0, 88], sizes = [50, 8], strides = [1, 1]} : vector<50x96xf32> to vector<50x8xf32>
    %cst_44 = arith.constant dense<0.000000e+00> : vector<50x50xf32>
    %135 = tpu.matmul %132, %133, %cst_44 {dimension_numbers = #tpu.dot_dimension_numbers<[1], [1], [0], [0], [0, 0, 1, 0], [], []>} : vector<50x8xf32>, vector<50x8xf32>, vector<50x50xf32> -> vector<50x50xf32>
    %cst_45 = arith.constant 0.353553385 : f32
    %136 = vector.broadcast %cst_45 : f32 to vector<50x50xf32>
    %137 = arith.mulf %135, %136 : vector<50x50xf32>
    %cst_46 = arith.constant dense<0xFF800000> : vector<50xf32>
    %138 = vector.multi_reduction <maximumf>, %137, %cst_46 [1] : vector<50x50xf32> to vector<50xf32>
    %139 = vector.shape_cast %138 : vector<50xf32> to vector<50x1xf32>
    %140 = vector.broadcast %139 : vector<50x1xf32> to vector<50x50xf32>
    %141 = arith.subf %137, %140 : vector<50x50xf32>
    %142 = math.exp %141 : vector<50x50xf32>
    %cst_47 = arith.constant dense<0.000000e+00> : vector<50xf32>
    %143 = vector.multi_reduction <add>, %142, %cst_47 [1] : vector<50x50xf32> to vector<50xf32>
    %144 = vector.shape_cast %143 : vector<50xf32> to vector<50x1xf32>
    %145 = tpu.reciprocal %144 {approx = true} : vector<50x1xf32> -> vector<50x1xf32>
    %146 = vector.broadcast %145 : vector<50x1xf32> to vector<50x50xf32>
    %147 = arith.mulf %142, %146 : vector<50x50xf32>
    %cst_48 = arith.constant dense<0.000000e+00> : vector<50x8xf32>
    %148 = tpu.matmul %147, %134, %cst_48 {dimension_numbers = #tpu.dot_dimension_numbers<[1], [0], [0], [1], [0, 0, 1, 1], [], []>} : vector<50x50xf32>, vector<50x8xf32>, vector<50x8xf32> -> vector<50x8xf32>
    %149 = arith.truncf %148 : vector<50x8xf32> to vector<50x8xbf16>
    %150 = vector.extract_strided_slice %42 {offsets = [24, 0], sizes = [8, 32], strides = [1, 1]} : vector<32x32xbf16> to vector<8x32xbf16>
    %cst_49 = arith.constant dense<0.000000e+00> : vector<50x32xf32>
    %151 = tpu.matmul %149, %150, %cst_49 {dimension_numbers = #tpu.dot_dimension_numbers<[1], [0], [0], [1], [0, 0, 1, 1], [], []>} : vector<50x8xbf16>, vector<8x32xbf16>, vector<50x32xf32> -> vector<50x32xf32>
    %152 = arith.addf %131, %151 : vector<50x32xf32>
    %153 = arith.addf %30, %152 : vector<50x32xf32>
    %154 = vector.broadcast %36 : vector<1x32xf32> to vector<50x32xf32>
    %155 = arith.addf %153, %154 : vector<50x32xf32>
    %cst_50 = arith.constant dense<0.000000e+00> : vector<50xf32>
    %156 = vector.multi_reduction <add>, %155, %cst_50 [1] : vector<50x32xf32> to vector<50xf32>
    %157 = vector.shape_cast %156 : vector<50xf32> to vector<50x1xf32>
    %cst_51 = arith.constant 3.200000e+01 : f32
    %158 = vector.broadcast %cst_51 : f32 to vector<50x1xf32>
    %159 = arith.divf %157, %158 : vector<50x1xf32>
    %160 = vector.broadcast %159 : vector<50x1xf32> to vector<50x32xf32>
    %161 = arith.subf %155, %160 : vector<50x32xf32>
    %162 = arith.mulf %161, %161 : vector<50x32xf32>
    %cst_52 = arith.constant dense<0.000000e+00> : vector<50xf32>
    %163 = vector.multi_reduction <add>, %162, %cst_52 [1] : vector<50x32xf32> to vector<50xf32>
    %164 = vector.shape_cast %163 : vector<50xf32> to vector<50x1xf32>
    %cst_53 = arith.constant 3.200000e+01 : f32
    %165 = vector.broadcast %cst_53 : f32 to vector<50x1xf32>
    %166 = arith.divf %164, %165 : vector<50x1xf32>
    %cst_54 = arith.constant 9.99999974E-6 : f32
    %167 = vector.broadcast %cst_54 : f32 to vector<50x1xf32>
    %168 = arith.addf %166, %167 : vector<50x1xf32>
    %169 = math.rsqrt %168 : vector<50x1xf32>
    %170 = vector.broadcast %169 : vector<50x1xf32> to vector<50x32xf32>
    %171 = arith.mulf %161, %170 : vector<50x32xf32>
    %172 = vector.broadcast %37 : vector<1x32xf32> to vector<50x32xf32>
    %173 = arith.mulf %171, %172 : vector<50x32xf32>
    %174 = vector.broadcast %38 : vector<1x32xf32> to vector<50x32xf32>
    %175 = arith.addf %173, %174 : vector<50x32xf32>
    %176 = arith.truncf %175 : vector<50x32xf32> to vector<50x32xbf16>
    %cst_55 = arith.constant dense<0.000000e+00> : vector<50x128xf32>
    %177 = tpu.matmul %176, %43, %cst_55 {dimension_numbers = #tpu.dot_dimension_numbers<[1], [0], [0], [1], [0, 0, 1, 1], [], []>} : vector<50x32xbf16>, vector<32x128xbf16>, vector<50x128xf32> -> vector<50x128xf32>
    %178 = vector.broadcast %39 : vector<1x128xf32> to vector<50x128xf32>
    %179 = arith.addf %177, %178 : vector<50x128xf32>
    %cst_56 = arith.constant 1.702000e+00 : f32
    %180 = vector.broadcast %cst_56 : f32 to vector<50x128xf32>
    %181 = arith.mulf %180, %179 : vector<50x128xf32>
    %182 = arith.negf %181 : vector<50x128xf32>
    %183 = math.exp %182 : vector<50x128xf32>
    %cst_57 = arith.constant 1.000000e+00 : f32
    %184 = vector.broadcast %cst_57 : f32 to vector<50x128xf32>
    %185 = arith.addf %184, %183 : vector<50x128xf32>
    %186 = arith.divf %184, %185 : vector<50x128xf32>
    %187 = arith.mulf %179, %186 : vector<50x128xf32>
    %188 = arith.truncf %187 : vector<50x128xf32> to vector<50x128xbf16>
    %cst_58 = arith.constant dense<0.000000e+00> : vector<50x32xf32>
    %189 = tpu.matmul %188, %32, %cst_58 {dimension_numbers = #tpu.dot_dimension_numbers<[1], [0], [0], [1], [0, 0, 1, 1], [], []>} : vector<50x128xbf16>, vector<128x32xbf16>, vector<50x32xf32> -> vector<50x32xf32>
    %190 = vector.broadcast %40 : vector<1x32xf32> to vector<50x32xf32>
    %191 = arith.addf %189, %190 : vector<50x32xf32>
    %192 = arith.addf %155, %191 : vector<50x32xf32>
    %193 = vector.extract_strided_slice %192 {offsets = [0, 0], sizes = [1, 32], strides = [1, 1]} : vector<50x32xf32> to vector<1x32xf32>
    %c0_59 = arith.constant 0 : index
    %c0_60 = arith.constant 0 : index
    %194 = vector.load %arg2[%c0_59, %c0_60] : memref<8x1xi32, #tpu.memory_space<vmem>>, vector<8x1xi32>
    %195 = tpu.iota {dimensions = array<i32: 1>} : vector<8x64xi32>
    %196 = vector.broadcast %194 : vector<8x1xi32> to vector<8x64xi32>
    %197 = arith.cmpi eq, %196, %195 : vector<8x64xi32>
    %198 = arith.extui %197 : vector<8x64xi1> to vector<8x64xi32>
    %199 = arith.sitofp %198 : vector<8x64xi32> to vector<8x64xf32>
    %200 = arith.truncf %199 : vector<8x64xf32> to vector<8x64xbf16>
    %c0_61 = arith.constant 0 : index
    %c0_62 = arith.constant 0 : index
    %201 = vector.load %arg7[%c0_61, %c0_62] : memref<64x32xbf16, #tpu.memory_space<vmem>>, vector<64x32xbf16>
    %cst_63 = arith.constant dense<0.000000e+00> : vector<8x32xf32>
    %202 = tpu.matmul %200, %201, %cst_63 {dimension_numbers = #tpu.dot_dimension_numbers<[1], [0], [0], [1], [0, 0, 1, 1], [], []>} : vector<8x64xbf16>, vector<64x32xbf16>, vector<8x32xf32> -> vector<8x32xf32>
    %c0_64 = arith.constant 0 : index
    %c0_65 = arith.constant 0 : index
    %203 = vector.load %arg6[%c0_64, %c0_65] : memref<8x32xf32, #tpu.memory_space<vmem>>, vector<8x32xf32>
    %204 = arith.addf %202, %203 : vector<8x32xf32>
    %c0_66 = arith.constant 0 : index
    %c0_67 = arith.constant 0 : index
    %205 = vector.load %arg11[%c0_66, %c0_67] : memref<64x128xbf16, #tpu.memory_space<vmem>>, vector<64x128xbf16>
    %c0_68 = arith.constant 0 : index
    %c0_69 = arith.constant 0 : index
    %206 = vector.load %arg12[%c0_68, %c0_69] : memref<128x32xbf16, #tpu.memory_space<vmem>>, vector<128x32xbf16>
    %207 = vector.extract_strided_slice %0 {offsets = [14, 0], sizes = [1, 32], strides = [1, 1]} : vector<22x128xf32> to vector<1x32xf32>
    %208 = vector.extract_strided_slice %0 {offsets = [15, 0], sizes = [1, 32], strides = [1, 1]} : vector<22x128xf32> to vector<1x32xf32>
    %209 = vector.extract_strided_slice %0 {offsets = [16, 0], sizes = [1, 96], strides = [1, 1]} : vector<22x128xf32> to vector<1x96xf32>
    %210 = vector.extract_strided_slice %0 {offsets = [17, 0], sizes = [1, 32], strides = [1, 1]} : vector<22x128xf32> to vector<1x32xf32>
    %211 = vector.extract_strided_slice %0 {offsets = [18, 0], sizes = [1, 32], strides = [1, 1]} : vector<22x128xf32> to vector<1x32xf32>
    %212 = vector.extract_strided_slice %0 {offsets = [19, 0], sizes = [1, 32], strides = [1, 1]} : vector<22x128xf32> to vector<1x32xf32>
    %213 = vector.extract_strided_slice %0 {offsets = [20, 0], sizes = [1, 128], strides = [1, 1]} : vector<22x128xf32> to vector<1x128xf32>
    %214 = vector.extract_strided_slice %0 {offsets = [21, 0], sizes = [1, 32], strides = [1, 1]} : vector<22x128xf32> to vector<1x32xf32>
    %215 = vector.extract_strided_slice %205 {offsets = [0, 0], sizes = [32, 96], strides = [1, 1]} : vector<64x128xbf16> to vector<32x96xbf16>
    %216 = vector.extract_strided_slice %205 {offsets = [0, 96], sizes = [32, 32], strides = [1, 1]} : vector<64x128xbf16> to vector<32x32xbf16>
    %217 = vector.extract_strided_slice %205 {offsets = [32, 0], sizes = [32, 128], strides = [1, 1]} : vector<64x128xbf16> to vector<32x128xbf16>
    %cst_70 = arith.constant dense<0.000000e+00> : vector<8xf32>
    %218 = vector.multi_reduction <add>, %204, %cst_70 [1] : vector<8x32xf32> to vector<8xf32>
    %219 = vector.shape_cast %218 : vector<8xf32> to vector<8x1xf32>
    %cst_71 = arith.constant 3.200000e+01 : f32
    %220 = vector.broadcast %cst_71 : f32 to vector<8x1xf32>
    %221 = arith.divf %219, %220 : vector<8x1xf32>
    %222 = vector.broadcast %221 : vector<8x1xf32> to vector<8x32xf32>
    %223 = arith.subf %204, %222 : vector<8x32xf32>
    %224 = arith.mulf %223, %223 : vector<8x32xf32>
    %cst_72 = arith.constant dense<0.000000e+00> : vector<8xf32>
    %225 = vector.multi_reduction <add>, %224, %cst_72 [1] : vector<8x32xf32> to vector<8xf32>
    %226 = vector.shape_cast %225 : vector<8xf32> to vector<8x1xf32>
    %cst_73 = arith.constant 3.200000e+01 : f32
    %227 = vector.broadcast %cst_73 : f32 to vector<8x1xf32>
    %228 = arith.divf %226, %227 : vector<8x1xf32>
    %cst_74 = arith.constant 9.99999974E-6 : f32
    %229 = vector.broadcast %cst_74 : f32 to vector<8x1xf32>
    %230 = arith.addf %228, %229 : vector<8x1xf32>
    %231 = math.rsqrt %230 : vector<8x1xf32>
    %232 = vector.broadcast %231 : vector<8x1xf32> to vector<8x32xf32>
    %233 = arith.mulf %223, %232 : vector<8x32xf32>
    %234 = vector.broadcast %207 : vector<1x32xf32> to vector<8x32xf32>
    %235 = arith.mulf %233, %234 : vector<8x32xf32>
    %236 = vector.broadcast %208 : vector<1x32xf32> to vector<8x32xf32>
    %237 = arith.addf %235, %236 : vector<8x32xf32>
    %238 = arith.truncf %237 : vector<8x32xf32> to vector<8x32xbf16>
    %cst_75 = arith.constant dense<0.000000e+00> : vector<8x96xf32>
    %239 = tpu.matmul %238, %215, %cst_75 {dimension_numbers = #tpu.dot_dimension_numbers<[1], [0], [0], [1], [0, 0, 1, 1], [], []>} : vector<8x32xbf16>, vector<32x96xbf16>, vector<8x96xf32> -> vector<8x96xf32>
    %240 = vector.broadcast %209 : vector<1x96xf32> to vector<8x96xf32>
    %241 = arith.addf %239, %240 : vector<8x96xf32>
    %242 = tpu.iota {dimensions = array<i32: 0>} : vector<8x8xi32>
    %243 = tpu.iota {dimensions = array<i32: 1>} : vector<8x8xi32>
    %244 = arith.cmpi sle, %243, %242 : vector<8x8xi32>
    %cst_76 = arith.constant 0.000000e+00 : f32
    %cst_77 = arith.constant -1.000000e+09 : f32
    %245 = vector.broadcast %cst_76 : f32 to vector<8x8xf32>
    %246 = vector.broadcast %cst_77 : f32 to vector<8x8xf32>
    %247 = arith.select %244, %245, %246 : vector<8x8xi1>, vector<8x8xf32>
    %cst_78 = arith.constant 0.000000e+00 : f32
    %248 = vector.broadcast %cst_78 : f32 to vector<8x32xf32>
    %249 = vector.extract_strided_slice %241 {offsets = [0, 0], sizes = [8, 8], strides = [1, 1]} : vector<8x96xf32> to vector<8x8xf32>
    %250 = vector.extract_strided_slice %241 {offsets = [0, 32], sizes = [8, 8], strides = [1, 1]} : vector<8x96xf32> to vector<8x8xf32>
    %251 = vector.extract_strided_slice %241 {offsets = [0, 64], sizes = [8, 8], strides = [1, 1]} : vector<8x96xf32> to vector<8x8xf32>
    %cst_79 = arith.constant dense<0.000000e+00> : vector<8x8xf32>
    %252 = tpu.matmul %249, %250, %cst_79 {dimension_numbers = #tpu.dot_dimension_numbers<[1], [1], [0], [0], [0, 0, 1, 0], [], []>} : vector<8x8xf32>, vector<8x8xf32>, vector<8x8xf32> -> vector<8x8xf32>
    %cst_80 = arith.constant 0.353553385 : f32
    %253 = vector.broadcast %cst_80 : f32 to vector<8x8xf32>
    %254 = arith.mulf %252, %253 : vector<8x8xf32>
    %255 = arith.addf %254, %247 : vector<8x8xf32>
    %cst_81 = arith.constant dense<0xFF800000> : vector<8xf32>
    %256 = vector.multi_reduction <maximumf>, %255, %cst_81 [1] : vector<8x8xf32> to vector<8xf32>
    %257 = vector.shape_cast %256 : vector<8xf32> to vector<8x1xf32>
    %258 = vector.broadcast %257 : vector<8x1xf32> to vector<8x8xf32>
    %259 = arith.subf %255, %258 : vector<8x8xf32>
    %260 = math.exp %259 : vector<8x8xf32>
    %cst_82 = arith.constant dense<0.000000e+00> : vector<8xf32>
    %261 = vector.multi_reduction <add>, %260, %cst_82 [1] : vector<8x8xf32> to vector<8xf32>
    %262 = vector.shape_cast %261 : vector<8xf32> to vector<8x1xf32>
    %263 = tpu.reciprocal %262 {approx = true} : vector<8x1xf32> -> vector<8x1xf32>
    %264 = vector.broadcast %263 : vector<8x1xf32> to vector<8x8xf32>
    %265 = arith.mulf %260, %264 : vector<8x8xf32>
    %cst_83 = arith.constant dense<0.000000e+00> : vector<8x8xf32>
    %266 = tpu.matmul %265, %251, %cst_83 {dimension_numbers = #tpu.dot_dimension_numbers<[1], [0], [0], [1], [0, 0, 1, 1], [], []>} : vector<8x8xf32>, vector<8x8xf32>, vector<8x8xf32> -> vector<8x8xf32>
    %267 = arith.truncf %266 : vector<8x8xf32> to vector<8x8xbf16>
    %268 = vector.extract_strided_slice %216 {offsets = [0, 0], sizes = [8, 32], strides = [1, 1]} : vector<32x32xbf16> to vector<8x32xbf16>
    %cst_84 = arith.constant dense<0.000000e+00> : vector<8x32xf32>
    %269 = tpu.matmul %267, %268, %cst_84 {dimension_numbers = #tpu.dot_dimension_numbers<[1], [0], [0], [1], [0, 0, 1, 1], [], []>} : vector<8x8xbf16>, vector<8x32xbf16>, vector<8x32xf32> -> vector<8x32xf32>
    %270 = arith.addf %248, %269 : vector<8x32xf32>
    %271 = vector.extract_strided_slice %241 {offsets = [0, 8], sizes = [8, 8], strides = [1, 1]} : vector<8x96xf32> to vector<8x8xf32>
    %272 = vector.extract_strided_slice %241 {offsets = [0, 40], sizes = [8, 8], strides = [1, 1]} : vector<8x96xf32> to vector<8x8xf32>
    %273 = vector.extract_strided_slice %241 {offsets = [0, 72], sizes = [8, 8], strides = [1, 1]} : vector<8x96xf32> to vector<8x8xf32>
    %cst_85 = arith.constant dense<0.000000e+00> : vector<8x8xf32>
    %274 = tpu.matmul %271, %272, %cst_85 {dimension_numbers = #tpu.dot_dimension_numbers<[1], [1], [0], [0], [0, 0, 1, 0], [], []>} : vector<8x8xf32>, vector<8x8xf32>, vector<8x8xf32> -> vector<8x8xf32>
    %cst_86 = arith.constant 0.353553385 : f32
    %275 = vector.broadcast %cst_86 : f32 to vector<8x8xf32>
    %276 = arith.mulf %274, %275 : vector<8x8xf32>
    %277 = arith.addf %276, %247 : vector<8x8xf32>
    %cst_87 = arith.constant dense<0xFF800000> : vector<8xf32>
    %278 = vector.multi_reduction <maximumf>, %277, %cst_87 [1] : vector<8x8xf32> to vector<8xf32>
    %279 = vector.shape_cast %278 : vector<8xf32> to vector<8x1xf32>
    %280 = vector.broadcast %279 : vector<8x1xf32> to vector<8x8xf32>
    %281 = arith.subf %277, %280 : vector<8x8xf32>
    %282 = math.exp %281 : vector<8x8xf32>
    %cst_88 = arith.constant dense<0.000000e+00> : vector<8xf32>
    %283 = vector.multi_reduction <add>, %282, %cst_88 [1] : vector<8x8xf32> to vector<8xf32>
    %284 = vector.shape_cast %283 : vector<8xf32> to vector<8x1xf32>
    %285 = tpu.reciprocal %284 {approx = true} : vector<8x1xf32> -> vector<8x1xf32>
    %286 = vector.broadcast %285 : vector<8x1xf32> to vector<8x8xf32>
    %287 = arith.mulf %282, %286 : vector<8x8xf32>
    %cst_89 = arith.constant dense<0.000000e+00> : vector<8x8xf32>
    %288 = tpu.matmul %287, %273, %cst_89 {dimension_numbers = #tpu.dot_dimension_numbers<[1], [0], [0], [1], [0, 0, 1, 1], [], []>} : vector<8x8xf32>, vector<8x8xf32>, vector<8x8xf32> -> vector<8x8xf32>
    %289 = arith.truncf %288 : vector<8x8xf32> to vector<8x8xbf16>
    %290 = vector.extract_strided_slice %216 {offsets = [8, 0], sizes = [8, 32], strides = [1, 1]} : vector<32x32xbf16> to vector<8x32xbf16>
    %cst_90 = arith.constant dense<0.000000e+00> : vector<8x32xf32>
    %291 = tpu.matmul %289, %290, %cst_90 {dimension_numbers = #tpu.dot_dimension_numbers<[1], [0], [0], [1], [0, 0, 1, 1], [], []>} : vector<8x8xbf16>, vector<8x32xbf16>, vector<8x32xf32> -> vector<8x32xf32>
    %292 = arith.addf %270, %291 : vector<8x32xf32>
    %293 = vector.extract_strided_slice %241 {offsets = [0, 16], sizes = [8, 8], strides = [1, 1]} : vector<8x96xf32> to vector<8x8xf32>
    %294 = vector.extract_strided_slice %241 {offsets = [0, 48], sizes = [8, 8], strides = [1, 1]} : vector<8x96xf32> to vector<8x8xf32>
    %295 = vector.extract_strided_slice %241 {offsets = [0, 80], sizes = [8, 8], strides = [1, 1]} : vector<8x96xf32> to vector<8x8xf32>
    %cst_91 = arith.constant dense<0.000000e+00> : vector<8x8xf32>
    %296 = tpu.matmul %293, %294, %cst_91 {dimension_numbers = #tpu.dot_dimension_numbers<[1], [1], [0], [0], [0, 0, 1, 0], [], []>} : vector<8x8xf32>, vector<8x8xf32>, vector<8x8xf32> -> vector<8x8xf32>
    %cst_92 = arith.constant 0.353553385 : f32
    %297 = vector.broadcast %cst_92 : f32 to vector<8x8xf32>
    %298 = arith.mulf %296, %297 : vector<8x8xf32>
    %299 = arith.addf %298, %247 : vector<8x8xf32>
    %cst_93 = arith.constant dense<0xFF800000> : vector<8xf32>
    %300 = vector.multi_reduction <maximumf>, %299, %cst_93 [1] : vector<8x8xf32> to vector<8xf32>
    %301 = vector.shape_cast %300 : vector<8xf32> to vector<8x1xf32>
    %302 = vector.broadcast %301 : vector<8x1xf32> to vector<8x8xf32>
    %303 = arith.subf %299, %302 : vector<8x8xf32>
    %304 = math.exp %303 : vector<8x8xf32>
    %cst_94 = arith.constant dense<0.000000e+00> : vector<8xf32>
    %305 = vector.multi_reduction <add>, %304, %cst_94 [1] : vector<8x8xf32> to vector<8xf32>
    %306 = vector.shape_cast %305 : vector<8xf32> to vector<8x1xf32>
    %307 = tpu.reciprocal %306 {approx = true} : vector<8x1xf32> -> vector<8x1xf32>
    %308 = vector.broadcast %307 : vector<8x1xf32> to vector<8x8xf32>
    %309 = arith.mulf %304, %308 : vector<8x8xf32>
    %cst_95 = arith.constant dense<0.000000e+00> : vector<8x8xf32>
    %310 = tpu.matmul %309, %295, %cst_95 {dimension_numbers = #tpu.dot_dimension_numbers<[1], [0], [0], [1], [0, 0, 1, 1], [], []>} : vector<8x8xf32>, vector<8x8xf32>, vector<8x8xf32> -> vector<8x8xf32>
    %311 = arith.truncf %310 : vector<8x8xf32> to vector<8x8xbf16>
    %312 = vector.extract_strided_slice %216 {offsets = [16, 0], sizes = [8, 32], strides = [1, 1]} : vector<32x32xbf16> to vector<8x32xbf16>
    %cst_96 = arith.constant dense<0.000000e+00> : vector<8x32xf32>
    %313 = tpu.matmul %311, %312, %cst_96 {dimension_numbers = #tpu.dot_dimension_numbers<[1], [0], [0], [1], [0, 0, 1, 1], [], []>} : vector<8x8xbf16>, vector<8x32xbf16>, vector<8x32xf32> -> vector<8x32xf32>
    %314 = arith.addf %292, %313 : vector<8x32xf32>
    %315 = vector.extract_strided_slice %241 {offsets = [0, 24], sizes = [8, 8], strides = [1, 1]} : vector<8x96xf32> to vector<8x8xf32>
    %316 = vector.extract_strided_slice %241 {offsets = [0, 56], sizes = [8, 8], strides = [1, 1]} : vector<8x96xf32> to vector<8x8xf32>
    %317 = vector.extract_strided_slice %241 {offsets = [0, 88], sizes = [8, 8], strides = [1, 1]} : vector<8x96xf32> to vector<8x8xf32>
    %cst_97 = arith.constant dense<0.000000e+00> : vector<8x8xf32>
    %318 = tpu.matmul %315, %316, %cst_97 {dimension_numbers = #tpu.dot_dimension_numbers<[1], [1], [0], [0], [0, 0, 1, 0], [], []>} : vector<8x8xf32>, vector<8x8xf32>, vector<8x8xf32> -> vector<8x8xf32>
    %cst_98 = arith.constant 0.353553385 : f32
    %319 = vector.broadcast %cst_98 : f32 to vector<8x8xf32>
    %320 = arith.mulf %318, %319 : vector<8x8xf32>
    %321 = arith.addf %320, %247 : vector<8x8xf32>
    %cst_99 = arith.constant dense<0xFF800000> : vector<8xf32>
    %322 = vector.multi_reduction <maximumf>, %321, %cst_99 [1] : vector<8x8xf32> to vector<8xf32>
    %323 = vector.shape_cast %322 : vector<8xf32> to vector<8x1xf32>
    %324 = vector.broadcast %323 : vector<8x1xf32> to vector<8x8xf32>
    %325 = arith.subf %321, %324 : vector<8x8xf32>
    %326 = math.exp %325 : vector<8x8xf32>
    %cst_100 = arith.constant dense<0.000000e+00> : vector<8xf32>
    %327 = vector.multi_reduction <add>, %326, %cst_100 [1] : vector<8x8xf32> to vector<8xf32>
    %328 = vector.shape_cast %327 : vector<8xf32> to vector<8x1xf32>
    %329 = tpu.reciprocal %328 {approx = true} : vector<8x1xf32> -> vector<8x1xf32>
    %330 = vector.broadcast %329 : vector<8x1xf32> to vector<8x8xf32>
    %331 = arith.mulf %326, %330 : vector<8x8xf32>
    %cst_101 = arith.constant dense<0.000000e+00> : vector<8x8xf32>
    %332 = tpu.matmul %331, %317, %cst_101 {dimension_numbers = #tpu.dot_dimension_numbers<[1], [0], [0], [1], [0, 0, 1, 1], [], []>} : vector<8x8xf32>, vector<8x8xf32>, vector<8x8xf32> -> vector<8x8xf32>
    %333 = arith.truncf %332 : vector<8x8xf32> to vector<8x8xbf16>
    %334 = vector.extract_strided_slice %216 {offsets = [24, 0], sizes = [8, 32], strides = [1, 1]} : vector<32x32xbf16> to vector<8x32xbf16>
    %cst_102 = arith.constant dense<0.000000e+00> : vector<8x32xf32>
    %335 = tpu.matmul %333, %334, %cst_102 {dimension_numbers = #tpu.dot_dimension_numbers<[1], [0], [0], [1], [0, 0, 1, 1], [], []>} : vector<8x8xbf16>, vector<8x32xbf16>, vector<8x32xf32> -> vector<8x32xf32>
    %336 = arith.addf %314, %335 : vector<8x32xf32>
    %337 = arith.addf %204, %336 : vector<8x32xf32>
    %338 = vector.broadcast %210 : vector<1x32xf32> to vector<8x32xf32>
    %339 = arith.addf %337, %338 : vector<8x32xf32>
    %cst_103 = arith.constant dense<0.000000e+00> : vector<8xf32>
    %340 = vector.multi_reduction <add>, %339, %cst_103 [1] : vector<8x32xf32> to vector<8xf32>
    %341 = vector.shape_cast %340 : vector<8xf32> to vector<8x1xf32>
    %cst_104 = arith.constant 3.200000e+01 : f32
    %342 = vector.broadcast %cst_104 : f32 to vector<8x1xf32>
    %343 = arith.divf %341, %342 : vector<8x1xf32>
    %344 = vector.broadcast %343 : vector<8x1xf32> to vector<8x32xf32>
    %345 = arith.subf %339, %344 : vector<8x32xf32>
    %346 = arith.mulf %345, %345 : vector<8x32xf32>
    %cst_105 = arith.constant dense<0.000000e+00> : vector<8xf32>
    %347 = vector.multi_reduction <add>, %346, %cst_105 [1] : vector<8x32xf32> to vector<8xf32>
    %348 = vector.shape_cast %347 : vector<8xf32> to vector<8x1xf32>
    %cst_106 = arith.constant 3.200000e+01 : f32
    %349 = vector.broadcast %cst_106 : f32 to vector<8x1xf32>
    %350 = arith.divf %348, %349 : vector<8x1xf32>
    %cst_107 = arith.constant 9.99999974E-6 : f32
    %351 = vector.broadcast %cst_107 : f32 to vector<8x1xf32>
    %352 = arith.addf %350, %351 : vector<8x1xf32>
    %353 = math.rsqrt %352 : vector<8x1xf32>
    %354 = vector.broadcast %353 : vector<8x1xf32> to vector<8x32xf32>
    %355 = arith.mulf %345, %354 : vector<8x32xf32>
    %356 = vector.broadcast %211 : vector<1x32xf32> to vector<8x32xf32>
    %357 = arith.mulf %355, %356 : vector<8x32xf32>
    %358 = vector.broadcast %212 : vector<1x32xf32> to vector<8x32xf32>
    %359 = arith.addf %357, %358 : vector<8x32xf32>
    %360 = arith.truncf %359 : vector<8x32xf32> to vector<8x32xbf16>
    %cst_108 = arith.constant dense<0.000000e+00> : vector<8x128xf32>
    %361 = tpu.matmul %360, %217, %cst_108 {dimension_numbers = #tpu.dot_dimension_numbers<[1], [0], [0], [1], [0, 0, 1, 1], [], []>} : vector<8x32xbf16>, vector<32x128xbf16>, vector<8x128xf32> -> vector<8x128xf32>
    %362 = vector.broadcast %213 : vector<1x128xf32> to vector<8x128xf32>
    %363 = arith.addf %361, %362 : vector<8x128xf32>
    %cst_109 = arith.constant 1.702000e+00 : f32
    %364 = vector.broadcast %cst_109 : f32 to vector<8x128xf32>
    %365 = arith.mulf %364, %363 : vector<8x128xf32>
    %366 = arith.negf %365 : vector<8x128xf32>
    %367 = math.exp %366 : vector<8x128xf32>
    %cst_110 = arith.constant 1.000000e+00 : f32
    %368 = vector.broadcast %cst_110 : f32 to vector<8x128xf32>
    %369 = arith.addf %368, %367 : vector<8x128xf32>
    %370 = arith.divf %368, %369 : vector<8x128xf32>
    %371 = arith.mulf %363, %370 : vector<8x128xf32>
    %372 = arith.truncf %371 : vector<8x128xf32> to vector<8x128xbf16>
    %cst_111 = arith.constant dense<0.000000e+00> : vector<8x32xf32>
    %373 = tpu.matmul %372, %206, %cst_111 {dimension_numbers = #tpu.dot_dimension_numbers<[1], [0], [0], [1], [0, 0, 1, 1], [], []>} : vector<8x128xbf16>, vector<128x32xbf16>, vector<8x32xf32> -> vector<8x32xf32>
    %374 = vector.broadcast %214 : vector<1x32xf32> to vector<8x32xf32>
    %375 = arith.addf %373, %374 : vector<8x32xf32>
    %376 = arith.addf %339, %375 : vector<8x32xf32>
    %377 = arith.sitofp %194 : vector<8x1xi32> to vector<8x1xf32>
    %cst_112 = arith.constant dense<0xFF800000> : vector<1xf32>
    %378 = vector.multi_reduction <maximumf>, %377, %cst_112 [0] : vector<8x1xf32> to vector<1xf32>
    %379 = vector.shape_cast %378 : vector<1xf32> to vector<1x1xf32>
    %380 = tpu.iota {dimensions = array<i32: 0>} : vector<8x1xi32>
    %381 = arith.sitofp %380 : vector<8x1xi32> to vector<8x1xf32>
    %382 = vector.broadcast %379 : vector<1x1xf32> to vector<8x1xf32>
    %383 = arith.cmpf oeq, %377, %382 : vector<8x1xf32>
    %cst_113 = arith.constant 8.000000e+00 : f32
    %384 = vector.broadcast %cst_113 : f32 to vector<8x1xf32>
    %385 = arith.select %383, %381, %384 : vector<8x1xi1>, vector<8x1xf32>
    %cst_114 = arith.constant dense<0x7F800000> : vector<1xf32>
    %386 = vector.multi_reduction <minimumf>, %385, %cst_114 [0] : vector<8x1xf32> to vector<1xf32>
    %387 = vector.shape_cast %386 : vector<1xf32> to vector<1x1xf32>
    %388 = tpu.iota {dimensions = array<i32: 1>} : vector<1x8xi32>
    %389 = arith.sitofp %388 : vector<1x8xi32> to vector<1x8xf32>
    %390 = vector.broadcast %387 : vector<1x1xf32> to vector<1x8xf32>
    %391 = arith.cmpf oeq, %389, %390 : vector<1x8xf32>
    %392 = arith.extui %391 : vector<1x8xi1> to vector<1x8xi32>
    %393 = arith.sitofp %392 : vector<1x8xi32> to vector<1x8xf32>
    %cst_115 = arith.constant dense<0.000000e+00> : vector<1x32xf32>
    %394 = tpu.matmul %393, %376, %cst_115 {dimension_numbers = #tpu.dot_dimension_numbers<[1], [0], [0], [1], [0, 0, 1, 1], [], []>} : vector<1x8xf32>, vector<8x32xf32>, vector<1x32xf32> -> vector<1x32xf32>
    %c0_116 = arith.constant 0 : index
    %c0_117 = arith.constant 0 : index
    %395 = vector.load %arg13[%c0_116, %c0_117] : memref<32x32xbf16, #tpu.memory_space<vmem>>, vector<32x32xbf16>
    %396 = vector.extract_strided_slice %0 {offsets = [2, 0], sizes = [1, 32], strides = [1, 1]} : vector<22x128xf32> to vector<1x32xf32>
    %397 = vector.extract_strided_slice %0 {offsets = [3, 0], sizes = [1, 32], strides = [1, 1]} : vector<22x128xf32> to vector<1x32xf32>
    %cst_118 = arith.constant dense<0.000000e+00> : vector<1xf32>
    %398 = vector.multi_reduction <add>, %193, %cst_118 [1] : vector<1x32xf32> to vector<1xf32>
    %399 = vector.shape_cast %398 : vector<1xf32> to vector<1x1xf32>
    %cst_119 = arith.constant 3.200000e+01 : f32
    %400 = vector.broadcast %cst_119 : f32 to vector<1x1xf32>
    %401 = arith.divf %399, %400 : vector<1x1xf32>
    %402 = vector.broadcast %401 : vector<1x1xf32> to vector<1x32xf32>
    %403 = arith.subf %193, %402 : vector<1x32xf32>
    %404 = arith.mulf %403, %403 : vector<1x32xf32>
    %cst_120 = arith.constant dense<0.000000e+00> : vector<1xf32>
    %405 = vector.multi_reduction <add>, %404, %cst_120 [1] : vector<1x32xf32> to vector<1xf32>
    %406 = vector.shape_cast %405 : vector<1xf32> to vector<1x1xf32>
    %cst_121 = arith.constant 3.200000e+01 : f32
    %407 = vector.broadcast %cst_121 : f32 to vector<1x1xf32>
    %408 = arith.divf %406, %407 : vector<1x1xf32>
    %cst_122 = arith.constant 9.99999974E-6 : f32
    %409 = vector.broadcast %cst_122 : f32 to vector<1x1xf32>
    %410 = arith.addf %408, %409 : vector<1x1xf32>
    %411 = math.rsqrt %410 : vector<1x1xf32>
    %412 = vector.broadcast %411 : vector<1x1xf32> to vector<1x32xf32>
    %413 = arith.mulf %403, %412 : vector<1x32xf32>
    %414 = arith.mulf %413, %396 : vector<1x32xf32>
    %415 = arith.addf %414, %397 : vector<1x32xf32>
    %416 = arith.truncf %415 : vector<1x32xf32> to vector<1x32xbf16>
    %417 = vector.extract_strided_slice %395 {offsets = [0, 0], sizes = [32, 16], strides = [1, 1]} : vector<32x32xbf16> to vector<32x16xbf16>
    %cst_123 = arith.constant dense<0.000000e+00> : vector<1x16xf32>
    %418 = tpu.matmul %416, %417, %cst_123 {dimension_numbers = #tpu.dot_dimension_numbers<[1], [0], [0], [1], [0, 0, 1, 1], [], []>} : vector<1x32xbf16>, vector<32x16xbf16>, vector<1x16xf32> -> vector<1x16xf32>
    %419 = vector.extract_strided_slice %0 {offsets = [4, 0], sizes = [1, 32], strides = [1, 1]} : vector<22x128xf32> to vector<1x32xf32>
    %420 = vector.extract_strided_slice %0 {offsets = [5, 0], sizes = [1, 32], strides = [1, 1]} : vector<22x128xf32> to vector<1x32xf32>
    %cst_124 = arith.constant dense<0.000000e+00> : vector<1xf32>
    %421 = vector.multi_reduction <add>, %394, %cst_124 [1] : vector<1x32xf32> to vector<1xf32>
    %422 = vector.shape_cast %421 : vector<1xf32> to vector<1x1xf32>
    %cst_125 = arith.constant 3.200000e+01 : f32
    %423 = vector.broadcast %cst_125 : f32 to vector<1x1xf32>
    %424 = arith.divf %422, %423 : vector<1x1xf32>
    %425 = vector.broadcast %424 : vector<1x1xf32> to vector<1x32xf32>
    %426 = arith.subf %394, %425 : vector<1x32xf32>
    %427 = arith.mulf %426, %426 : vector<1x32xf32>
    %cst_126 = arith.constant dense<0.000000e+00> : vector<1xf32>
    %428 = vector.multi_reduction <add>, %427, %cst_126 [1] : vector<1x32xf32> to vector<1xf32>
    %429 = vector.shape_cast %428 : vector<1xf32> to vector<1x1xf32>
    %cst_127 = arith.constant 3.200000e+01 : f32
    %430 = vector.broadcast %cst_127 : f32 to vector<1x1xf32>
    %431 = arith.divf %429, %430 : vector<1x1xf32>
    %cst_128 = arith.constant 9.99999974E-6 : f32
    %432 = vector.broadcast %cst_128 : f32 to vector<1x1xf32>
    %433 = arith.addf %431, %432 : vector<1x1xf32>
    %434 = math.rsqrt %433 : vector<1x1xf32>
    %435 = vector.broadcast %434 : vector<1x1xf32> to vector<1x32xf32>
    %436 = arith.mulf %426, %435 : vector<1x32xf32>
    %437 = arith.mulf %436, %419 : vector<1x32xf32>
    %438 = arith.addf %437, %420 : vector<1x32xf32>
    %439 = arith.truncf %438 : vector<1x32xf32> to vector<1x32xbf16>
    %440 = vector.extract_strided_slice %395 {offsets = [0, 16], sizes = [32, 16], strides = [1, 1]} : vector<32x32xbf16> to vector<32x16xbf16>
    %cst_129 = arith.constant dense<0.000000e+00> : vector<1x16xf32>
    %441 = tpu.matmul %439, %440, %cst_129 {dimension_numbers = #tpu.dot_dimension_numbers<[1], [0], [0], [1], [0, 0, 1, 1], [], []>} : vector<1x32xbf16>, vector<32x16xbf16>, vector<1x16xf32> -> vector<1x16xf32>
    %442 = arith.mulf %418, %418 : vector<1x16xf32>
    %cst_130 = arith.constant dense<0.000000e+00> : vector<1xf32>
    %443 = vector.multi_reduction <add>, %442, %cst_130 [1] : vector<1x16xf32> to vector<1xf32>
    %444 = vector.shape_cast %443 : vector<1xf32> to vector<1x1xf32>
    %cst_131 = arith.constant 9.99999996E-13 : f32
    %445 = vector.broadcast %cst_131 : f32 to vector<1x1xf32>
    %446 = arith.addf %444, %445 : vector<1x1xf32>
    %447 = math.rsqrt %446 : vector<1x1xf32>
    %448 = vector.broadcast %447 : vector<1x1xf32> to vector<1x16xf32>
    %449 = arith.mulf %418, %448 : vector<1x16xf32>
    %450 = arith.mulf %441, %441 : vector<1x16xf32>
    %cst_132 = arith.constant dense<0.000000e+00> : vector<1xf32>
    %451 = vector.multi_reduction <add>, %450, %cst_132 [1] : vector<1x16xf32> to vector<1xf32>
    %452 = vector.shape_cast %451 : vector<1xf32> to vector<1x1xf32>
    %cst_133 = arith.constant 9.99999996E-13 : f32
    %453 = vector.broadcast %cst_133 : f32 to vector<1x1xf32>
    %454 = arith.addf %452, %453 : vector<1x1xf32>
    %455 = math.rsqrt %454 : vector<1x1xf32>
    %456 = vector.broadcast %455 : vector<1x1xf32> to vector<1x16xf32>
    %457 = arith.mulf %441, %456 : vector<1x16xf32>
    %458 = vector.shape_cast %449 : vector<1x16xf32> to vector<1x1x16xf32>
    %c0_134 = arith.constant 0 : index
    %c0_135 = arith.constant 0 : index
    %c0_136 = arith.constant 0 : index
    %459 = vector.load %arg14[%c0_134, %c0_135, %c0_136] : memref<1x1x16xf32, #tpu.memory_space<vmem>>, vector<1x1x16xf32>
    tpu.vector_store %arg14[%c0_134, %c0_135, %c0_136], %458 {strides = array<i32>} : memref<1x1x16xf32, #tpu.memory_space<vmem>>, vector<1x1x16xf32>,
    %460 = vector.shape_cast %457 : vector<1x16xf32> to vector<1x1x16xf32>
    %c0_137 = arith.constant 0 : index
    %c0_138 = arith.constant 0 : index
    %c0_139 = arith.constant 0 : index
    %461 = vector.load %arg15[%c0_137, %c0_138, %c0_139] : memref<1x1x16xf32, #tpu.memory_space<vmem>>, vector<1x1x16xf32>
    tpu.vector_store %arg15[%c0_137, %c0_138, %c0_139], %460 {strides = array<i32>} : memref<1x1x16xf32, #tpu.memory_space<vmem>>, vector<1x1x16xf32>,
    return
  }
  func.func @transform_0(%arg0: i32) -> (i32, i32) {
    %c0_i32 = arith.constant 0 : i32
    %c0_i32_0 = arith.constant 0 : i32
    return %arg0, %c0_i32 : i32, i32
  }
  func.func @transform_1(%arg0: i32) -> (i32, i32) {
    %c0_i32 = arith.constant 0 : i32
    %c0_i32_0 = arith.constant 0 : i32
    return %arg0, %c0_i32 : i32, i32
  }
  func.func @transform_2(%arg0: i32) -> (i32, i32) {
    %c0_i32 = arith.constant 0 : i32
    %c0_i32_0 = arith.constant 0 : i32
    %c0_i32_1 = arith.constant 0 : i32
    return %c0_i32, %c0_i32_0 : i32, i32
  }
  func.func @transform_3(%arg0: i32) -> (i32, i32) {
    %c0_i32 = arith.constant 0 : i32
    %c0_i32_0 = arith.constant 0 : i32
    %c0_i32_1 = arith.constant 0 : i32
    return %c0_i32, %c0_i32_0 : i32, i32
  }
  func.func @transform_4(%arg0: i32) -> (i32, i32) {
    %c0_i32 = arith.constant 0 : i32
    %c0_i32_0 = arith.constant 0 : i32
    %c0_i32_1 = arith.constant 0 : i32
    return %c0_i32, %c0_i32_0 : i32, i32
  }
  func.func @transform_5(%arg0: i32) -> (i32, i32) {
    %c0_i32 = arith.constant 0 : i32
    %c0_i32_0 = arith.constant 0 : i32
    %c0_i32_1 = arith.constant 0 : i32
    return %c0_i32, %c0_i32_0 : i32, i32
  }
  func.func @transform_6(%arg0: i32) -> (i32, i32) {
    %c0_i32 = arith.constant 0 : i32
    %c0_i32_0 = arith.constant 0 : i32
    %c0_i32_1 = arith.constant 0 : i32
    return %c0_i32, %c0_i32_0 : i32, i32
  }
  func.func @transform_7(%arg0: i32) -> (i32, i32) {
    %c0_i32 = arith.constant 0 : i32
    %c0_i32_0 = arith.constant 0 : i32
    %c0_i32_1 = arith.constant 0 : i32
    return %c0_i32, %c0_i32_0 : i32, i32
  }
  func.func @transform_8(%arg0: i32) -> (i32, i32) {
    %c0_i32 = arith.constant 0 : i32
    %c0_i32_0 = arith.constant 0 : i32
    %c0_i32_1 = arith.constant 0 : i32
    return %c0_i32, %c0_i32_0 : i32, i32
  }
  func.func @transform_9(%arg0: i32) -> (i32, i32) {
    %c0_i32 = arith.constant 0 : i32
    %c0_i32_0 = arith.constant 0 : i32
    %c0_i32_1 = arith.constant 0 : i32
    return %c0_i32, %c0_i32_0 : i32, i32
  }
  func.func @transform_10(%arg0: i32) -> (i32, i32) {
    %c0_i32 = arith.constant 0 : i32
    %c0_i32_0 = arith.constant 0 : i32
    %c0_i32_1 = arith.constant 0 : i32
    return %c0_i32, %c0_i32_0 : i32, i32
  }
  func.func @transform_11(%arg0: i32) -> (i32, i32) {
    %c0_i32 = arith.constant 0 : i32
    %c0_i32_0 = arith.constant 0 : i32
    %c0_i32_1 = arith.constant 0 : i32
    return %c0_i32, %c0_i32_0 : i32, i32
  }
  func.func @transform_12(%arg0: i32) -> (i32, i32) {
    %c0_i32 = arith.constant 0 : i32
    %c0_i32_0 = arith.constant 0 : i32
    %c0_i32_1 = arith.constant 0 : i32
    return %c0_i32, %c0_i32_0 : i32, i32
  }
  func.func @transform_13(%arg0: i32) -> (i32, i32, i32) {
    %c0_i32 = arith.constant 0 : i32
    %c0_i32_0 = arith.constant 0 : i32
    %c0_i32_1 = arith.constant 0 : i32
    return %arg0, %c0_i32, %c0_i32_0 : i32, i32, i32
  }
  func.func @transform_14(%arg0: i32) -> (i32, i32, i32) {
    %c0_i32 = arith.constant 0 : i32
    %c0_i32_0 = arith.constant 0 : i32
    %c0_i32_1 = arith.constant 0 : i32
    return %arg0, %c0_i32, %c0_i32_0 : i32, i32, i32
  }
}

</mosaic_0001>

<bundles_post_ra>
// kernel: clip_loss_forward.1
= control target key start
LH: loop header
LB: loop body
LE: loop exit
PB: predicated region body
PF: predicated region fallthrough
CT: control target
= control target key end

     0   :  { %s8413_s29 = smov 0   ;;  %s10467_s0 = inlined_call_operand.vmem [shape: f32[2048,3], index: 0, kind: input, shape index: {}]   ;;  %s10468_s1 = inlined_call_operand.vmem [shape: s32[16,1], index: 1, kind: input, shape index: {}]   ;;  %s10469_s2 = inlined_call_operand.vmem [shape: bf16[50,1024], index: 2, kind: input, shape index: {}]   ;;  %s10470_s3 = inlined_call_operand.vmem [shape: f32[3,32], index: 3, kind: input, shape index: {}]   ;;  %s10471_s4 = inlined_call_operand.vmem [shape: f32[50,32], index: 4, kind: input, shape index: {}]   ;;  %s10472_s5 = inlined_call_operand.vmem [shape: f32[8,32], index: 5, kind: input, shape index: {}]   ;;  %s10473_s6 = inlined_call_operand.vmem [shape: bf16[64,32], index: 6, kind: input, shape index: {}]   ;;  %s10474_s7 = inlined_call_operand.vmem [shape: f32[22,128], index: 7, kind: input, shape index: {}]   ;;  %s10475_s8 = inlined_call_operand.vmem [shape: bf16[64,128], index: 8, kind: input, shape index: {}]   ;;  %s10476_s9 = inlined_call_operand.vmem [shape: bf16[128,32], index: 9, kind: input, shape index: {}]   ;;  %s10477_s10 = inlined_call_operand.vmem [shape: bf16[64,128], index: 10, kind: input, shape index: {}]   ;;  %s10478_s11 = inlined_call_operand.vmem [shape: bf16[128,32], index: 11, kind: input, shape index: {}]   ;;  %s10479_s12 = inlined_call_operand.vmem [shape: bf16[32,32], index: 12, kind: input, shape index: {}]   ;;  %s10480_s13 = inlined_call_operand.vmem [shape: f32[2,1,16], index: 13, kind: output, shape index: {0}]   ;;  %s10481_s14 = inlined_call_operand.vmem [shape: f32[2,1,16], index: 14, kind: output, shape index: {1}]  }
   0x1 LB: > { %s8419_s30 = sadd.s32 4294967295, %s8320_s29   ;;  %p6478_p0 = scmp.ge.s32.totalorder %s8320_s29, 1  ;;  %s8320_s29 = sphi %s8413_s29, %s25_s29  }
   0x2   : > { %p425_p1 = scmp.lt.s32.totalorder %s8320_s29, 3 }
   0x4   : > { %p426_p2 = pnand %p6478_p0, %p425_p1 }
   0x5   : > { %s6479_s17 = sshll.u32 (!%p426_p2), %s8419_s30, 7  ;;  %s8323_s20 = smov (!%p426_p2), 96  }
   0x6   : > { %429 = sbr.rel (%p426_p2) target bundleno = 9526 (0x2536), region = 72  ;;  %p477_p3 = scmp.lt.s32.totalorder (!%p426_p2), %s6479_s17, 255 }
   0x7   : > { %s8326_s22 = smov (!%p426_p2), 88   ;;  %s8327_s23 = smov (!%p426_p2), 120  }
   0x8   : > { %s10488_s24 = smov (!%p426_p2), 56   ;;  %s8329_s25 = smov (!%p426_p2), 80  }
   0x9   : > { %s10486_s26 = smov (!%p426_p2), 112   ;;  %s8331_s27 = smov (!%p426_p2), 32  }
   0xa   : > { %s10485_s28 = smov (!%p426_p2), 48   ;;  %s10484_s15 = smov (!%p426_p2), 72  }
   0xb   : > { %v624_v0 = vld [vmem:[%s10470_s3] sm:$0x7]  ;;  %vm1010_vm0 = vcmask 1042432   ;;  %s10496_s17 = smov (!%p477_p3, %s6479_s17), 255  ;;  %vm625_vm1 = vcmask 23552   ;;  %vm2229_vm2 = vcmask 261120  }
   0xc   : > { %7324 = vmatprep.subr.msk.mxu0 %vm1010_vm0, %v624_v0  ;;  %s6480_s18 = sshll.u32 %s10496_s17, 3  ;;  %vm2248_vm3 = vcmask 254976   ;;  %vm8325_vm4 = vmmov 0   ;;  %vm2599_vm5 = vcmask 64512   ;;  %vm2855_vm6 = vcmask 1041408   ;;  %s10483_s16 = smov 104  }
   0xd   : > { %7325 = vmatpush3.msk.msra.mxu0 %vm1010_vm0, %v624_v0  ;;  %s8430_s21 = scalar_lea.vmem %s10467_s0, %s6480_s18  ;;  %vm2735_vm7 = vcmask 408576   ;;  %vm2754_vm8 = vcmask 402432   ;;  %vm3364_vm9 = vcmask 1043456   ;;  %s10482_s19 = smov 40   ;;  %vm4907_vm11 = vcmask 523264  }
   0xe   : > { %v496_v1 = vld [vmem:[%s8430_s21] sm:$0xff]  ;;  %v497_v2 = vld [vmem:[%s8430_s21 + $0x8] sm:$0xff]  ;;  %v498_v3 = vld [vmem:[%s8430_s21 + $0x10] sm:$0xff]  ;;  %p482_p4 = scmp.lt.s32.totalorder %s8419_s30, 1  ;;  %vm6227_vm13 = vcmask 253952   ;;  %vm6123_vm14 = vcmask 7168  }
   0xf   : > { %7326 = vmatprep.mubr.msk.f32.mxu0 %vm625_vm1, %v496_v1  ;;  %v499_v4 = vld [vmem:[%s8430_s21 + $0x18] sm:$0xff]  ;;  %v500_v5 = vld [vmem:[%s8430_s21 + $0x20] sm:$0xff]  ;;  %v501_v6 = vld [vmem:[%s8430_s21 + $0x28] sm:$0xff] }
  0x10   : > { %7327 = vmatmul.mubr.msk.f32.vlgmr.msra.gmra.mxu0 %vm625_vm1, %v497_v2  ;;  %v502_v7 = vld [vmem:[%s8430_s21 + $0x30] sm:$0xff]  ;;  %v503_v8 = vld [vmem:[%s8430_s21 + $0x38] sm:$0xff]  ;;  %v504_v9 = vld [vmem:[%s8430_s21 + $0x40] sm:$0xff]  ;;  %s10498_s30 = smov (!%p482_p4, %s8419_s30), 1 }
  0x11   : > { %7329 = vmatprep.mubr.msk.f32.mxu0 %vm625_vm1, %v498_v3  ;;  %v505_v10 = vld [vmem:[%s8430_s21 + $0x48] sm:$0xff]  ;;  %v506_v11 = vld [vmem:[%s8430_s21 + $0x50] sm:$0xff]  ;;  %v507_v12 = vld [vmem:[%s8430_s21 + $0x58] sm:$0xff]  ;;  %s6481_s17 = sshll.u32 %s10498_s30, 3  ;;  %s488_s18 = scalar_lea.vmem %s10480_s13, %s10498_s30 }
  0x12   : > { %v508_v13 = vld [vmem:[%s8430_s21 + $0x60] sm:$0xff]  ;;  %v509_v14 = vld [vmem:[%s8430_s21 + $0x68] sm:$0xff]  ;;  %v510_v15 = vld [vmem:[%s8430_s21 + $0x70] sm:$0xff] }
  0x13   : > { %v511_v16 = vld [vmem:[%s8430_s21 + $0x78] sm:$0xff]  ;;  %v512_v17 = vld [vmem:[%s8430_s21 + $0x80] sm:$0xff]  ;;  %v513_v18 = vld [vmem:[%s8430_s21 + $0x88] sm:$0xff] }
  0x14   : > { %7330 = vmatmul.mubr.msk.f32.gmra.mxu0 %vm625_vm1, %v499_v4  ;;  %v514_v19 = vld [vmem:[%s8430_s21 + $0x90] sm:$0xff]  ;;  %v515_v20 = vld [vmem:[%s8430_s21 + $0x98] sm:$0xff]  ;;  %v516_v21 = vld [vmem:[%s8430_s21 + $0xa0] sm:$0xff] }
  0x15   : > { %7332 = vmatprep.mubr.msk.f32.mxu0 %vm625_vm1, %v500_v5  ;;  %v517_v22 = vld [vmem:[%s8430_s21 + $0xa8] sm:$0xff]  ;;  %v518_v23 = vld [vmem:[%s8430_s21 + $0xb0] sm:$0xff]  ;;  %v519_v24 = vld [vmem:[%s8430_s21 + $0xb8] sm:$0xff] }
  0x16   : > { %v520_v25 = vld [vmem:[%s8430_s21 + $0xc0] sm:$0xff]  ;;  %v521_v26 = vld [vmem:[%s8430_s21 + $0xc8] sm:$0xff]  ;;  %v522_v27 = vld [vmem:[%s8430_s21 + $0xd0] sm:$0xff] }
  0x17   : > { %v523_v28 = vld [vmem:[%s8430_s21 + $0xd8] sm:$0xff]  ;;  %v524_v29 = vld [vmem:[%s8430_s21 + $0xe0] sm:$0xff]  ;;  %v525_v30 = vld [vmem:[%s8430_s21 + $0xe8] sm:$0xff] }
  0x18   : > { %7333 = vmatmul.mubr.msk.f32.gmra.mxu0 %vm625_vm1, %v501_v6  ;;  %v526_v31 = vld [vmem:[%s8430_s21 + $0xf0] sm:$0xff]  ;;  %v527_v32 = vld [vmem:[%s8430_s21 + $0xf8] sm:$0xff]  ;;  %v528_v33 = vld [vmem:[%s8430_s21 + $0x100] sm:$0xff] }
  0x19   : > { %7335 = vmatprep.mubr.msk.f32.mxu0 %vm625_vm1, %v502_v7  ;;  %v529_v34 = vld [vmem:[%s8430_s21 + $0x108] sm:$0xff]  ;;  %v530_v35 = vld [vmem:[%s8430_s21 + $0x110] sm:$0xff]  ;;  %v531_v36 = vld [vmem:[%s8430_s21 + $0x118] sm:$0xff] }
  0x1a   : > { %v532_v37 = vld [vmem:[%s8430_s21 + $0x120] sm:$0xff]  ;;  %v533_v38 = vld [vmem:[%s8430_s21 + $0x128] sm:$0xff]  ;;  %v534_v39 = vld [vmem:[%s8430_s21 + $0x130] sm:$0xff] }
  0x1b   : > { %v535_v40 = vld [vmem:[%s8430_s21 + $0x138] sm:$0xff]  ;;  %v536_v41 = vld [vmem:[%s8430_s21 + $0x140] sm:$0xff]  ;;  %v537_v42 = vld [vmem:[%s8430_s21 + $0x148] sm:$0xff] }
  0x1c   : > { %7336 = vmatmul.mubr.msk.f32.gmra.mxu0 %vm625_vm1, %v503_v8  ;;  %v538_v43 = vld [vmem:[%s8430_s21 + $0x150] sm:$0xff]  ;;  %v539_v44 = vld [vmem:[%s8430_s21 + $0x158] sm:$0xff]  ;;  %v540_v45 = vld [vmem:[%s8430_s21 + $0x160] sm:$0xff] }
  0x1d   : > { %7338 = vmatprep.mubr.msk.f32.mxu0 %vm625_vm1, %v504_v9  ;;  %v541_v46 = vld [vmem:[%s8430_s21 + $0x168] sm:$0xff]  ;;  %v542_v47 = vld [vmem:[%s8430_s21 + $0x170] sm:$0xff]  ;;  %v543_v48 = vld [vmem:[%s8430_s21 + $0x178] sm:$0xff] }
  0x1e   : > { %v544_v49 = vld [vmem:[%s8430_s21 + $0x180] sm:$0xff]  ;;  %v545_v50 = vld [vmem:[%s8430_s21 + $0x188] sm:$0xff]  ;;  %v546_v51 = vld [vmem:[%s8430_s21 + $0x190] sm:$0xff] }
  0x1f   : > { %v547_v52 = vld [vmem:[%s8430_s21 + $0x198] sm:$0xff]  ;;  %v548_v53 = vld [vmem:[%s8430_s21 + $0x1a0] sm:$0xff]  ;;  %v549_v54 = vld [vmem:[%s8430_s21 + $0x1a8] sm:$0xff] }
  0x20   : > { %7339 = vmatmul.mubr.msk.f32.gmra.mxu0 %vm625_vm1, %v505_v10  ;;  %v550_v55 = vld [vmem:[%s8430_s21 + $0x1b0] sm:$0xff]  ;;  %v551_v56 = vld [vmem:[%s8430_s21 + $0x1b8] sm:$0xff]  ;;  %v552_v57 = vld [vmem:[%s8430_s21 + $0x1c0] sm:$0xff] }
  0x21   : > { %7341 = vmatprep.mubr.msk.f32.mxu0 %vm625_vm1, %v506_v11  ;;  %v553_v58 = vld [vmem:[%s8430_s21 + $0x1c8] sm:$0xff]  ;;  %v554_v59 = vld [vmem:[%s8430_s21 + $0x1d0] sm:$0xff]  ;;  %v555_v60 = vld [vmem:[%s8430_s21 + $0x1d8] sm:$0xff] }
  0x22   : > { %v556_v61 = vld [vmem:[%s8430_s21 + $0x1e0] sm:$0xff]  ;;  %v557_v62 = vld [vmem:[%s8430_s21 + $0x1e8] sm:$0xff]  ;;  %v558_v63 = vld [vmem:[%s8430_s21 + $0x1f0] sm:$0xff] }
  0x23   : > { %v559_v0 = vld [vmem:[%s8430_s21 + $0x1f8] sm:$0xff]  ;;  %v560_v1 = vld [vmem:[%s8430_s21 + $0x200] sm:$0xff]  ;;  %v561_v2 = vld [vmem:[%s8430_s21 + $0x208] sm:$0xff] }
  0x24   : > { %7342 = vmatmul.mubr.msk.f32.gmra.mxu0 %vm625_vm1, %v507_v12  ;;  %v562_v3 = vld [vmem:[%s8430_s21 + $0x210] sm:$0xff]  ;;  %v563_v4 = vld [vmem:[%s8430_s21 + $0x218] sm:$0xff]  ;;  %v564_v5 = vld [vmem:[%s8430_s21 + $0x220] sm:$0xff] }
  0x25   : > { %7344 = vmatprep.mubr.msk.f32.mxu0 %vm625_vm1, %v508_v13  ;;  %v565_v6 = vld [vmem:[%s8430_s21 + $0x228] sm:$0xff]  ;;  %v566_v7 = vld [vmem:[%s8430_s21 + $0x230] sm:$0xff]  ;;  %v567_v8 = vld [vmem:[%s8430_s21 + $0x238] sm:$0xff] }
  0x26   : > { %v568_v9 = vld [vmem:[%s8430_s21 + $0x240] sm:$0xff]  ;;  %v569_v10 = vld [vmem:[%s8430_s21 + $0x248] sm:$0xff]  ;;  %v570_v11 = vld [vmem:[%s8430_s21 + $0x250] sm:$0xff] }
  0x27   : > { %v571_v12 = vld [vmem:[%s8430_s21 + $0x258] sm:$0xff]  ;;  %v572_v13 = vld [vmem:[%s8430_s21 + $0x260] sm:$0xff] }
  0x28   : > { %7345 = vmatmul.mubr.msk.f32.gmra.mxu0 %vm625_vm1, %v509_v14  ;;  %v573_v14 = vld [vmem:[%s8430_s21 + $0x268] sm:$0xff] }
  0x29   : > { %7347 = vmatprep.mubr.msk.f32.mxu0 %vm625_vm1, %v510_v15  ;;  %v574_v15 = vld [vmem:[%s8430_s21 + $0x270] sm:$0xff] }
  0x2c   : > { %7348 = vmatmul.mubr.msk.f32.gmra.mxu0 %vm625_vm1, %v511_v16  ;;  %v575_v16 = vld [vmem:[%s8430_s21 + $0x278] sm:$0xff] }
  0x2d   : > { %7350 = vmatprep.mubr.msk.f32.mxu0 %vm625_vm1, %v512_v17  ;;  %v576_v17 = vld [vmem:[%s8430_s21 + $0x280] sm:$0xff] }
  0x30   : > { %7351 = vmatmul.mubr.msk.f32.gmra.mxu0 %vm625_vm1, %v513_v18  ;;  %v577_v18 = vld [vmem:[%s8430_s21 + $0x288] sm:$0xff] }
  0x31   : > { %7353 = vmatprep.mubr.msk.f32.mxu0 %vm625_vm1, %v514_v19  ;;  %v578_v19 = vld [vmem:[%s8430_s21 + $0x290] sm:$0xff] }
  0x34   : > { %7354 = vmatmul.mubr.msk.f32.gmra.mxu0 %vm625_vm1, %v515_v20  ;;  %v579_v20 = vld [vmem:[%s8430_s21 + $0x298] sm:$0xff] }
  0x35   : > { %7356 = vmatprep.mubr.msk.f32.mxu0 %vm625_vm1, %v516_v21  ;;  %v580_v21 = vld [vmem:[%s8430_s21 + $0x2a0] sm:$0xff] }
  0x38   : > { %7357 = vmatmul.mubr.msk.f32.gmra.mxu0 %vm625_vm1, %v517_v22  ;;  %v581_v22 = vld [vmem:[%s8430_s21 + $0x2a8] sm:$0xff] }
  0x39   : > { %7359 = vmatprep.mubr.msk.f32.mxu0 %vm625_vm1, %v518_v23  ;;  %v582_v23 = vld [vmem:[%s8430_s21 + $0x2b0] sm:$0xff] }
  0x3c   : > { %7360 = vmatmul.mubr.msk.f32.gmra.mxu0 %vm625_vm1, %v519_v24  ;;  %v583_v24 = vld [vmem:[%s8430_s21 + $0x2b8] sm:$0xff] }
  0x3d   : > { %7362 = vmatprep.mubr.msk.f32.mxu0 %vm625_vm1, %v520_v25  ;;  %v584_v25 = vld [vmem:[%s8430_s21 + $0x2c0] sm:$0xff] }
  0x40   : > { %7363 = vmatmul.mubr.msk.f32.gmra.mxu0 %vm625_vm1, %v521_v26  ;;  %v585_v26 = vld [vmem:[%s8430_s21 + $0x2c8] sm:$0xff] }
  0x41   : > { %7365 = vmatprep.mubr.msk.f32.mxu0 %vm625_vm1, %v522_v27  ;;  %v586_v27 = vld [vmem:[%s8430_s21 + $0x2d0] sm:$0xff] }
  0x44   : > { %7366 = vmatmul.mubr.msk.f32.gmra.mxu0 %vm625_vm1, %v523_v28  ;;  %v587_v28 = vld [vmem:[%s8430_s21 + $0x2d8] sm:$0xff] }
  0x45   : > { %7368 = vmatprep.mubr.msk.f32.mxu0 %vm625_vm1, %v524_v29  ;;  %v588_v29 = vld [vmem:[%s8430_s21 + $0x2e0] sm:$0xff] }
  0x48   : > { %7369 = vmatmul.mubr.msk.f32.gmra.mxu0 %vm625_vm1, %v525_v30  ;;  %v589_v30 = vld [vmem:[%s8430_s21 + $0x2e8] sm:$0xff] }
  0x49   : > { %7371 = vmatprep.mubr.msk.f32.mxu0 %vm625_vm1, %v526_v31  ;;  %v590_v31 = vld [vmem:[%s8430_s21 + $0x2f0] sm:$0xff] }
  0x4c   : > { %7372 = vmatmul.mubr.msk.f32.gmra.mxu0 %vm625_vm1, %v527_v32  ;;  %v591_v32 = vld [vmem:[%s8430_s21 + $0x2f8] sm:$0xff] }
  0x4d   : > { %7374 = vmatprep.mubr.msk.f32.mxu0 %vm625_vm1, %v528_v33  ;;  %v592_v33 = vld [vmem:[%s8430_s21 + $0x300] sm:$0xff] }
  0x50   : > { %7375 = vmatmul.mubr.msk.f32.gmra.mxu0 %vm625_vm1, %v529_v34  ;;  %v593_v34 = vld [vmem:[%s8430_s21 + $0x308] sm:$0xff] }
  0x51   : > { %7377 = vmatprep.mubr.msk.f32.mxu0 %vm625_vm1, %v530_v35  ;;  %v594_v35 = vld [vmem:[%s8430_s21 + $0x310] sm:$0xff] }
  0x54   : > { %7378 = vmatmul.mubr.msk.f32.gmra.mxu0 %vm625_vm1, %v531_v36  ;;  %v8631_v36 = vld [vmem:[%s10469_s2] sm:$0xff] }
  0x55   : > { %7380 = vmatprep.mubr.msk.f32.mxu0 %vm625_vm1, %v532_v37  ;;  %v8636_v37 = vld [vmem:[%s10469_s2 + $0x20] sm:$0xff] }
  0x58   : > { %7381 = vmatmul.mubr.msk.f32.gmra.mxu0 %vm625_vm1, %v533_v38  ;;  %v6612_v38 = vcombine.high %v8631_v36, %v8636_v37 }
  0x59   : > { %7383 = vmatprep.mubr.msk.f32.mxu0 %vm625_vm1, %v534_v39 }
  0x5a   : > { %1998 = vmatprep.mubr.bf16.mxu1 %v6612_v38 }
  0x5c   : > { %7384 = vmatmul.mubr.msk.f32.gmra.mxu0 %vm625_vm1, %v535_v40  ;;  %v6611_v40 = vcombine.low %v8631_v36, %v8636_v37  ;;  %v1750_v37 = vld [vmem:[%s10469_s2 + $0xc0] sm:$0x11] }
  0x5d   : > { %7386 = vmatprep.mubr.msk.f32.mxu0 %vm625_vm1, %v536_v41  ;;  %v595_v41 = vld [vmem:[%s8430_s21 + $0x318] sm:$0xff] }
  0x60   : > { %7387 = vmatmul.mubr.msk.f32.gmra.mxu0 %vm625_vm1, %v537_v42 }
  0x61   : > { %7389 = vmatprep.mubr.msk.f32.mxu0 %vm625_vm1, %v538_v43  ;;  %v596_v43 = vld [vmem:[%s8430_s21 + $0x320] sm:$0xff] }
  0x64   : > { %7390 = vmatmul.mubr.msk.f32.gmra.mxu0 %vm625_vm1, %v539_v44 }
  0x65   : > { %7392 = vmatprep.mubr.msk.f32.mxu0 %vm625_vm1, %v540_v45 }
  0x68   : > { %7393 = vmatmul.mubr.msk.f32.gmra.mxu0 %vm625_vm1, %v541_v46  ;;  %v597_v46 = vld [vmem:[%s8430_s21 + $0x328] sm:$0xff] }
  0x69   : > { %7395 = vmatprep.mubr.msk.f32.mxu0 %vm625_vm1, %v542_v47 }
  0x6c   : > { %7396 = vmatmul.mubr.msk.f32.gmra.mxu0 %vm625_vm1, %v543_v48  ;;  %v598_v48 = vld [vmem:[%s8430_s21 + $0x330] sm:$0xff] }
  0x6d   : > { %7398 = vmatprep.mubr.msk.f32.mxu0 %vm625_vm1, %v544_v49 }
  0x70   : > { %7399 = vmatmul.mubr.msk.f32.gmra.mxu0 %vm625_vm1, %v545_v50 }
  0x71   : > { %7401 = vmatprep.mubr.msk.f32.mxu0 %vm625_vm1, %v546_v51  ;;  %v599_v51 = vld [vmem:[%s8430_s21 + $0x338] sm:$0xff] }
  0x74   : > { %7402 = vmatmul.mubr.msk.f32.gmra.mxu0 %vm625_vm1, %v547_v52 }
  0x75   : > { %7404 = vmatprep.mubr.msk.f32.mxu0 %vm625_vm1, %v548_v53  ;;  %v600_v53 = vld [vmem:[%s8430_s21 + $0x340] sm:$0xff] }
  0x78   : > { %7405 = vmatmul.mubr.msk.f32.gmra.mxu0 %vm625_vm1, %v549_v54 }
  0x79   : > { %7407 = vmatprep.mubr.msk.f32.mxu0 %vm625_vm1, %v550_v55 }
  0x7c   : > { %7408 = vmatmul.mubr.msk.f32.gmra.mxu0 %vm625_vm1, %v551_v56  ;;  %v601_v56 = vld [vmem:[%s8430_s21 + $0x348] sm:$0xff] }
  0x7d   : > { %7410 = vmatprep.mubr.msk.f32.mxu0 %vm625_vm1, %v552_v57 }
  0x80   : > { %7411 = vmatmul.mubr.msk.f32.gmra.mxu0 %vm625_vm1, %v553_v58  ;;  %v602_v58 = vld [vmem:[%s8430_s21 + $0x350] sm:$0xff] }
  0x81   : > { %7413 = vmatprep.mubr.msk.f32.mxu0 %vm625_vm1, %v554_v59 }
  0x84   : > { %7414 = vmatmul.mubr.msk.f32.gmra.mxu0 %vm625_vm1, %v555_v60 }
  0x85   : > { %7416 = vmatprep.mubr.msk.f32.mxu0 %vm625_vm1, %v556_v61  ;;  %v603_v61 = vld [vmem:[%s8430_s21 + $0x358] sm:$0xff] }
  0x88   : > { %7417 = vmatmul.mubr.msk.f32.gmra.mxu0 %vm625_vm1, %v557_v62 }
  0x89   : > { %7419 = vmatprep.mubr.msk.f32.mxu0 %vm625_vm1, %v558_v63  ;;  %v604_v63 = vld [vmem:[%s8430_s21 + $0x360] sm:$0xff] }
  0x8c   : > { %7420 = vmatmul.mubr.msk.f32.gmra.mxu0 %vm625_vm1, %v559_v0 }
  0x8d   : > { %7422 = vmatprep.mubr.msk.f32.mxu0 %vm625_vm1, %v560_v1  ;;  %v605_v1 = vld [vmem:[%s8430_s21 + $0x368] sm:$0xff] }
  0x90   : > { %7423 = vmatmul.mubr.msk.f32.gmra.mxu0 %vm625_vm1, %v561_v2 }
  0x91   : > { %7425 = vmatprep.mubr.msk.f32.mxu0 %vm625_vm1, %v562_v3  ;;  %v606_v3 = vld [vmem:[%s8430_s21 + $0x370] sm:$0xff] }
  0x94   : > { %7426 = vmatmul.mubr.msk.f32.gmra.mxu0 %vm625_vm1, %v563_v4 }
  0x95   : > { %7428 = vmatprep.mubr.msk.f32.mxu0 %vm625_vm1, %v564_v5  ;;  %v607_v5 = vld [vmem:[%s8430_s21 + $0x378] sm:$0xff] }
  0x98   : > { %7429 = vmatmul.mubr.msk.f32.gmra.mxu0 %vm625_vm1, %v565_v6 }
  0x99   : > { %7431 = vmatprep.mubr.msk.f32.mxu0 %vm625_vm1, %v566_v7  ;;  %v608_v7 = vld [vmem:[%s8430_s21 + $0x380] sm:$0xff] }
  0x9c   : > { %7432 = vmatmul.mubr.msk.f32.gmra.mxu0 %vm625_vm1, %v567_v8 }
  0x9d   : > { %7434 = vmatprep.mubr.msk.f32.mxu0 %vm625_vm1, %v568_v9  ;;  %v609_v9 = vld [vmem:[%s8430_s21 + $0x388] sm:$0xff] }
  0xa0   : > { %7435 = vmatmul.mubr.msk.f32.gmra.mxu0 %vm625_vm1, %v569_v10 }
  0xa1   : > { %7437 = vmatprep.mubr.msk.f32.mxu0 %vm625_vm1, %v570_v11  ;;  %v610_v11 = vld [vmem:[%s8430_s21 + $0x390] sm:$0xff] }
  0xa4   : > { %7438 = vmatmul.mubr.msk.f32.gmra.mxu0 %vm625_vm1, %v571_v12 }
  0xa5   : > { %7440 = vmatprep.mubr.msk.f32.mxu0 %vm625_vm1, %v572_v13  ;;  %v611_v13 = vld [vmem:[%s8430_s21 + $0x398] sm:$0xff] }
  0xa8   : > { %7441 = vmatmul.mubr.msk.f32.gmra.mxu0 %vm625_vm1, %v573_v14 }
  0xa9   : > { %7443 = vmatprep.mubr.msk.f32.mxu0 %vm625_vm1, %v574_v15  ;;  %v612_v15 = vld [vmem:[%s8430_s21 + $0x3a0] sm:$0xff] }
  0xac   : > { %7444 = vmatmul.mubr.msk.f32.gmra.mxu0 %vm625_vm1, %v575_v16 }
  0xad   : > { %7446 = vmatprep.mubr.msk.f32.mxu0 %vm625_vm1, %v576_v17  ;;  %v613_v17 = vld [vmem:[%s8430_s21 + $0x3a8] sm:$0xff] }
  0xb0   : > { %7447 = vmatmul.mubr.msk.f32.gmra.mxu0 %vm625_vm1, %v577_v18 }
  0xb1   : > { %7449 = vmatprep.mubr.msk.f32.mxu0 %vm625_vm1, %v578_v19  ;;  %v614_v19 = vld [vmem:[%s8430_s21 + $0x3b0] sm:$0xff] }
  0xb4   : > { %7450 = vmatmul.mubr.msk.f32.gmra.mxu0 %vm625_vm1, %v579_v20 }
  0xb5   : > { %7452 = vmatprep.mubr.msk.f32.mxu0 %vm625_vm1, %v580_v21  ;;  %v615_v21 = vld [vmem:[%s8430_s21 + $0x3b8] sm:$0xff] }
  0xb8   : > { %7453 = vmatmul.mubr.msk.f32.gmra.mxu0 %vm625_vm1, %v581_v22 }
  0xb9   : > { %7455 = vmatprep.mubr.msk.f32.mxu0 %vm625_vm1, %v582_v23  ;;  %v616_v23 = vld [vmem:[%s8430_s21 + $0x3c0] sm:$0xff] }
  0xbc   : > { %7456 = vmatmul.mubr.msk.f32.gmra.mxu0 %vm625_vm1, %v583_v24 }
  0xbd   : > { %7458 = vmatprep.mubr.msk.f32.mxu0 %vm625_vm1, %v584_v25  ;;  %v617_v25 = vld [vmem:[%s8430_s21 + $0x3c8] sm:$0xff] }
  0xc0   : > { %7459 = vmatmul.mubr.msk.f32.gmra.mxu0 %vm625_vm1, %v585_v26 }
  0xc1   : > { %7461 = vmatprep.mubr.msk.f32.mxu0 %vm625_vm1, %v586_v27  ;;  %v618_v27 = vld [vmem:[%s8430_s21 + $0x3d0] sm:$0xff] }
  0xc4   : > { %7462 = vmatmul.mubr.msk.f32.gmra.mxu0 %vm625_vm1, %v587_v28 }
  0xc5   : > { %7464 = vmatprep.mubr.msk.f32.mxu0 %vm625_vm1, %v588_v29  ;;  %v619_v29 = vld [vmem:[%s8430_s21 + $0x3d8] sm:$0xff] }
  0xc8   : > { %7465 = vmatmul.mubr.msk.f32.gmra.mxu0 %vm625_vm1, %v589_v30 }
  0xc9   : > { %7467 = vmatprep.mubr.msk.f32.mxu0 %vm625_vm1, %v590_v31  ;;  %v620_v31 = vld [vmem:[%s8430_s21 + $0x3e0] sm:$0xff] }
  0xcc   : > { %7468 = vmatmul.mubr.msk.f32.gmra.mxu0 %vm625_vm1, %v591_v32 }
  0xcd   : > { %7470 = vmatprep.mubr.msk.f32.mxu0 %vm625_vm1, %v592_v33  ;;  %v621_v33 = vld [vmem:[%s8430_s21 + $0x3e8] sm:$0xff] }
  0xd0   : > { %v8640_v39 = vpop.f32.mrf.mxu0  ;;  %7471 = vmatmul.mubr.msk.f32.gmra.mxu0 %vm625_vm1, %v593_v34 }
  0xd1   : > { %7473 = vmatprep.mubr.msk.f32.mxu0 %vm625_vm1, %v594_v35  ;;  %v622_v35 = vld [vmem:[%s8430_s21 + $0x3f0] sm:$0xff] }
  0xd2   : > { %v8647_v42 = vpop.f32.mrf.mxu0 }
  0xd3   : > { %v1754_v44 = vpack.c.bf16 %v8640_v39, %v8647_v42 }
  0xd4   : > { %v8652_v45 = vpop.f32.mrf.mxu0  ;;  %7474 = vmatmul.mubr.msk.f32.gmra.mxu0 %vm625_vm1, %v595_v41  ;;  %v623_v41 = vld [vmem:[%s8430_s21 + $0x3f8] sm:$0xff]  ;;  %s8324_s21 = smov 64  }
  0xd5   : > { %7476 = vmatprep.mubr.msk.f32.mxu0 %vm625_vm1, %v596_v43 }
  0xd6   : > { %v8657_v47 = vpop.f32.mrf.mxu0 }
  0xd7   : > { %v1755_v49 = vpack.c.bf16 %v8652_v45, %v8657_v47  ;;  %v1742_v47 = vld [vmem:[%s10469_s2 + $0x80] sm:$0xff] }
  0xd8   : > { %v8662_v50 = vpop.f32.mrf.mxu0  ;;  %7477 = vmatmul.mubr.msk.f32.gmra.mxu0 %vm625_vm1, %v597_v46 }
  0xd9   : > { %7479 = vmatprep.mubr.msk.f32.mxu0 %vm625_vm1, %v598_v48 }
  0xda   : > { %v8667_v52 = vpop.f32.mrf.mxu0 }
  0xdb   : > { %v1756_v54 = vpack.c.bf16 %v8662_v50, %v8667_v52  ;;  %v1738_v50 = vld [vmem:[%s10469_s2 + $0x60] sm:$0xff] }
  0xdc   : > { %v8672_v55 = vpop.f32.mrf.mxu0  ;;  %7480 = vmatmul.mubr.msk.f32.gmra.mxu0 %vm625_vm1, %v599_v51 }
  0xdd   : > { %7482 = vmatprep.mubr.msk.f32.mxu0 %vm625_vm1, %v600_v53 }
  0xde   : > { %v8677_v57 = vpop.f32.mrf.mxu0 }
  0xdf   : > { %v1757_v59 = vpack.c.bf16 %v8672_v55, %v8677_v57  ;;  %v1734_v55 = vld [vmem:[%s10469_s2 + $0x40] sm:$0xff] }
  0xe0   : > { %v8682_v60 = vpop.f32.mrf.mxu0  ;;  %7483 = vmatmul.mubr.msk.f32.gmra.mxu0 %vm625_vm1, %v601_v56  ;;  %v6620_v57 = vcombine.high %v1734_v55, %v1738_v50  ;;  %v6619_v42 = vcombine.low %v1734_v55, %v1738_v50 }
  0xe1   : > { %7485 = vmatprep.mubr.msk.f32.mxu0 %vm625_vm1, %v602_v58 }
  0xe2   : > { %v8687_v62 = vpop.f32.mrf.mxu0 }
  0xe4   : > { %v8690_v0 = vpop.f32.mrf.mxu0  ;;  %7486 = vmatmul.mubr.msk.f32.gmra.mxu0 %vm625_vm1, %v603_v61 }
  0xe5   : > { %7488 = vmatprep.mubr.msk.f32.mxu0 %vm625_vm1, %v604_v63 }
  0xe6   : > { %v8695_v2 = vpop.f32.mrf.mxu0 }
  0xe8   : > { %v8698_v4 = vpop.f32.mrf.mxu0  ;;  %7489 = vmatmul.mubr.msk.f32.gmra.mxu0 %vm625_vm1, %v605_v1 }
  0xe9   : > { %7491 = vmatprep.mubr.msk.f32.mxu0 %vm625_vm1, %v606_v3 }
  0xea   : > { %v8703_v6 = vpop.f32.mrf.mxu0 }
  0xeb   : > { %v1760_v63 = vpack.c.bf16 %v8698_v4, %v8703_v6  ;;  %v1758_v4 = vpack.c.bf16 %v8682_v60, %v8687_v62 }
  0xec   : > { %v7349_v8 = vpop.f32.mrf.mxu0  ;;  %7492 = vmatmul.mubr.msk.f32.gmra.mxu0 %vm625_vm1, %v607_v5 }
  0xed   : > { %7494 = vmatprep.mubr.msk.f32.mxu0 %vm625_vm1, %v608_v7 }
  0xee   : > { %v1150_v10 = vpop.f32.mrf.mxu0 }
  0xef   : > { %v1761_v56 = vpack.c.bf16 %v7349_v8, %v1150_v10  ;;  %v1759_v8 = vpack.c.bf16 %v8690_v0, %v8695_v2 }
  0xf0   : > { %v8710_v12 = vpop.f32.mrf.mxu0  ;;  %7495 = vmatmul.mubr.msk.f32.gmra.mxu0 %vm625_vm1, %v609_v9 }
  0xf1   : > { %7497 = vmatprep.mubr.msk.f32.mxu0 %vm625_vm1, %v610_v11 }
  0xf2   : > { %v8715_v14 = vpop.f32.mrf.mxu0 }
  0xf4   : > { %v8718_v16 = vpop.f32.mrf.mxu0  ;;  %7498 = vmatmul.mubr.msk.f32.gmra.mxu0 %vm625_vm1, %v611_v13 }
  0xf5   : > { %7500 = vmatprep.mubr.msk.f32.mxu0 %vm625_vm1, %v612_v15 }
  0xf6   : > { %v8723_v18 = vpop.f32.mrf.mxu0 }
  0xf7   : > { %v1763_v60 = vpack.c.bf16 %v8718_v16, %v8723_v18 }
  0xf8   : > { %v8726_v20 = vpop.f32.mrf.mxu0  ;;  %7501 = vmatmul.mubr.msk.f32.gmra.mxu0 %vm625_vm1, %v613_v17 }
  0xf9   : > { %7503 = vmatprep.mubr.msk.f32.mxu0 %vm625_vm1, %v614_v19 }
  0xfa   : > { %v1180_v22 = vpop.f32.mrf.mxu0 }
  0xfb   : > { %v1764_v0 = vpack.c.bf16 %v8726_v20, %v1180_v22 }
  0xfc   : > { %v7361_v24 = vpop.f32.mrf.mxu0  ;;  %7504 = vmatmul.mubr.msk.f32.gmra.mxu0 %vm625_vm1, %v615_v21  ;;  %v1762_v21 = vpack.c.bf16 %v8710_v12, %v8715_v14 }
  0xfd   : > { %7506 = vmatprep.mubr.msk.f32.mxu0 %vm625_vm1, %v616_v23  ;;  %v6636_v23 = vcombine.high %v1750_v37, %v1750_v37 }
  0xfe   : > { %v1190_v26 = vpop.f32.mrf.mxu0 }
  0xff   : > { %v1765_v13 = vpack.c.bf16 %v7361_v24, %v1190_v26  ;;  %v8826_v26 = vld [vmem:[%s10469_s2 + $0x8] sm:$0xff] }
 0x100   : > { %v7364_v28 = vpop.f32.mrf.mxu0  ;;  %7507 = vmatmul.mubr.msk.f32.gmra.mxu0 %vm625_vm1, %v617_v25 }
 0x101   : > { %7509 = vmatprep.mubr.msk.f32.mxu0 %vm625_vm1, %v618_v27  ;;  %v8831_v27 = vld [vmem:[%s10469_s2 + $0x28] sm:$0xff] }
 0x102   : > { %v1200_v30 = vpop.f32.mrf.mxu0 }
 0x103   : > { %v1766_v10 = vpack.c.bf16 %v7364_v28, %v1200_v30 }
 0x104   : > { %v7367_v32 = vpop.f32.mrf.mxu0  ;;  %7510 = vmatmul.mubr.msk.f32.gmra.mxu0 %vm625_vm1, %v619_v29  ;;  %v6635_v29 = vcombine.low %v1750_v37, %v1750_v37  ;;  %v1751_v37 = vld [vmem:[%s10469_s2 + $0xc8] sm:$0x11] }
 0x105   : > { %7512 = vmatprep.mubr.msk.f32.mxu0 %vm625_vm1, %v620_v31  ;;  %v6614_v31 = vcombine.high %v8826_v26, %v8831_v27 }
 0x106   : > { %v1210_v34 = vpop.f32.mrf.mxu0 }
 0x107   : > { %v1767_v3 = vpack.c.bf16 %v7367_v32, %v1210_v34 }
 0x108   : > { %v7370_v38 = vpop.f32.mrf.mxu0  ;;  %7513 = vmatmul.mubr.msk.f32.gmra.mxu0 %vm625_vm1, %v621_v33 }
 0x109   : > { %7515 = vmatprep.mubr.msk.f32.mxu0 %vm625_vm1, %v622_v35 }
 0x10a   : > { %v1220_v43 = vpop.f32.mrf.mxu0 }
 0x10b   : > { %v1768_v58 = vpack.c.bf16 %v7370_v38, %v1220_v43 }
 0x10c   : > { %v7373_v46 = vpop.f32.mrf.mxu0  ;;  %7516 = vmatmul.mubr.msk.f32.gmra.mxu0 %vm625_vm1, %v623_v41  ;;  %vm6374_vm1 = vcmask 122880  }
 0x10e   : > { %v1230_v48 = vpop.f32.mrf.mxu0 }
 0x10f   : > { %v1769_v51 = vpack.c.bf16 %v7373_v46, %v1230_v48 }
 0x110   : > { %v8748_v53 = vpop.f32.mrf.mxu0 }
 0x111   : > { %6956 = vmatprep.subr.bf16.mxu1 %v1769_v51 }
 0x112   : > { %v8750_v61 = vpop.f32.mrf.mxu0  ;;  %6957 = vmatpush3.bf16.msra.mxu1 %v1761_v56 }
 0x113   : > { %6958 = vmatprep.subr.bf16.mxu1 %v1768_v58 }
 0x114   : > { %v8754_v1 = vpop.f32.mrf.mxu0 }
 0x116   : > { %v8756_v5 = vpop.f32.mrf.mxu0  ;;  %6959 = vmatpush3.bf16.msra.mxu1 %v1760_v63 }
 0x117   : > { %v1771_v7 = vpack.c.bf16 %v8754_v1, %v8756_v5  ;;  %6960 = vmatprep.subr.bf16.mxu1 %v1767_v3 }
 0x118   : > { %v8762_v9 = vpop.f32.mrf.mxu0 }
 0x11a   : > { %v8764_v11 = vpop.f32.mrf.mxu0  ;;  %6961 = vmatpush3.bf16.msra.mxu1 %v1759_v8 }
 0x11b   : > { %6962 = vmatprep.subr.bf16.mxu1 %v1766_v10 }
 0x11c   : > { %v8768_v6 = vpop.f32.mrf.mxu0 }
 0x11e   : > { %v8770_v15 = vpop.f32.mrf.mxu0  ;;  %6963 = vmatpush3.bf16.msra.mxu1 %v1758_v4 }
 0x11f   : > { %6964 = vmatprep.subr.bf16.mxu1 %v1765_v13 }
 0x120   : > { %v8772_v17 = vpop.f32.mrf.mxu0 }
 0x122   : > { %v8775_v2 = vpop.f32.mrf.mxu0  ;;  %6965 = vmatpush3.bf16.msra.mxu1 %v1757_v59 }
 0x123   : > { %6966 = vmatprep.subr.bf16.mxu1 %v1764_v0  ;;  %v1774_v0 = vpack.c.bf16 %v8772_v17, %v8775_v2  ;;  %v1772_v17 = vpack.c.bf16 %v8762_v9, %v8764_v11  ;;  %v1735_v9 = vld [vmem:[%s10469_s2 + $0x48] sm:$0xff] }
 0x124   : > { %v8780_v19 = vpop.f32.mrf.mxu0  ;;  %v1739_v11 = vld [vmem:[%s10469_s2 + $0x68] sm:$0xff] }
 0x125   : > { %v6622_v1 = vcombine.high %v1735_v9, %v1739_v11 }
 0x126   : > { %v8784_v62 = vpop.f32.mrf.mxu0  ;;  %6967 = vmatpush3.bf16.msra.mxu1 %v1756_v54 }
 0x127   : > { %6968 = vmatprep.subr.bf16.mxu1 %v1763_v60  ;;  %v1775_v8 = vpack.c.bf16 %v8780_v19, %v8784_v62  ;;  %v1773_v19 = vpack.c.bf16 %v8768_v6, %v8770_v15 }
 0x128   : > { %v7394_v20 = vpop.f32.mrf.mxu0 }
 0x12a   : > { %v1300_v22 = vpop.f32.mrf.mxu0  ;;  %6969 = vmatpush3.bf16.msra.mxu1 %v1755_v49  ;;  %v1746_v49 = vld [vmem:[%s10469_s2 + $0xa0] sm:$0xff] }
 0x12b   : > { %6970 = vmatprep.subr.bf16.mxu1 %v1762_v21  ;;  %v6628_v12 = vcombine.high %v1742_v47, %v1746_v49  ;;  %v6627_v16 = vcombine.low %v1742_v47, %v1746_v49  ;;  %v1776_v51 = vpack.c.bf16 %v7394_v20, %v1300_v22  ;;  %v1770_v47 = vpack.c.bf16 %v8748_v53, %v8750_v61  ;;  %v1747_v53 = vld [vmem:[%s10469_s2 + $0xa8] sm:$0xff] }
 0x12c   : > { %v7397_v52 = vpop.f32.mrf.mxu0 }
 0x12e   : > { %v1310_v54 = vpop.f32.mrf.mxu0  ;;  %6971 = vmatpush3.bf16.msra.mxu1 %v1754_v44 }
 0x12f   : > { %v1777_v41 = vpack.c.bf16 %v7397_v52, %v1310_v54 }
 0x130   : > { %v8803_v59 = vpop.f32.mrf.mxu0 }
 0x131   : > { %1999 = vmatmul.mubr.bf16.vlgmr.msra.gmra.mxu1 %v6611_v40 }
 0x132   : > { %v8808_v45 = vpop.f32.mrf.mxu0  ;;  %2006 = vmatprep.mubr.bf16.mxu1 %v6620_v57 }
 0x133   : > { %v1778_v15 = vpack.c.bf16 %v8803_v59, %v8808_v45  ;;  %v6613_v59 = vcombine.low %v8826_v26, %v8831_v27  ;;  %v8908_v26 = vld [vmem:[%s10469_s2 + $0x10] sm:$0xff] }
 0x134   : > { %v8816_v39 = vpop.f32.mrf.mxu0  ;;  %v8913_v27 = vld [vmem:[%s10469_s2 + $0x30] sm:$0xff] }
 0x136   : > { %v8818_v44 = vpop.f32.mrf.mxu0 }
 0x137   : > { %v1779_v52 = vpack.c.bf16 %v8816_v39, %v8818_v44  ;;  %v1743_v39 = vld [vmem:[%s10469_s2 + $0x88] sm:$0xff] }
 0x138   : > { %v7406_v14 = vpop.f32.mrf.mxu0 }
 0x139   : > { %2007 = vmatmul.mubr.bf16.gmra.mxu1 %v6619_v42  ;;  %v6621_v42 = vcombine.low %v1735_v9, %v1739_v11 }
 0x13a   : > { %v1340_v36 = vpop.f32.mrf.mxu0  ;;  %2014 = vmatprep.mubr.bf16.mxu1 %v6628_v12  ;;  %v6630_v12 = vcombine.high %v1743_v39, %v1747_v53 }
 0x13b   : > { %v1780_v55 = vpack.c.bf16 %v7406_v14, %v1340_v36 }
 0x13c   : > { %v7409_v40 = vpop.f32.mrf.mxu0 }
 0x13e   : > { %v1350_v18 = vpop.f32.mrf.mxu0 }
 0x13f   : > { %v1781_v20 = vpack.c.bf16 %v7409_v40, %v1350_v18 }
 0x140   : > { %v7412_v24 = vpop.f32.mrf.mxu0 }
 0x141   : > { %2015 = vmatmul.mubr.bf16.gmra.mxu1 %v6627_v16  ;;  %v6629_v16 = vcombine.low %v1743_v39, %v1747_v53 }
 0x142   : > { %v1360_v25 = vpop.f32.mrf.mxu0  ;;  %2022 = vmatprep.mubr.bf16.mxu1 %v6636_v23  ;;  %v6638_v23 = vcombine.high %v1751_v37, %v1751_v37 }
 0x143   : > { %v1782_v4 = vpack.c.bf16 %v7412_v24, %v1360_v25 }
 0x144   : > { %v7415_v28 = vpop.f32.mrf.mxu0 }
 0x146   : > { %v1370_v30 = vpop.f32.mrf.mxu0 }
 0x147   : > { %v1783_v58 = vpack.c.bf16 %v7415_v28, %v1370_v30 }
 0x148   : > { %v7418_v32 = vpop.f32.mrf.mxu0 }
 0x149   : > { %2023 = vmatmul.mubr.bf16.gmra.mxu1 %v6635_v29  ;;  %v6637_v29 = vcombine.low %v1751_v37, %v1751_v37 }
 0x14a   : > { %v1380_v33 = vpop.f32.mrf.mxu0  ;;  %2062 = vmatprep.mubr.bf16.mxu1 %v6614_v31  ;;  %v6616_v31 = vcombine.high %v8908_v26, %v8913_v27 }
 0x14b   : > { %v1784_v46 = vpack.c.bf16 %v7418_v32, %v1380_v33 }
 0x14c   : > { %v7421_v34 = vpop.f32.mrf.mxu0 }
 0x14e   : > { %v1390_v35 = vpop.f32.mrf.mxu0 }
 0x14f   : > { %v1785_v38 = vpack.c.bf16 %v7421_v34, %v1390_v35 }
 0x150   : > { %v8835_v43 = vpop.f32.mrf.mxu0 }
 0x151   : > { %6996 = vmatprep.subr.bf16.mxu1 %v1785_v38 }
 0x152   : > { %v8837_v48 = vpop.f32.mrf.mxu0  ;;  %6997 = vmatpush3.bf16.msra.mxu1 %v1777_v41 }
 0x153   : > { %6998 = vmatprep.subr.bf16.mxu1 %v1784_v46 }
 0x154   : > { %v8839_v56 = vpop.f32.mrf.mxu0 }
 0x156   : > { %v8841_v63 = vpop.f32.mrf.mxu0  ;;  %6999 = vmatpush3.bf16.msra.mxu1 %v1776_v51 }
 0x157   : > { %v1787_v3 = vpack.c.bf16 %v8839_v56, %v8841_v63  ;;  %7000 = vmatprep.subr.bf16.mxu1 %v1783_v58 }
 0x158   : > { %v8847_v10 = vpop.f32.mrf.mxu0 }
 0x15a   : > { %v8849_v13 = vpop.f32.mrf.mxu0  ;;  %7001 = vmatpush3.bf16.msra.mxu1 %v1775_v8 }
 0x15b   : > { %7002 = vmatprep.subr.bf16.mxu1 %v1782_v4 }
 0x15c   : > { %v8853_v60 = vpop.f32.mrf.mxu0 }
 0x15e   : > { %v8855_v21 = vpop.f32.mrf.mxu0  ;;  %7003 = vmatpush3.bf16.msra.mxu1 %v1774_v0 }
 0x15f   : > { %v1789_v22 = vpack.c.bf16 %v8853_v60, %v8855_v21  ;;  %7004 = vmatprep.subr.bf16.mxu1 %v1781_v20  ;;  %v1786_v60 = vpack.c.bf16 %v8835_v43, %v8837_v48  ;;  %v1748_v43 = vld [vmem:[%s10469_s2 + $0xb0] sm:$0xff] }
 0x160   : > { %v8861_v62 = vpop.f32.mrf.mxu0 }
 0x162   : > { %v8863_v50 = vpop.f32.mrf.mxu0  ;;  %7005 = vmatpush3.bf16.msra.mxu1 %v1773_v19 }
 0x163   : > { %7006 = vmatprep.subr.bf16.mxu1 %v1780_v55 }
 0x164   : > { %v8867_v2 = vpop.f32.mrf.mxu0 }
 0x166   : > { %v8871_v54 = vpop.f32.mrf.mxu0  ;;  %7007 = vmatpush3.bf16.msra.mxu1 %v1772_v17 }
 0x167   : > { %7008 = vmatprep.subr.bf16.mxu1 %v1779_v52  ;;  %v1791_v55 = vpack.c.bf16 %v8867_v2, %v8871_v54 }
 0x168   : > { %v7442_v6 = vpop.f32.mrf.mxu0 }
 0x16a   : > { %v1460_v57 = vpop.f32.mrf.mxu0  ;;  %7009 = vmatpush3.bf16.msra.mxu1 %v1771_v7 }
 0x16b   : > { %7010 = vmatprep.subr.bf16.mxu1 %v1778_v15  ;;  %v1792_v4 = vpack.c.bf16 %v7442_v6, %v1460_v57  ;;  %v1790_v6 = vpack.c.bf16 %v8861_v62, %v8863_v50  ;;  %v1788_v62 = vpack.c.bf16 %v8847_v10, %v8849_v13  ;;  %v1736_v10 = vld [vmem:[%s10469_s2 + $0x50] sm:$0xff] }
 0x16c   : > { %v7445_v49 = vpop.f32.mrf.mxu0  ;;  %v1740_v13 = vld [vmem:[%s10469_s2 + $0x70] sm:$0xff] }
 0x16d   : > { %v6624_v56 = vcombine.high %v1736_v10, %v1740_v13 }
 0x16e   : > { %v1470_v45 = vpop.f32.mrf.mxu0  ;;  %7011 = vmatpush3.bf16.msra.mxu1 %v1770_v47 }
 0x16f   : > { %v1793_v41 = vpack.c.bf16 %v7445_v49, %v1470_v45 }
 0x170   : > { %v8888_v5 = vpop.f32.mrf.mxu0 }
 0x171   : > { %2063 = vmatmul.mubr.bf16.vlgmr.msra.gmra.mxu1 %v6613_v59 }
 0x172   : > { %v8890_v7 = vpop.f32.mrf.mxu0  ;;  %2070 = vmatprep.mubr.bf16.mxu1 %v6622_v1 }
 0x173   : > { %v1794_v39 = vpack.c.bf16 %v8888_v5, %v8890_v7  ;;  %v1744_v7 = vld [vmem:[%s10469_s2 + $0x90] sm:$0xff] }
 0x174   : > { %v8898_v61 = vpop.f32.mrf.mxu0 }
 0x176   : > { %v8900_v44 = vpop.f32.mrf.mxu0 }
 0x177   : > { %v1795_v59 = vpack.c.bf16 %v8898_v61, %v8900_v44  ;;  %v6623_v61 = vcombine.low %v1736_v10, %v1740_v13  ;;  %v6632_v44 = vcombine.high %v1744_v7, %v1748_v43 }
 0x178   : > { %v7454_v14 = vpop.f32.mrf.mxu0 }
 0x179   : > { %2071 = vmatmul.mubr.bf16.gmra.mxu1 %v6621_v42 }
 0x17a   : > { %v1500_v36 = vpop.f32.mrf.mxu0  ;;  %2078 = vmatprep.mubr.bf16.mxu1 %v6630_v12 }
 0x17b   : > { %v1796_v54 = vpack.c.bf16 %v7454_v14, %v1500_v36  ;;  %v1752_v36 = vld [vmem:[%s10469_s2 + $0xd0] sm:$0x11] }
 0x17c   : > { %v7457_v40 = vpop.f32.mrf.mxu0 }
 0x17e   : > { %v1510_v18 = vpop.f32.mrf.mxu0 }
 0x17f   : > { %v1797_v9 = vpack.c.bf16 %v7457_v40, %v1510_v18  ;;  %v6631_v40 = vcombine.low %v1744_v7, %v1748_v43  ;;  %v6640_v18 = vcombine.high %v1752_v36, %v1752_v36 }
 0x180   : > { %v7460_v24 = vpop.f32.mrf.mxu0 }
 0x181   : > { %2079 = vmatmul.mubr.bf16.gmra.mxu1 %v6629_v16 }
 0x182   : > { %v1520_v25 = vpop.f32.mrf.mxu0  ;;  %2086 = vmatprep.mubr.bf16.mxu1 %v6638_v23 }
 0x183   : > { %v1798_v52 = vpack.c.bf16 %v7460_v24, %v1520_v25  ;;  %v1729_v25 = vld [vmem:[%s10469_s2 + $0x18] sm:$0xff] }
 0x184   : > { %v7463_v28 = vpop.f32.mrf.mxu0 }
 0x186   : > { %v1530_v30 = vpop.f32.mrf.mxu0 }
 0x187   : > { %v1799_v20 = vpack.c.bf16 %v7463_v28, %v1530_v30  ;;  %v6639_v28 = vcombine.low %v1752_v36, %v1752_v36 }
 0x188   : > { %v7466_v32 = vpop.f32.mrf.mxu0 }
 0x189   : > { %2087 = vmatmul.mubr.bf16.gmra.mxu1 %v6637_v29 }
 0x18a   : > { %v1540_v33 = vpop.f32.mrf.mxu0  ;;  %2126 = vmatprep.mubr.bf16.mxu1 %v6616_v31 }
 0x18b   : > { %v1800_v51 = vpack.c.bf16 %v7466_v32, %v1540_v33 }
 0x18c   : > { %v7469_v34 = vpop.f32.mrf.mxu0 }
 0x18e   : > { %v1550_v35 = vpop.f32.mrf.mxu0 }
 0x18f   : > { %v1801_v38 = vpack.c.bf16 %v7469_v34, %v1550_v35 }
 0x190   : > { %v8917_v46 = vpop.f32.mrf.mxu0 }
 0x191   : > { %7036 = vmatprep.subr.bf16.mxu1 %v1801_v38 }
 0x192   : > { %v8919_v58 = vpop.f32.mrf.mxu0  ;;  %7037 = vmatpush3.bf16.msra.mxu1 %v1793_v41 }
 0x193   : > { %v1802_v8 = vpack.c.bf16 %v8917_v46, %v8919_v58  ;;  %7038 = vmatprep.subr.bf16.mxu1 %v1800_v51  ;;  %v1753_v58 = vld [vmem:[%s10469_s2 + $0xd8] sm:$0x11] }
 0x194   : > { %v8923_v0 = vpop.f32.mrf.mxu0 }
 0x196   : > { %v8925_v19 = vpop.f32.mrf.mxu0  ;;  %7039 = vmatpush3.bf16.msra.mxu1 %v1792_v4 }
 0x197   : > { %7040 = vmatprep.subr.bf16.mxu1 %v1799_v20 }
 0x198   : > { %v8929_v17 = vpop.f32.mrf.mxu0 }
 0x19a   : > { %v8931_v15 = vpop.f32.mrf.mxu0  ;;  %7041 = vmatpush3.bf16.msra.mxu1 %v1791_v55 }
 0x19b   : > { %7042 = vmatprep.subr.bf16.mxu1 %v1798_v52 }
 0x19c   : > { %v8935_v57 = vpop.f32.mrf.mxu0 }
 0x19e   : > { %v8937_v11 = vpop.f32.mrf.mxu0  ;;  %7043 = vmatpush3.bf16.msra.mxu1 %v1790_v6 }
 0x19f   : > { %v1805_v47 = vpack.c.bf16 %v8935_v57, %v8937_v11  ;;  %7044 = vmatprep.subr.bf16.mxu1 %v1797_v9  ;;  %v1741_v57 = vld [vmem:[%s10469_s2 + $0x78] sm:$0xff] }
 0x1a0   : > { %v8941_v2 = vpop.f32.mrf.mxu0 }
 0x1a2   : > { %v8943_v49 = vpop.f32.mrf.mxu0  ;;  %7045 = vmatpush3.bf16.msra.mxu1 %v1789_v22  ;;  %v6615_v22 = vcombine.low %v8908_v26, %v8913_v27  ;;  %v1733_v26 = vld [vmem:[%s10469_s2 + $0x38] sm:$0xff] }
 0x1a3   : > { %7046 = vmatprep.subr.bf16.mxu1 %v1796_v54  ;;  %v6618_v30 = vcombine.high %v1729_v25, %v1733_v26  ;;  %v1806_v52 = vpack.c.bf16 %v8941_v2, %v8943_v49  ;;  %v1804_v54 = vpack.c.bf16 %v8929_v17, %v8931_v15  ;;  %v1737_v49 = vld [vmem:[%s10469_s2 + $0x58] sm:$0xff]  ;;  %v6617_v11 = vcombine.low %v1729_v25, %v1733_v26 }
 0x1a4   : > { %v8950_v50 = vpop.f32.mrf.mxu0  ;;  %v6626_v17 = vcombine.high %v1737_v49, %v1741_v57  ;;  %v1749_v15 = vld [vmem:[%s10469_s2 + $0xb8] sm:$0xff] }
 0x1a6   : > { %v8954_v45 = vpop.f32.mrf.mxu0  ;;  %7047 = vmatpush3.bf16.msra.mxu1 %v1788_v62 }
 0x1a7   : > { %7048 = vmatprep.subr.bf16.mxu1 %v1795_v59  ;;  %v1807_v20 = vpack.c.bf16 %v8950_v50, %v8954_v45  ;;  %v1803_v50 = vpack.c.bf16 %v8923_v0, %v8925_v19  ;;  %v1745_v19 = vld [vmem:[%s10469_s2 + $0x98] sm:$0xff]  ;;  %v6625_v59 = vcombine.low %v1737_v49, %v1741_v57 }
 0x1a8   : > { %v7490_v1 = vpop.f32.mrf.mxu0  ;;  %v6633_v10 = vcombine.low %v1745_v19, %v1749_v15 }
 0x1aa   : > { %v1620_v53 = vpop.f32.mrf.mxu0  ;;  %7049 = vmatpush3.bf16.msra.mxu1 %v1787_v3 }
 0x1ab   : > { %7050 = vmatprep.subr.bf16.mxu1 %v1794_v39  ;;  %v1808_v51 = vpack.c.bf16 %v7490_v1, %v1620_v53  ;;  %v6634_v1 = vcombine.high %v1745_v19, %v1749_v15 }
 0x1ac   : > { %v7493_v21 = vpop.f32.mrf.mxu0 }
 0x1ae   : > { %v1630_v5 = vpop.f32.mrf.mxu0  ;;  %7051 = vmatpush3.bf16.msra.mxu1 %v1786_v60  ;;  %v6642_v60 = vcombine.high %v1753_v58, %v1753_v58 }
 0x1af   : > { %v1809_v38 = vpack.c.bf16 %v7493_v21, %v1630_v5 }
 0x1b0   : > { %v8971_v63 = vpop.f32.mrf.mxu0 }
 0x1b1   : > { %2127 = vmatmul.mubr.bf16.vlgmr.msra.gmra.mxu1 %v6615_v22 }
 0x1b2   : > { %v1640_v3 = vpop.f32.mrf.mxu0  ;;  %2134 = vmatprep.mubr.bf16.mxu1 %v6624_v56 }
 0x1b3   : > { %v1810_v2 = vpack.c.bf16 %v8971_v63, %v1640_v3  ;;  %v6641_v63 = vcombine.low %v1753_v58, %v1753_v58 }
 0x1b4   : > { %v7499_v48 = vpop.f32.mrf.mxu0 }
 0x1b6   : > { %v1650_v42 = vpop.f32.mrf.mxu0 }
 0x1b7   : > { %v1811_v62 = vpack.c.bf16 %v7499_v48, %v1650_v42 }
 0x1b8   : > { %v7502_v12 = vpop.f32.mrf.mxu0 }
 0x1b9   : > { %2135 = vmatmul.mubr.bf16.gmra.mxu1 %v6623_v61 }
 0x1ba   : > { %v1660_v14 = vpop.f32.mrf.mxu0  ;;  %2142 = vmatprep.mubr.bf16.mxu1 %v6632_v44 }
 0x1bb   : > { %v1812_v9 = vpack.c.bf16 %v7502_v12, %v1660_v14 }
 0x1bc   : > { %v7505_v37 = vpop.f32.mrf.mxu0 }
 0x1be   : > { %v1670_v16 = vpop.f32.mrf.mxu0 }
 0x1bf   : > { %v1813_v6 = vpack.c.bf16 %v7505_v37, %v1670_v16 }
 0x1c0   : > { %v7508_v23 = vpop.f32.mrf.mxu0 }
 0x1c1   : > { %2143 = vmatmul.mubr.bf16.gmra.mxu1 %v6631_v40 }
 0x1c2   : > { %v1680_v24 = vpop.f32.mrf.mxu0  ;;  %2150 = vmatprep.mubr.bf16.mxu1 %v6640_v18 }
 0x1c3   : > { %v1814_v55 = vpack.c.bf16 %v7508_v23, %v1680_v24 }
 0x1c4   : > { %v7511_v27 = vpop.f32.mrf.mxu0 }
 0x1c6   : > { %v1690_v29 = vpop.f32.mrf.mxu0 }
 0x1c7   : > { %v1815_v4 = vpack.c.bf16 %v7511_v27, %v1690_v29 }
 0x1c8   : > { %v7514_v31 = vpop.f32.mrf.mxu0 }
 0x1c9   : > { %2151 = vmatmul.mubr.bf16.gmra.mxu1 %v6639_v28 }
 0x1ca   : > { %v1700_v32 = vpop.f32.mrf.mxu0  ;;  %2190 = vmatprep.mubr.bf16.mxu1 %v6618_v30 }
 0x1cb   : > { %v1816_v41 = vpack.c.bf16 %v7514_v31, %v1700_v32 }
 0x1cc   : > { %v7517_v33 = vpop.f32.mrf.mxu0 }
 0x1ce   : > { %v1710_v34 = vpop.f32.mrf.mxu0 }
 0x1cf   : > { %v1817_v35 = vpack.c.bf16 %v7517_v33, %v1710_v34 }
 0x1d1   : > { %7076 = vmatprep.subr.bf16.mxu1 %v1817_v35 }
 0x1d2   : > { %7077 = vmatpush3.bf16.msra.mxu1 %v1809_v38 }
 0x1d3   : > { %7078 = vmatprep.subr.bf16.mxu1 %v1816_v41 }
 0x1d6   : > { %7079 = vmatpush3.bf16.msra.mxu1 %v1808_v51 }
 0x1d7   : > { %7080 = vmatprep.subr.bf16.mxu1 %v1815_v4 }
 0x1da   : > { %7081 = vmatpush3.bf16.msra.mxu1 %v1807_v20 }
 0x1db   : > { %7082 = vmatprep.subr.bf16.mxu1 %v1814_v55 }
 0x1de   : > { %7083 = vmatpush3.bf16.msra.mxu1 %v1806_v52 }
 0x1df   : > { %7084 = vmatprep.subr.bf16.mxu1 %v1813_v6 }
 0x1e2   : > { %7085 = vmatpush3.bf16.msra.mxu1 %v1805_v47 }
 0x1e3   : > { %7086 = vmatprep.subr.bf16.mxu1 %v1812_v9 }
 0x1e6   : > { %7087 = vmatpush3.bf16.msra.mxu1 %v1804_v54 }
 0x1e7   : > { %7088 = vmatprep.subr.bf16.mxu1 %v1811_v62 }
 0x1ea   : > { %7089 = vmatpush3.bf16.msra.mxu1 %v1803_v50 }
 0x1eb   : > { %7090 = vmatprep.subr.bf16.mxu1 %v1810_v2 }
 0x1ee   : > { %7091 = vmatpush3.bf16.msra.mxu1 %v1802_v8 }
 0x1f1   : > { %2191 = vmatmul.mubr.bf16.vlgmr.msra.gmra.mxu1 %v6617_v11  ;;  %v6972_v0 = vpop.f32.mrf.mxu1 }
 0x1f2   : > { %2198 = vmatprep.mubr.bf16.mxu1 %v6626_v17 }
 0x1f3   : > { %v6973_v47 = vpop.f32.mrf.mxu1 }
 0x1f4   : > { %v6974_v12 = vadd.f32 %v6973_v47, %v6972_v0 }
 0x1f5   : > { %v6975_v45 = vpop.f32.mrf.mxu1 }
 0x1f7   : > { %v6976_v39 = vpop.f32.mrf.mxu1 }
 0x1f8   : > { %v6977_v53 = vadd.f32 %v6976_v39, %v6975_v45 }
 0x1f9   : > { %2199 = vmatmul.mubr.bf16.gmra.mxu1 %v6625_v59  ;;  %v6978_v46 = vpop.f32.mrf.mxu1 }
 0x1fa   : > { %2206 = vmatprep.mubr.bf16.mxu1 %v6634_v1 }
 0x1fb   : > { %v6979_v8 = vpop.f32.mrf.mxu1 }
 0x1fc   : > { %v6980_v24 = vadd.f32 %v6979_v8, %v6978_v46 }
 0x1fd   : > { %v6981_v13 = vpop.f32.mrf.mxu1 }
 0x1ff   : > { %v6982_v21 = vpop.f32.mrf.mxu1 }
 0x200   : > { %v6983_v22 = vadd.f32 %v6982_v21, %v6981_v13 }
 0x201   : > { %2207 = vmatmul.mubr.bf16.gmra.mxu1 %v6633_v10  ;;  %v6984_v5 = vpop.f32.mrf.mxu1 }
 0x202   : > { %2214 = vmatprep.mubr.bf16.mxu1 %v6642_v60 }
 0x203   : > { %v6985_v56 = vpop.f32.mrf.mxu1 }
 0x204   : > { %v6986_v33 = vadd.f32 %v6985_v56, %v6984_v5 }
 0x205   : > { %v6987_v3 = vpop.f32.mrf.mxu1 }
 0x207   : > { %v6988_v7 = vpop.f32.mrf.mxu1 }
 0x208   : > { %v6989_v51 = vadd.f32 %v6988_v7, %v6987_v3 }
 0x209   : > { %2215 = vmatmul.mubr.bf16.gmra.mxu1 %v6641_v63  ;;  %v6990_v43 = vpop.f32.mrf.mxu1 }
 0x20b   : > { %v6991_v48 = vpop.f32.mrf.mxu1 }
 0x20c   : > { %v6992_v6 = vadd.f32 %v6991_v48, %v6990_v43 }
 0x20d   : > { %v6993_v61 = vpop.f32.mrf.mxu1 }
 0x20f   : > { %v6994_v42 = vpop.f32.mrf.mxu1 }
 0x231   : > { %v7012_v44 = vpop.f32.mrf.mxu1 }
 0x233   : > { %v7013_v14 = vpop.f32.mrf.mxu1 }
 0x234   : > { %v7014_v36 = vadd.f32 %v7013_v14, %v7012_v44 }
 0x235   : > { %v7015_v37 = vpop.f32.mrf.mxu1 }
 0x236   : > { %v2065_v40 = vadd.f32 %v7014_v36, %v6974_v12 }
 0x237   : > { %v7016_v16 = vpop.f32.mrf.mxu1 }
 0x238   : > { %v7017_v18 = vadd.f32 %v7016_v16, %v7015_v37 }
 0x239   : > { %v7018_v23 = vpop.f32.mrf.mxu1 }
 0x23a   : > { %v2068_v25 = vadd.f32 %v7017_v18, %v6977_v53 }
 0x23b   : > { %v7019_v26 = vpop.f32.mrf.mxu1 }
 0x23c   : > { %v7020_v27 = vadd.f32 %v7019_v26, %v7018_v23  ;;  %v1720_v26 = vld [vmem:[%s10471_s4 + $0x8] sm:$0xff] }
 0x23d   : > { %v7021_v28 = vpop.f32.mrf.mxu1 }
 0x23e   : > { %v2073_v29 = vadd.f32 %v7020_v27, %v6980_v24 }
 0x23f   : > { %v7022_v30 = vpop.f32.mrf.mxu1 }
 0x240   : > { %v7023_v31 = vadd.f32 %v7022_v30, %v7021_v28 }
 0x241   : > { %v7024_v32 = vpop.f32.mrf.mxu1 }
 0x242   : > { %v2076_v34 = vadd.f32 %v7023_v31, %v6983_v22 }
 0x243   : > { %v7025_v35 = vpop.f32.mrf.mxu1 }
 0x244   : > { %v7026_v38 = vadd.f32 %v7025_v35, %v7024_v32 }
 0x245   : > { %v7027_v41 = vpop.f32.mrf.mxu1 }
 0x246   : > { %v2081_v4 = vadd.f32 %v7026_v38, %v6986_v33  ;;  %v1721_v33 = vld [vmem:[%s10471_s4 + $0x10] sm:$0xff] }
 0x247   : > { %v7028_v20 = vpop.f32.mrf.mxu1 }
 0x248   : > { %v7029_v55 = vadd.f32 %v7028_v20, %v7027_v41  ;;  %v1722_v20 = vld [vmem:[%s10471_s4 + $0x18] sm:$0xff] }
 0x249   : > { %v7030_v52 = vpop.f32.mrf.mxu1 }
 0x24a   : > { %v2084_v9 = vadd.f32 %v7029_v55, %v6989_v51 }
 0x24b   : > { %v7031_v54 = vpop.f32.mrf.mxu1 }
 0x24c   : > { %v7032_v62 = vadd.f32 %v7031_v54, %v7030_v52 }
 0x24d   : > { %v7033_v50 = vpop.f32.mrf.mxu1 }
 0x24e   : > { %v2089_v2 = vadd.f32 %v7032_v62, %v6992_v6  ;;  %v1723_v50 = vld [vmem:[%s10471_s4 + $0x20] sm:$0xff] }
 0x24f   : > { %v7034_v49 = vpop.f32.mrf.mxu1 }
 0x271   : > { %v7052_v57 = vpop.f32.mrf.mxu1 }
 0x273   : > { %v7053_v11 = vpop.f32.mrf.mxu1 }
 0x274   : > { %v7054_v17 = vadd.f32 %v7053_v11, %v7052_v57 }
 0x275   : > { %v7055_v0 = vpop.f32.mrf.mxu1 }
 0x276   : > { %v2129_v19 = vadd.f32 %v7054_v17, %v2065_v40  ;;  %v1719_v40 = vld [vmem:[%s10471_s4] sm:$0xff] }
 0x277   : > { %v7056_v15 = vpop.f32.mrf.mxu1 }
 0x278   : > { %v7057_v47 = vadd.f32 %v7056_v15, %v7055_v0 }
 0x279   : > { %v7058_v59 = vpop.f32.mrf.mxu1 }
 0x27a   : > { %v2132_v45 = vadd.f32 %v7057_v47, %v2068_v25 }
 0x27b   : > { %v7059_v1 = vpop.f32.mrf.mxu1 }
 0x27c   : > { %v7060_v39 = vadd.f32 %v7059_v1, %v7058_v59 }
 0x27d   : > { %v7061_v53 = vpop.f32.mrf.mxu1 }
 0x27e   : > { %v2137_v46 = vadd.f32 %v7060_v39, %v2073_v29 }
 0x27f   : > { %v7062_v58 = vpop.f32.mrf.mxu1 }
 0x280   : > { %v7063_v8 = vadd.f32 %v7062_v58, %v7061_v53  ;;  %v1725_v53 = vld [vmem:[%s10471_s4 + $0x30] sm:$0x3] }
 0x281   : > { %v7064_v10 = vpop.f32.mrf.mxu1 }
 0x282   : > { %v2140_v13 = vadd.f32 %v7063_v8, %v2076_v34 }
 0x283   : > { %v7065_v60 = vpop.f32.mrf.mxu1 }
 0x284   : > { %v7066_v21 = vadd.f32 %v7065_v60, %v7064_v10 }
 0x285   : > { %v7067_v22 = vpop.f32.mrf.mxu1 }
 0x286   : > { %v2145_v5 = vadd.f32 %v7066_v21, %v2081_v4 }
 0x287   : > { %v7068_v56 = vpop.f32.mrf.mxu1 }
 0x288   : > { %v7069_v63 = vadd.f32 %v7068_v56, %v7067_v22 }
 0x289   : > { %v7070_v3 = vpop.f32.mrf.mxu1 }
 0x28a   : > { %v2148_v7 = vadd.f32 %v7069_v63, %v2084_v9 }
 0x28b   : > { %v7071_v43 = vpop.f32.mrf.mxu1 }
 0x28c   : > { %v7072_v48 = vadd.f32 %v7071_v43, %v7070_v3 }
 0x28d   : > { %v7073_v61 = vpop.f32.mrf.mxu1 }
 0x28e   : > { %v2153_v42 = vadd.f32 %v7072_v48, %v2089_v2 }
 0x28f   : > { %v7074_v44 = vpop.f32.mrf.mxu1 }
 0x2b1   : > { %v7092_v12 = vpop.f32.mrf.mxu1 }
 0x2b3   : > { %v7093_v14 = vpop.f32.mrf.mxu1 }
 0x2b4   : > { %v7094_v36 = vadd.f32 %v7093_v14, %v7092_v12 }
 0x2b5   : > { %v7095_v37 = vpop.f32.mrf.mxu1 }
 0x2b6   : > { %v2193_v16 = vadd.f32 %v7094_v36, %v2129_v19  ;;  %v1724_v19 = vld [vmem:[%s10471_s4 + $0x28] sm:$0xff] }
 0x2b7   : > { %v7096_v18 = vpop.f32.mrf.mxu1 }
 0x2b8   : > { %v7097_v23 = vadd.f32 %v7096_v18, %v7095_v37  ;;  %v2222_v24 = vadd.f32 %v2193_v16, %v1719_v40 }
 0x2b9   : > { %v7098_v25 = vpop.f32.mrf.mxu1 }
 0x2ba   : > { %v2196_v27 = vadd.f32 %v7097_v23, %v2132_v45  ;;  %v2230_v28 = vsel %vm2229_vm2, %v2222_v24, 0.0 }
 0x2bb   : > { %v7099_v29 = vpop.f32.mrf.mxu1  ;;  %2231 = vadd.xlane.f32.xlu0 %v2230_v28 }
 0x2bc   : > { %v7100_v30 = vadd.f32 %v7099_v29, %v7098_v25  ;;  %v2223_v31 = vadd.f32 %v2196_v27, %v1720_v26 }
 0x2bd   : > { %v7101_v32 = vpop.f32.mrf.mxu1 }
 0x2be   : > { %v2233_v34 = vsel %vm2229_vm2, %v2223_v31, 0.0  ;;  %v2201_v35 = vadd.f32 %v7100_v30, %v2137_v46 }
 0x2bf   : > { %v7102_v38 = vpop.f32.mrf.mxu1  ;;  %2234 = vadd.xlane.f32.xlu0 %v2233_v34 }
 0x2c0   : > { %v7103_v41 = vadd.f32 %v7102_v38, %v7101_v32  ;;  %v2224_v51 = vadd.f32 %v2201_v35, %v1721_v33 }
 0x2c1   : > { %v7104_v4 = vpop.f32.mrf.mxu1 }
 0x2c2   : > { %v2204_v55 = vadd.f32 %v7103_v41, %v2140_v13  ;;  %v2236_v52 = vsel %vm2229_vm2, %v2224_v51, 0.0 }
 0x2c3   : > { %v7105_v6 = vpop.f32.mrf.mxu1  ;;  %2237 = vadd.xlane.f32.xlu1 %v2236_v52 }
 0x2c4   : > { %v7106_v9 = vadd.f32 %v7105_v6, %v7104_v4  ;;  %v2225_v54 = vadd.f32 %v2204_v55, %v1722_v20  ;;  %v2323_v6 = vlaneseq }
 0x2c5   : > { %v7107_v62 = vpop.f32.mrf.mxu1 }
 0x2c6   : > { %v2209_v2 = vadd.f32 %v7106_v9, %v2145_v5  ;;  %v2239_v49 = vsel %vm2229_vm2, %v2225_v54, 0.0 }
 0x2c7   : > { %v7108_v57 = vpop.f32.mrf.mxu1  ;;  %2240 = vadd.xlane.f32.xlu1 %v2239_v49 }
 0x2c8   : > { %v7109_v11 = vadd.f32 %v7108_v57, %v7107_v62  ;;  %v2226_v17 = vadd.f32 %v2209_v2, %v1723_v50  ;;  %v9082_v50 = vshrl.u32 %v2323_v6, 7 }
 0x2c9   : > { %v7110_v0 = vpop.f32.mrf.mxu1 }
 0x2ca   : > { %v2212_v15 = vadd.f32 %v7109_v11, %v2148_v7  ;;  %v2242_v47 = vsel %vm2229_vm2, %v2226_v17, 0.0  ;;  %v9085_v11 = vsub.s32 0, %v9082_v50 }
 0x2cb   : > { %v7111_v59 = vpop.f32.mrf.mxu1  ;;  %2243 = vadd.xlane.f32.xlu0 %v2242_v47 }
 0x2cc   : > { %v7112_v45 = vadd.f32 %v7111_v59, %v7110_v0  ;;  %v2227_v1 = vadd.f32 %v2212_v15, %v1724_v19  ;;  %v9093_v19 = vsub.s32 1, %v9082_v50 }
 0x2cd   : > { %v7113_v39 = vpop.f32.mrf.mxu1 }
 0x2ce   : > { %v2217_v46 = vadd.f32 %v7112_v45, %v2153_v42  ;;  %v2245_v58 = vsel %vm2229_vm2, %v2227_v1, 0.0 }
 0x2cf   : > { %v7114_v8 = vpop.f32.mrf.mxu1  ;;  %2246 = vadd.xlane.f32.xlu1 %v2245_v58 }
 0x2d0   : > { %v2228_v10 = vadd.f32 %v2217_v46, %v1725_v53 }
 0x2d2   : > { %v2249_v13 = vsel %vm2248_vm3, %v2228_v10, 0.0 }
 0x2d3   : > { %2250 = vadd.xlane.f32.xlu0 %v2249_v13 }
 0x344   : > { %v2232_v60 = vpop.xlane.xlu0 %2231 }
 0x345   : > { %v2253_v21 = vmul.f32 0.03125, %v2232_v60 }
 0x347   : > { %v9046_v22 = vsub.f32 %v2222_v24, %v2253_v21 }
 0x348   : > { %v2235_v5 = vpop.xlane.xlu0 %2234 }
 0x349   : > { %v2254_v56 = vmul.f32 0.03125, %v2235_v5  ;;  %v2267_v63 = vmul.f32 %v9046_v22, %v9046_v22 }
 0x34b   : > { %v9050_v3 = vsub.f32 %v2223_v31, %v2254_v56  ;;  %v2274_v7 = vsel %vm2229_vm2, %v2267_v63, 0.0 }
 0x34c   : > { %v2238_v43 = vpop.xlane.xlu1 %2237  ;;  %2275 = vadd.xlane.f32.xlu1 %v2274_v7 }
 0x34d   : > { %v2255_v48 = vmul.f32 0.03125, %v2238_v43  ;;  %v2268_v61 = vmul.f32 %v9050_v3, %v9050_v3 }
 0x34f   : > { %v9055_v42 = vsub.f32 %v2224_v51, %v2255_v48  ;;  %v2277_v44 = vsel %vm2229_vm2, %v2268_v61, 0.0 }
 0x350   : > { %v2241_v12 = vpop.xlane.xlu1 %2240  ;;  %2278 = vadd.xlane.f32.xlu0 %v2277_v44 }
 0x351   : > { %v2256_v14 = vmul.f32 0.03125, %v2241_v12  ;;  %v2269_v36 = vmul.f32 %v9055_v42, %v9055_v42 }
 0x353   : > { %v9060_v37 = vsub.f32 %v2225_v54, %v2256_v14  ;;  %v2280_v40 = vsel %vm2229_vm2, %v2269_v36, 0.0 }
 0x354   : > { %2281 = vadd.xlane.f32.xlu1 %v2280_v40  ;;  %v2244_v16 = vpop.xlane.xlu0 %2243 }
 0x355   : > { %v2257_v18 = vmul.f32 0.03125, %v2244_v16  ;;  %v2270_v23 = vmul.f32 %v9060_v37, %v9060_v37 }
 0x357   : > { %v9065_v24 = vsub.f32 %v2226_v17, %v2257_v18  ;;  %v2283_v25 = vsel %vm2229_vm2, %v2270_v23, 0.0  ;;  %v9090_v17 = vld [vmem:[%s10474_s7] sm:$0xff] }
 0x358   : > { %v2247_v26 = vpop.xlane.xlu1 %2246  ;;  %2284 = vadd.xlane.f32.xlu0 %v2283_v25  ;;  %v2326_v59 = vrot.slane %v9090_v17, %v9085_v11  ;;  %v2337_v53 = vrot.slane %v9090_v17, %v9093_v19 }
 0x359   : > { %v2258_v27 = vmul.f32 0.03125, %v2247_v26  ;;  %v2271_v28 = vmul.f32 %v9065_v24, %v9065_v24 }
 0x35b   : > { %v9070_v29 = vsub.f32 %v2227_v1, %v2258_v27  ;;  %v2286_v30 = vsel %vm2229_vm2, %v2271_v28, 0.0 }
 0x35c   : > { %2287 = vadd.xlane.f32.xlu1 %v2286_v30  ;;  %v2251_v31 = vpop.xlane.xlu0 %2250 }
 0x35d   : > { %v2259_v32 = vmul.f32 0.03125, %v2251_v31  ;;  %v2272_v33 = vmul.f32 %v9070_v29, %v9070_v29 }
 0x35f   : > { %v9075_v34 = vsub.f32 %v2228_v10, %v2259_v32  ;;  %v2289_v35 = vsel %vm2229_vm2, %v2272_v33, 0.0 }
 0x360   : > { %2290 = vadd.xlane.f32.xlu0 %v2289_v35 }
 0x361   : > { %v2273_v38 = vmul.f32 %v9075_v34, %v9075_v34 }
 0x363   : > { %v2292_v41 = vsel %vm2248_vm3, %v2273_v38, 0.0 }
 0x364   : > { %2293 = vadd.xlane.f32.xlu1 %v2292_v41 }
 0x3d5   : > { %v2276_v51 = vpop.xlane.xlu1 %2275 }
 0x3d6   : > { %v2295_v4 = vmul.f32 0.03125, %v2276_v51 }
 0x3d8   : > { %v2302_v20 = vadd.f32 1e-05, %v2295_v4 }
 0x3d9   : > { %v2279_v55 = vpop.xlane.xlu0 %2278 }
 0x3da   : > { %8095 = vrsqrt.f32 %v2302_v20  ;;  %v2296_v52 = vmul.f32 0.03125, %v2279_v55 }
 0x3dc   : > { %v2303_v9 = vadd.f32 1e-05, %v2296_v52 }
 0x3dd   : > { %v2282_v54 = vpop.xlane.xlu1 %2281 }
 0x3de   : > { %8097 = vrsqrt.f32 %v2303_v9  ;;  %v2297_v62 = vmul.f32 0.03125, %v2282_v54 }
 0x3e0   : > { %v2304_v2 = vadd.f32 1e-05, %v2297_v62 }
 0x3e1   : > { %v2285_v49 = vpop.xlane.xlu0 %2284 }
 0x3e2   : > { %8099 = vrsqrt.f32 %v2304_v2  ;;  %v2298_v57 = vmul.f32 0.03125, %v2285_v49 }
 0x3e4   : > { %v2305_v0 = vadd.f32 1e-05, %v2298_v57 }
 0x3e5   : > { %v2288_v15 = vpop.xlane.xlu1 %2287 }
 0x3e6   : > { %8101 = vrsqrt.f32 %v2305_v0  ;;  %v2299_v47 = vmul.f32 0.03125, %v2288_v15 }
 0x3e7   : > { %v8096_v45 = vpop.eup %8095 }
 0x3e8   : > { %v2306_v1 = vadd.f32 1e-05, %v2299_v47  ;;  %v2316_v39 = vmul.f32 %v8096_v45, %v9046_v22 }
 0x3e9   : > { %v2291_v46 = vpop.xlane.xlu0 %2290 }
 0x3ea   : > { %8103 = vrsqrt.f32 %v2306_v1  ;;  %v2300_v58 = vmul.f32 0.03125, %v2291_v46  ;;  %v2327_v8 = vmul.f32 %v2326_v59, %v2316_v39 }
 0x3eb   : > { %v8098_v10 = vpop.eup %8097 }
 0x3ec   : > { %v2307_v13 = vadd.f32 1e-05, %v2300_v58  ;;  %v9100_v60 = vadd.f32 %v2337_v53, %v2327_v8  ;;  %v2317_v21 = vmul.f32 %v8098_v10, %v9050_v3 }
 0x3ed   : > { %v2294_v5 = vpop.xlane.xlu1 %2293 }
 0x3ee   : > { %8105 = vrsqrt.f32 %v2307_v13  ;;  %v2301_v56 = vmul.f32 0.03125, %v2294_v5  ;;  %v2369_v63 = vsel %vm2229_vm2, %v9100_v60, 0.0  ;;  %v2328_v22 = vmul.f32 %v2326_v59, %v2317_v21 }
 0x3ef   : > { %v8100_v7 = vpop.eup %8099  ;;  %2370 = vadd.xlane.f32.xlu0 %v2369_v63 }
 0x3f0   : > { %v2308_v43 = vadd.f32 1e-05, %v2301_v56  ;;  %v9105_v48 = vadd.f32 %v2337_v53, %v2328_v22  ;;  %v2318_v61 = vmul.f32 %v8100_v7, %v9055_v42 }
 0x3f2   : > { %8107 = vrsqrt.f32 %v2308_v43  ;;  %v2372_v44 = vsel %vm2229_vm2, %v9105_v48, 0.0  ;;  %v2329_v12 = vmul.f32 %v2326_v59, %v2318_v61 }
 0x3f3   : > { %v8102_v3 = vpop.eup %8101  ;;  %2373 = vadd.xlane.f32.xlu1 %v2372_v44 }
 0x3f4   : > { %v9110_v14 = vadd.f32 %v2337_v53, %v2329_v12  ;;  %v2319_v36 = vmul.f32 %v8102_v3, %v9060_v37  ;;  %v2347_v3 = vld [vmem:[%s10475_s8 + $0x8] sm:$0xf] }
 0x3f6   : > { %v2375_v40 = vsel %vm2229_vm2, %v9110_v14, 0.0  ;;  %v2330_v16 = vmul.f32 %v2326_v59, %v2319_v36  ;;  %v2348_v36 = vld [vmem:[%s10475_s8 + $0xc] sm:$0xf] }
 0x3f7   : > { %v8104_v18 = vpop.eup %8103  ;;  %2376 = vadd.xlane.f32.xlu0 %v2375_v40  ;;  %v6644_v40 = vcombine.low %v2347_v3, %v2348_v36 }
 0x3f8   : > { %v9115_v23 = vadd.f32 %v2337_v53, %v2330_v16  ;;  %v2320_v42 = vmul.f32 %v8104_v18, %v9065_v24  ;;  %v9185_v16 = vld [vmem:[%s10475_s8] sm:$0xf]  ;;  %v9190_v18 = vld [vmem:[%s10475_s8 + $0x4] sm:$0xf] }
 0x3f9   : > { %7518 = vmatprep.subr.bf16.mxu1 %v6644_v40 }
 0x3fa   : > { %v2378_v25 = vsel %vm2229_vm2, %v9115_v23, 0.0  ;;  %v2331_v26 = vmul.f32 %v2326_v59, %v2320_v42  ;;  %7519 = vmatpush3.bf16.msra.mxu1 %v6644_v40  ;;  %v6643_v42 = vcombine.low %v9185_v16, %v9190_v18 }
 0x3fb   : > { %v8106_v27 = vpop.eup %8105  ;;  %2379 = vadd.xlane.f32.xlu1 %v2378_v25 }
 0x3fc   : > { %v9120_v28 = vadd.f32 %v2337_v53, %v2331_v26  ;;  %v2321_v37 = vmul.f32 %v8106_v27, %v9070_v29  ;;  %7520 = vmatprep.subr.bf16.mxu1 %v6643_v42 }
 0x3fe   : > { %v2381_v30 = vsel %vm2229_vm2, %v9120_v28, 0.0  ;;  %v2332_v31 = vmul.f32 %v2326_v59, %v2321_v37  ;;  %7521 = vmatpush3.bf16.msra.mxu1 %v6643_v42 }
 0x3ff   : > { %v8108_v32 = vpop.eup %8107  ;;  %2382 = vadd.xlane.f32.xlu0 %v2381_v30 }
 0x400   : > { %v9125_v33 = vadd.f32 %v2337_v53, %v2332_v31  ;;  %v2322_v24 = vmul.f32 %v8108_v32, %v9075_v34 }
 0x402   : > { %v2384_v35 = vsel %vm2229_vm2, %v9125_v33, 0.0  ;;  %v2333_v38 = vmul.f32 %v2326_v59, %v2322_v24 }
 0x403   : > { %2385 = vadd.xlane.f32.xlu1 %v2384_v35 }
 0x404   : > { %v9130_v41 = vadd.f32 %v2337_v53, %v2333_v38 }
 0x406   : > { %v2387_v29 = vsel %vm2248_vm3, %v9130_v41, 0.0 }
 0x407   : > { %2388 = vadd.xlane.f32.xlu0 %v2387_v29 }
 0x478   : > { %v2371_v51 = vpop.xlane.xlu0 %2370 }
 0x479   : > { %v2390_v4 = vmul.f32 0.03125, %v2371_v51  ;;  %v2462_v51 = vsub.s32 6, %v9082_v50 }
 0x47b   : > { %v9135_v20 = vsub.f32 %v9100_v60, %v2390_v4 }
 0x47c   : > { %v2374_v55 = vpop.xlane.xlu1 %2373 }
 0x47d   : > { %v2391_v52 = vmul.f32 0.03125, %v2374_v55  ;;  %v2404_v34 = vmul.f32 %v9135_v20, %v9135_v20 }
 0x47f   : > { %v9140_v9 = vsub.f32 %v9105_v48, %v2391_v52  ;;  %v2411_v54 = vsel %vm2229_vm2, %v2404_v34, 0.0 }
 0x480   : > { %2412 = vadd.xlane.f32.xlu1 %v2411_v54  ;;  %v2377_v62 = vpop.xlane.xlu0 %2376  ;;  %v2463_v54 = vrot.slane %v9090_v17, %v2462_v51 }
 0x481   : > { %v2392_v2 = vmul.f32 0.03125, %v2377_v62  ;;  %v2405_v49 = vmul.f32 %v9140_v9, %v9140_v9 }
 0x483   : > { %v9146_v57 = vsub.f32 %v9110_v14, %v2392_v2  ;;  %v2414_v0 = vsel %vm2229_vm2, %v2405_v49, 0.0  ;;  %v2473_v49 = vsub.s32 7, %v9082_v50 }
 0x484   : > { %2415 = vadd.xlane.f32.xlu0 %v2414_v0  ;;  %v2380_v15 = vpop.xlane.xlu1 %2379 }
 0x485   : > { %v2393_v47 = vmul.f32 0.03125, %v2380_v15  ;;  %v2406_v59 = vmul.f32 %v9146_v57, %v9146_v57 }
 0x487   : > { %v9152_v45 = vsub.f32 %v9115_v23, %v2393_v47  ;;  %v2417_v1 = vsel %vm2229_vm2, %v2406_v59, 0.0 }
 0x488   : > { %2418 = vadd.xlane.f32.xlu1 %v2417_v1  ;;  %v2383_v39 = vpop.xlane.xlu0 %2382 }
 0x489   : > { %v2394_v53 = vmul.f32 0.03125, %v2383_v39  ;;  %v2407_v46 = vmul.f32 %v9152_v45, %v9152_v45 }
 0x48b   : > { %v9158_v58 = vsub.f32 %v9120_v28, %v2394_v53  ;;  %v2420_v8 = vsel %vm2229_vm2, %v2407_v46, 0.0  ;;  %v2474_v53 = vrot.slane %v9090_v17, %v2473_v49 }
 0x48c   : > { %2421 = vadd.xlane.f32.xlu0 %v2420_v8  ;;  %v2386_v10 = vpop.xlane.xlu1 %2385 }
 0x48d   : > { %v2395_v13 = vmul.f32 0.03125, %v2386_v10  ;;  %v2408_v21 = vmul.f32 %v9158_v58, %v9158_v58 }
 0x48f   : > { %v9164_v5 = vsub.f32 %v9125_v33, %v2395_v13  ;;  %v2423_v56 = vsel %vm2229_vm2, %v2408_v21, 0.0 }
 0x490   : > { %2424 = vadd.xlane.f32.xlu1 %v2423_v56  ;;  %v2389_v63 = vpop.xlane.xlu0 %2388 }
 0x491   : > { %v2396_v22 = vmul.f32 0.03125, %v2389_v63  ;;  %v2409_v7 = vmul.f32 %v9164_v5, %v9164_v5 }
 0x493   : > { %v9170_v43 = vsub.f32 %v9130_v41, %v2396_v22  ;;  %v2426_v61 = vsel %vm2229_vm2, %v2409_v7, 0.0 }
 0x494   : > { %2427 = vadd.xlane.f32.xlu0 %v2426_v61 }
 0x495   : > { %v2410_v44 = vmul.f32 %v9170_v43, %v9170_v43 }
 0x497   : > { %v2429_v12 = vsel %vm2248_vm3, %v2410_v44, 0.0 }
 0x498   : > { %2430 = vadd.xlane.f32.xlu1 %v2429_v12 }
 0x509   : > { %v2413_v25 = vpop.xlane.xlu1 %2412 }
 0x50a   : > { %v2432_v26 = vmul.f32 0.03125, %v2413_v25 }
 0x50c   : > { %v2439_v27 = vadd.f32 1e-05, %v2432_v26 }
 0x50d   : > { %v2416_v37 = vpop.xlane.xlu0 %2415 }
 0x50e   : > { %8109 = vrsqrt.f32 %v2439_v27  ;;  %v2433_v30 = vmul.f32 0.03125, %v2416_v37 }
 0x510   : > { %v2440_v31 = vadd.f32 1e-05, %v2433_v30 }
 0x511   : > { %v2419_v32 = vpop.xlane.xlu1 %2418 }
 0x512   : > { %8111 = vrsqrt.f32 %v2440_v31  ;;  %v2434_v24 = vmul.f32 0.03125, %v2419_v32 }
 0x514   : > { %v2441_v35 = vadd.f32 1e-05, %v2434_v24 }
 0x515   : > { %v2422_v38 = vpop.xlane.xlu0 %2421 }
 0x516   : > { %8113 = vrsqrt.f32 %v2441_v35  ;;  %v2435_v29 = vmul.f32 0.03125, %v2422_v38 }
 0x518   : > { %v2442_v4 = vadd.f32 1e-05, %v2435_v29 }
 0x519   : > { %v2425_v55 = vpop.xlane.xlu1 %2424 }
 0x51a   : > { %8115 = vrsqrt.f32 %v2442_v4  ;;  %v2436_v52 = vmul.f32 0.03125, %v2425_v55 }
 0x51b   : > { %v8110_v34 = vpop.eup %8109 }
 0x51c   : > { %v2443_v62 = vadd.f32 1e-05, %v2436_v52  ;;  %v2453_v2 = vmul.f32 %v8110_v34, %v9135_v20 }
 0x51d   : > { %v2428_v0 = vpop.xlane.xlu0 %2427 }
 0x51e   : > { %8117 = vrsqrt.f32 %v2443_v62  ;;  %v2437_v15 = vmul.f32 0.03125, %v2428_v0  ;;  %v2464_v39 = vmul.f32 %v2463_v54, %v2453_v2 }
 0x51f   : > { %v8112_v47 = vpop.eup %8111 }
 0x520   : > { %v2444_v59 = vadd.f32 1e-05, %v2437_v15  ;;  %v2454_v1 = vmul.f32 %v8112_v47, %v9140_v9  ;;  %v2475_v56 = vadd.f32 %v2474_v53, %v2464_v39 }
 0x521   : > { %v2431_v46 = vpop.xlane.xlu1 %2430 }
 0x522   : > { %8119 = vrsqrt.f32 %v2444_v59  ;;  %v2438_v8 = vmul.f32 0.03125, %v2431_v46  ;;  %v2465_v10 = vmul.f32 %v2463_v54, %v2454_v1 }
 0x523   : > { %v8114_v13 = vpop.eup %8113 }
 0x524   : > { %v2455_v20 = vmul.f32 %v8114_v13, %v9146_v57  ;;  %v2445_v21 = vadd.f32 1e-05, %v2438_v8  ;;  %v2476_v63 = vadd.f32 %v2474_v53, %v2465_v10 }
 0x526   : > { %8121 = vrsqrt.f32 %v2445_v21  ;;  %v2482_v22 = vpack.c.bf16 %v2476_v63, %v2475_v56  ;;  %v2466_v61 = vmul.f32 %v2463_v54, %v2455_v20 }
 0x527   : > { %v8116_v7 = vpop.eup %8115 }
 0x528   : > { %v2456_v9 = vmul.f32 %v8116_v7, %v9152_v45  ;;  %7522 = vmatprep.mubr.msk.bf16.mxu1 %vm2229_vm2, %v2482_v22  ;;  %v2477_v12 = vadd.f32 %v2474_v53, %v2466_v61 }
 0x52a   : > { %v2467_v44 = vmul.f32 %v2463_v54, %v2456_v9 }
 0x52b   : > { %v8118_v17 = vpop.eup %8117 }
 0x52c   : > { %v2478_v3 = vadd.f32 %v2474_v53, %v2467_v44  ;;  %v2457_v36 = vmul.f32 %v8118_v17, %v9158_v58  ;;  %v8322_v58 = vmov 0.0  }
 0x52d   : > { %7530 = vmatprep.subr.mxu1 %v8322_v58  ;;  %7635 = vmatprep.subr.mxu0 %v8322_v58 }
 0x52e   : > { %v2483_v40 = vpack.c.bf16 %v2478_v3, %v2477_v12  ;;  %v2468_v25 = vmul.f32 %v2463_v54, %v2457_v36  ;;  %7649 = vmatprep.mubr.msk.f32.mxu0 %vm8325_vm4, %v8322_v58 }
 0x52f   : > { %v8120_v42 = vpop.eup %8119 }
 0x530   : > { %7523 = vmatmul.mubr.msk.bf16.vlgmr.msra.gmra.mxu1 %vm2229_vm2, %v2483_v40  ;;  %v2458_v57 = vmul.f32 %v8120_v42, %v9164_v5  ;;  %v2479_v37 = vadd.f32 %v2474_v53, %v2468_v25 }
 0x532   : > { %v2469_v26 = vmul.f32 %v2463_v54, %v2458_v57 }
 0x533   : > { %v8122_v27 = vpop.eup %8121 }
 0x534   : > { %v2480_v30 = vadd.f32 %v2474_v53, %v2469_v26  ;;  %v2459_v45 = vmul.f32 %v8122_v27, %v9170_v43  ;;  %v494_v43 = vld [vmem:[%s10474_s7 + $0x8] sm:$0xff] }
 0x535   : > { %v2489_v55 = vrot.slane %v494_v43, %v9085_v11 }
 0x536   : > { %v2484_v31 = vpack.c.bf16 %v2480_v30, %v2479_v37  ;;  %v2470_v32 = vmul.f32 %v2463_v54, %v2459_v45 }
 0x538   : > { %7526 = vmatprep.mubr.msk.bf16.mxu1 %vm2229_vm2, %v2484_v31  ;;  %v2481_v24 = vadd.f32 %v2474_v53, %v2470_v32 }
 0x53a   : > { %v2485_v35 = vpack.c.bf16 %v2481_v24, %v2481_v24 }
 0x53c   : > { %7527 = vmatmul.mubr.msk.bf16.gmra.mxu1 %vm2229_vm2, %v2485_v35 }
 0x53d   : > { %7544 = vmatprep.mubr.msk.f32.mxu1 %vm8325_vm4, %v8322_v58 }
 0x5f0   : > { %v7524_v5 = vpop.f32.mrf.mxu1 }
 0x5f1   : > { %v9223_v2 = vadd.f32 %v7524_v5, %v2489_v55 }
 0x5f2   : > { %v2548_v38 = vpop.f32.mrf.mxu1 }
 0x5f3   : > { %v9229_v47 = vadd.f32 %v2548_v38, %v2489_v55 }
 0x5f4   : > { %v7525_v29 = vpop.f32.mrf.mxu1 }
 0x5f5   : > { %v9239_v1 = vadd.f32 %v7525_v29, %v2489_v55 }
 0x5f6   : > { %v2551_v4 = vpop.f32.mrf.mxu1 }
 0x5f7   : > { %v9243_v39 = vadd.f32 %v2551_v4, %v2489_v55 }
 0x5fc   : > { %v7528_v52 = vpop.f32.mrf.mxu1 }
 0x5fd   : > { %v9219_v34 = vadd.f32 %v7528_v52, %v2489_v55 }
 0x5fe   : > { %v2564_v54 = vpop.f32.mrf.mxu1 }
 0x5ff   : > { %2597 = vrot.lane.b32.xlu0 %v9219_v34, %s8323_s20  ;;  %v9233_v59 = vadd.f32 %v2564_v54, %v2489_v55 }
 0x600   : > { %v7529_v62 = vpop.f32.mrf.mxu1 }
 0x602   : > { %v2567_v0 = vpop.f32.mrf.mxu1 }
 0x603   : > { %v9225_v15 = vadd.f32 %v2567_v0, %v2489_v55  ;;  %2589 = vrot.lane.b32.xlu0 %v9223_v2, %s8323_s20 }
 0x605   : > { %2595 = vrot.lane.b32.xlu1 %v9225_v15, %s8323_s20 }
 0x607   : > { %2585 = vrot.lane.b32.xlu0 %v9229_v47, %s8323_s20 }
 0x609   : > { %2593 = vrot.lane.b32.xlu1 %v9233_v59, %s8323_s20 }
 0x60b   : > { %2826 = vrot.lane.b32.xlu0 %v9219_v34, %s8324_s21 }
 0x60d   : > { %2591 = vrot.lane.b32.xlu1 %v9239_v1, %s8323_s20 }
 0x60f   : > { %2816 = vrot.lane.b32.xlu0 %v9243_v39, %s8324_s21 }
 0x611   : > { %2587 = vrot.lane.b32.xlu1 %v9243_v39, %s8323_s20 }
 0x613   : > { %2988 = vrot.lane.b32.xlu0 %v9219_v34, %s8326_s22 }
 0x615   : > { %2822 = vrot.lane.b32.xlu1 %v9233_v59, %s8324_s21 }
 0x619   : > { %2820 = vrot.lane.b32.xlu1 %v9239_v1, %s8324_s21 }
 0x61d   : > { %2818 = vrot.lane.b32.xlu1 %v9223_v2, %s8324_s21 }
 0x621   : > { %2814 = vrot.lane.b32.xlu1 %v9229_v47, %s8324_s21 }
 0x625   : > { %2824 = vrot.lane.b32.xlu1 %v9225_v15, %s8324_s21 }
 0x671   : > { %v2598_v53 = vpop.permute.xlu0 %2597 }
 0x672   : > { %7531 = vmatpush3.xpose.msk.msra.mxu1 %vm2599_vm5, %v2598_v53 }
 0x673   : > { %7532 = vmatprep.subr.mxu1 %v8322_v58 }
 0x675   : > { %v2590_v13 = vpop.permute.xlu0 %2589 }
 0x677   : > { %v2596_v46 = vpop.permute.xlu1 %2595 }
 0x678   : > { %7533 = vmatpush3.xpose.msk.msra.mxu1 %vm2599_vm5, %v2596_v46 }
 0x679   : > { %7534 = vmatprep.subr.mxu1 %v8322_v58  ;;  %v2586_v56 = vpop.permute.xlu0 %2585 }
 0x67b   : > { %v2594_v8 = vpop.permute.xlu1 %2593 }
 0x67c   : > { %7535 = vmatpush3.xpose.msk.msra.mxu1 %vm2599_vm5, %v2594_v8 }
 0x67d   : > { %7536 = vmatprep.subr.mxu1 %v8322_v58  ;;  %v2827_v22 = vpop.permute.xlu0 %2826 }
 0x67f   : > { %v2592_v10 = vpop.permute.xlu1 %2591 }
 0x680   : > { %7537 = vmatpush3.xpose.msk.msra.mxu1 %vm2599_vm5, %v2592_v10 }
 0x681   : > { %7538 = vmatprep.subr.mxu1 %v8322_v58  ;;  %v2817_v44 = vpop.permute.xlu0 %2816 }
 0x683   : > { %v2588_v20 = vpop.permute.xlu1 %2587 }
 0x684   : > { %7539 = vmatpush3.xpose.msk.msra.mxu1 %vm2599_vm5, %v2590_v13 }
 0x685   : > { %7540 = vmatprep.subr.mxu1 %v8322_v58  ;;  %v9326_v46 = vpop.permute.xlu0 %2988 }
 0x687   : > { %v2823_v21 = vpop.permute.xlu1 %2822 }
 0x688   : > { %7541 = vmatpush3.xpose.msk.msra.mxu1 %vm2599_vm5, %v2588_v20 }
 0x689   : > { %7542 = vmatprep.subr.mxu1 %v8322_v58 }
 0x68b   : > { %v2821_v63 = vpop.permute.xlu1 %2820 }
 0x68c   : > { %7543 = vmatpush3.xpose.msk.msra.mxu1 %vm2599_vm5, %v2586_v56 }
 0x68d   : > { %7565 = vmatprep.subr.mxu1 %v8322_v58 }
 0x68f   : > { %7545 = vmatmul.mubr.msk.f32.vlgmr.msra.gmra.mxu1 %vm2599_vm5, %v9229_v47  ;;  %v2819_v7 = vpop.permute.xlu1 %2818 }
 0x690   : > { %7566 = vmatpush3.msk.msra.mxu1 %vm2855_vm6, %v2827_v22  ;;  %7547 = vmatprep.mubr.msk.f32.mxu1 %vm8325_vm4, %v8322_v58 }
 0x691   : > { %7567 = vmatprep.subr.mxu1 %v8322_v58 }
 0x693   : > { %7548 = vmatmul.mubr.msk.f32.gmra.mxu1 %vm2599_vm5, %v9243_v39  ;;  %v2815_v61 = vpop.permute.xlu1 %2814 }
 0x694   : > { %7550 = vmatprep.mubr.msk.f32.mxu1 %vm8325_vm4, %v8322_v58 }
 0x697   : > { %7551 = vmatmul.mubr.msk.f32.gmra.mxu1 %vm2599_vm5, %v9223_v2  ;;  %v2825_v9 = vpop.permute.xlu1 %2824 }
 0x698   : > { %7568 = vmatpush3.msra.mxu1 %v2825_v9  ;;  %7553 = vmatprep.mubr.msk.f32.mxu1 %vm8325_vm4, %v8322_v58 }
 0x699   : > { %7569 = vmatprep.subr.mxu1 %v8322_v58 }
 0x69a   : > { %7570 = vmatpush3.msra.mxu1 %v2823_v21 }
 0x69b   : > { %7554 = vmatmul.mubr.msk.f32.gmra.mxu1 %vm2599_vm5, %v9239_v1  ;;  %7571 = vmatprep.subr.mxu1 %v8322_v58 }
 0x69c   : > { %7572 = vmatpush3.msra.mxu1 %v2821_v63  ;;  %7556 = vmatprep.mubr.msk.f32.mxu1 %vm8325_vm4, %v8322_v58 }
 0x69d   : > { %7573 = vmatprep.subr.mxu1 %v8322_v58 }
 0x69e   : > { %7574 = vmatpush3.msra.mxu1 %v2819_v7 }
 0x69f   : > { %7557 = vmatmul.mubr.msk.f32.gmra.mxu1 %vm2599_vm5, %v9233_v59  ;;  %7575 = vmatprep.subr.mxu1 %v8322_v58 }
 0x6a0   : > { %7576 = vmatpush3.msra.mxu1 %v2817_v44  ;;  %7559 = vmatprep.mubr.msk.f32.mxu1 %vm8325_vm4, %v8322_v58 }
 0x6a1   : > { %7577 = vmatprep.subr.mxu1 %v8322_v58 }
 0x6a2   : > { %7578 = vmatpush3.msra.mxu1 %v2815_v61 }
 0x6a3   : > { %7560 = vmatmul.mubr.msk.f32.gmra.mxu1 %vm2599_vm5, %v9225_v15  ;;  %7600 = vmatprep.subr.mxu1 %v8322_v58 }
 0x6a4   : > { %7562 = vmatprep.mubr.msk.f32.mxu1 %vm8325_vm4, %v8322_v58 }
 0x6a7   : > { %7563 = vmatmul.mubr.msk.f32.gmra.mxu1 %vm2599_vm5, %v9219_v34 }
 0x6a8   : > { %7579 = vmatprep.mubr.msk.f32.mxu1 %vm8325_vm4, %v8322_v58 }
 0x74f   : > { %v2694_v17 = vpop.f32.mrf.mxu1 }
 0x750   : > { %v2728_v12 = vmul.f32 0.35355338, %v2694_v17 }
 0x751   : > { %v7546_v3 = vpop.f32.mrf.mxu1 }
 0x752   : > { %v2736_v36 = vsel %vm2735_vm7, %v2728_v12, -inf }
 0x753   : > { %2737 = vmax.xlane.f32.xlu1 %v2736_v36  ;;  %v2699_v40 = vpop.f32.mrf.mxu1 }
 0x754   : > { %v2729_v42 = vmul.f32 0.35355338, %v2699_v40 }
 0x755   : > { %v7549_v57 = vpop.f32.mrf.mxu1 }
 0x756   : > { %v2739_v25 = vsel %vm2735_vm7, %v2729_v42, -inf }
 0x757   : > { %2740 = vmax.xlane.f32.xlu0 %v2739_v25  ;;  %v2704_v26 = vpop.f32.mrf.mxu1 }
 0x758   : > { %v2730_v27 = vmul.f32 0.35355338, %v2704_v26 }
 0x759   : > { %v7552_v37 = vpop.f32.mrf.mxu1 }
 0x75a   : > { %v2742_v30 = vsel %vm2735_vm7, %v2730_v27, -inf }
 0x75b   : > { %2743 = vmax.xlane.f32.xlu0 %v2742_v30  ;;  %v2709_v45 = vpop.f32.mrf.mxu1 }
 0x75c   : > { %v2731_v31 = vmul.f32 0.35355338, %v2709_v45 }
 0x75d   : > { %v7555_v32 = vpop.f32.mrf.mxu1 }
 0x75e   : > { %v2745_v24 = vsel %vm2735_vm7, %v2731_v31, -inf }
 0x75f   : > { %2746 = vmax.xlane.f32.xlu0 %v2745_v24  ;;  %v2714_v35 = vpop.f32.mrf.mxu1 }
 0x760   : > { %v2732_v5 = vmul.f32 0.35355338, %v2714_v35 }
 0x761   : > { %v7558_v38 = vpop.f32.mrf.mxu1 }
 0x762   : > { %v2748_v29 = vsel %vm2735_vm7, %v2732_v5, -inf }
 0x763   : > { %2749 = vmax.xlane.f32.xlu1 %v2748_v29  ;;  %v2719_v43 = vpop.f32.mrf.mxu1 }
 0x764   : > { %v2733_v4 = vmul.f32 0.35355338, %v2719_v43 }
 0x765   : > { %v7561_v55 = vpop.f32.mrf.mxu1 }
 0x766   : > { %v2751_v52 = vsel %vm2735_vm7, %v2733_v4, -inf }
 0x767   : > { %2752 = vmax.xlane.f32.xlu0 %v2751_v52  ;;  %v2724_v54 = vpop.f32.mrf.mxu1 }
 0x768   : > { %v2734_v62 = vmul.f32 0.35355338, %v2724_v54 }
 0x769   : > { %v7564_v0 = vpop.f32.mrf.mxu1 }
 0x76a   : > { %v2755_v53 = vsel %vm2754_vm8, %v2734_v62, -inf }
 0x76b   : > { %2756 = vmax.xlane.f32.xlu1 %v2755_v53 }
 0x77d   : > { %2986 = vrot.lane.b32.xlu0 %v9225_v15, %s8326_s22 }
 0x7dc   : > { %v2738_v8 = vpop.xlane.xlu1 %2737 }
 0x7dd   : > { %v2758_v10 = vsub.f32 %v2728_v12, %v2738_v8 }
 0x7df   : > { %v2765_v13 = vmul.f32 1.442695, %v2758_v10 }
 0x7e0   : > { %v2741_v20 = vpop.xlane.xlu0 %2740 }
 0x7e1   : > { %8123 = vpow2.f32 %v2765_v13  ;;  %v2759_v21 = vsub.f32 %v2729_v42, %v2741_v20 }
 0x7e3   : > { %v2767_v56 = vmul.f32 1.442695, %v2759_v21 }
 0x7e4   : > { %v2744_v63 = vpop.xlane.xlu0 %2743 }
 0x7e5   : > { %8125 = vpow2.f32 %v2767_v56  ;;  %v2760_v22 = vsub.f32 %v2730_v27, %v2744_v63 }
 0x7e7   : > { %v2769_v7 = vmul.f32 1.442695, %v2760_v22 }
 0x7e8   : > { %v2747_v36 = vpop.xlane.xlu0 %2746 }
 0x7e9   : > { %8127 = vpow2.f32 %v2769_v7  ;;  %v2761_v40 = vsub.f32 %v2731_v31, %v2747_v36 }
 0x7eb   : > { %v2771_v26 = vmul.f32 1.442695, %v2761_v40 }
 0x7ec   : > { %v2750_v42 = vpop.xlane.xlu1 %2749 }
 0x7ed   : > { %v2762_v25 = vsub.f32 %v2732_v5, %v2750_v42  ;;  %8129 = vpow2.f32 %v2771_v26 }
 0x7ee   : > { %v8124_v61 = vpop.eup %8123 }
 0x7ef   : > { %v2779_v9 = vsel %vm2735_vm7, %v8124_v61, 0.0  ;;  %v2773_v37 = vmul.f32 1.442695, %v2762_v25 }
 0x7f0   : > { %2780 = vadd.xlane.f32.xlu0 %v2779_v9  ;;  %v2753_v57 = vpop.xlane.xlu0 %2752 }
 0x7f1   : > { %v2763_v27 = vsub.f32 %v2733_v4, %v2753_v57  ;;  %8131 = vpow2.f32 %v2773_v37 }
 0x7f2   : > { %v9329_v44 = vpop.eup %8125 }
 0x7f3   : > { %v2782_v17 = vsel %vm2735_vm7, %v9329_v44, 0.0  ;;  %v2775_v30 = vmul.f32 1.442695, %v2763_v27 }
 0x7f4   : > { %2783 = vadd.xlane.f32.xlu1 %v2782_v17  ;;  %v2757_v38 = vpop.xlane.xlu1 %2756  ;;  %v2987_v52 = vpop.permute.xlu0 %2986 }
 0x7f5   : > { %8133 = vpow2.f32 %v2775_v30  ;;  %v2764_v29 = vsub.f32 %v2734_v62, %v2757_v38 }
 0x7f6   : > { %v9333_v12 = vpop.eup %8127 }
 0x7f7   : > { %v2785_v3 = vsel %vm2735_vm7, %v9333_v12, 0.0  ;;  %v2777_v43 = vmul.f32 1.442695, %v2764_v29 }
 0x7f8   : > { %2786 = vadd.xlane.f32.xlu0 %v2785_v3 }
 0x7f9   : > { %8135 = vpow2.f32 %v2777_v43 }
 0x7fa   : > { %v9341_v45 = vpop.eup %8129 }
 0x7fb   : > { %v2788_v24 = vsel %vm2735_vm7, %v9341_v45, 0.0 }
 0x7fe   : > { %v9343_v32 = vpop.eup %8131 }
 0x7ff   : > { %v2791_v5 = vsel %vm2735_vm7, %v9343_v32, 0.0 }
 0x802   : > { %v9347_v35 = vpop.eup %8133 }
 0x803   : > { %v2794_v31 = vsel %vm2735_vm7, %v9347_v35, 0.0 }
 0x805   : > { %2982 = vrot.lane.b32.xlu1 %v9239_v1, %s8326_s22 }
 0x806   : > { %v9367_v4 = vpop.eup %8135 }
 0x807   : > { %v2797_v55 = vsel %vm2754_vm8, %v9367_v4, 0.0 }
 0x80e   : > { %2984 = vrot.lane.b32.xlu0 %v9233_v59, %s8326_s22 }
 0x829   : > { %2789 = vadd.xlane.f32.xlu1 %v2788_v24 }
 0x82d   : > { %2795 = vadd.xlane.f32.xlu0 %v2794_v31  ;;  %2792 = vadd.xlane.f32.xlu1 %v2791_v5 }
 0x83e   : > { %2978 = vrot.lane.b32.xlu1 %v9243_v39, %s8326_s22 }
 0x843   : > { %2980 = vrot.lane.b32.xlu0 %v9223_v2, %s8326_s22 }
 0x847   : > { %2976 = vrot.lane.b32.xlu0 %v9229_v47, %s8326_s22 }
 0x84b   : > { %2964 = vrot.lane.b32.xlu0 %v9243_v39, %s8327_s23 }
 0x84f   : > { %2968 = vrot.lane.b32.xlu0 %v9239_v1, %s8327_s23 }
 0x853   : > { %2972 = vrot.lane.b32.xlu0 %v9225_v15, %s8327_s23 }
 0x857   : > { %3212 = vrot.lane.b32.xlu0 %v9225_v15, %s10488_s24 }
 0x862   : > { %2798 = vadd.xlane.f32.xlu1 %v2797_v55 }
 0x873   : > { %2962 = vrot.lane.b32.xlu1 %v9229_v47, %s8327_s23 }
 0x877   : > { %2966 = vrot.lane.b32.xlu1 %v9223_v2, %s8327_s23 }
 0x879   : > { %v2781_v54 = vpop.xlane.xlu0 %2780 }
 0x87a   : > { %8137 = vrcp.f32 %v2781_v54 }
 0x87b   : > { %2970 = vrot.lane.b32.xlu1 %v9233_v59, %s8327_s23 }
 0x87d   : > { %v2784_v62 = vpop.xlane.xlu1 %2783 }
 0x87e   : > { %8139 = vrcp.f32 %v2784_v62 }
 0x87f   : > { %2974 = vrot.lane.b32.xlu1 %v9219_v34, %s8327_s23 }
 0x881   : > { %v2787_v0 = vpop.xlane.xlu0 %2786  ;;  %v2983_v56 = vpop.permute.xlu1 %2982 }
 0x882   : > { %8141 = vrcp.f32 %v2787_v0 }
 0x883   : > { %3214 = vrot.lane.b32.xlu1 %v9219_v34, %s10488_s24 }
 0x887   : > { %v8138_v53 = vpop.eup %8137 }
 0x888   : > { %v2807_v8 = vmul.f32 %v8138_v53, %v8124_v61 }
 0x88a   : > { %7580 = vmatmul.mubr.msk.f32.vlgmr.msra.gmra.mxu1 %vm2735_vm7, %v2807_v8 }
 0x88b   : > { %v8140_v10 = vpop.eup %8139  ;;  %7601 = vmatpush3.xpose.msk.msra.mxu1 %vm2599_vm5, %v9326_v46  ;;  %7582 = vmatprep.mubr.msk.f32.mxu1 %vm8325_vm4, %v8322_v58  ;;  %v2985_v46 = vpop.permute.xlu0 %2984 }
 0x88c   : > { %7602 = vmatprep.subr.mxu1 %v8322_v58  ;;  %v2808_v13 = vmul.f32 %v8140_v10, %v9329_v44 }
 0x88e   : > { %7583 = vmatmul.mubr.msk.f32.gmra.mxu1 %vm2735_vm7, %v2808_v13 }
 0x88f   : > { %v8142_v20 = vpop.eup %8141  ;;  %7603 = vmatpush3.xpose.msk.msra.mxu1 %vm2599_vm5, %v2987_v52  ;;  %7585 = vmatprep.mubr.msk.f32.mxu1 %vm8325_vm4, %v8322_v58 }
 0x890   : > { %7604 = vmatprep.subr.mxu1 %v8322_v58  ;;  %v2809_v21 = vmul.f32 %v8142_v20, %v9333_v12 }
 0x892   : > { %7586 = vmatmul.mubr.msk.f32.gmra.mxu1 %vm2735_vm7, %v2809_v21 }
 0x893   : > { %7605 = vmatpush3.xpose.msk.msra.mxu1 %vm2599_vm5, %v2985_v46  ;;  %7588 = vmatprep.mubr.msk.f32.mxu1 %vm8325_vm4, %v8322_v58 }
 0x894   : > { %7606 = vmatprep.subr.mxu1 %v8322_v58 }
 0x897   : > { %7607 = vmatpush3.xpose.msk.msra.mxu1 %vm2599_vm5, %v2983_v56 }
 0x898   : > { %7608 = vmatprep.subr.mxu1 %v8322_v58 }
 0x8b2   : > { %v2790_v63 = vpop.xlane.xlu1 %2789 }
 0x8b3   : > { %8143 = vrcp.f32 %v2790_v63 }
 0x8b6   : > { %v2796_v22 = vpop.xlane.xlu0 %2795  ;;  %v2793_v7 = vpop.xlane.xlu1 %2792 }
 0x8b7   : > { %8145 = vrcp.f32 %v2793_v7 }
 0x8b8   : > { %8147 = vrcp.f32 %v2796_v22 }
 0x8ba   : > { %v2981_v61 = vpop.permute.xlu0 %2980  ;;  %v2979_v9 = vpop.permute.xlu1 %2978 }
 0x8bb   : > { %7609 = vmatpush3.xpose.msk.msra.mxu1 %vm2599_vm5, %v2981_v61 }
 0x8bc   : > { %7610 = vmatprep.subr.mxu1 %v8322_v58 }
 0x8be   : > { %v2977_v12 = vpop.permute.xlu0 %2976 }
 0x8bf   : > { %7611 = vmatpush3.xpose.msk.msra.mxu1 %vm2599_vm5, %v2979_v9 }
 0x8c0   : > { %v8144_v44 = vpop.eup %8143  ;;  %7612 = vmatprep.subr.mxu1 %v8322_v58 }
 0x8c1   : > { %v2810_v17 = vmul.f32 %v8144_v44, %v9341_v45 }
 0x8c2   : > { %v2965_v25 = vpop.permute.xlu0 %2964 }
 0x8c3   : > { %7589 = vmatmul.mubr.msk.f32.gmra.mxu1 %vm2735_vm7, %v2810_v17 }
 0x8c4   : > { %7613 = vmatpush3.xpose.msk.msra.mxu1 %vm2599_vm5, %v2977_v12  ;;  %7591 = vmatprep.mubr.msk.f32.mxu1 %vm8325_vm4, %v8322_v58  ;;  %v8146_v3 = vpop.eup %8145 }
 0x8c5   : > { %v2811_v36 = vmul.f32 %v8146_v3, %v9343_v32  ;;  %v8148_v40 = vpop.eup %8147 }
 0x8c6   : > { %v2812_v42 = vmul.f32 %v8148_v40, %v9347_v35  ;;  %v2969_v37 = vpop.permute.xlu0 %2968 }
 0x8c7   : > { %7592 = vmatmul.mubr.msk.f32.gmra.mxu1 %vm2735_vm7, %v2811_v36 }
 0x8c8   : > { %7594 = vmatprep.mubr.msk.f32.mxu1 %vm8325_vm4, %v8322_v58 }
 0x8ca   : > { %v2973_v24 = vpop.permute.xlu0 %2972 }
 0x8cb   : > { %7595 = vmatmul.mubr.msk.f32.gmra.mxu1 %vm2735_vm7, %v2812_v42 }
 0x8cc   : > { %7597 = vmatprep.mubr.msk.f32.mxu1 %vm8325_vm4, %v8322_v58 }
 0x8ce   : > { %v3213_v5 = vpop.permute.xlu0 %3212 }
 0x8eb   : > { %v2799_v57 = vpop.xlane.xlu1 %2798 }
 0x8ec   : > { %8149 = vrcp.f32 %v2799_v57 }
 0x8ef   : > { %v2963_v26 = vpop.permute.xlu1 %2962 }
 0x8f3   : > { %v2967_v27 = vpop.permute.xlu1 %2966 }
 0x8f7   : > { %v2971_v30 = vpop.permute.xlu1 %2970 }
 0x8f9   : > { %v8150_v45 = vpop.eup %8149 }
 0x8fa   : > { %v2813_v32 = vmul.f32 %v8150_v45, %v9367_v4 }
 0x8fb   : > { %v2975_v31 = vpop.permute.xlu1 %2974 }
 0x8fc   : > { %7598 = vmatmul.mubr.msk.f32.gmra.mxu1 %vm2735_vm7, %v2813_v32 }
 0x8fd   : > { %7614 = vmatprep.mubr.msk.f32.mxu1 %vm8325_vm4, %v8322_v58 }
 0x8ff   : > { %v3215_v35 = vpop.permute.xlu1 %3214 }
 0x900   : > { %7615 = vmatmul.mubr.msk.f32.vlgmr.msra.gmra.mxu1 %vm2599_vm5, %v2963_v26  ;;  %7636 = vmatpush3.msk.msra.mxu0 %vm2855_vm6, %v3215_v35 }
 0x901   : > { %7637 = vmatprep.subr.mxu0 %v8322_v58  ;;  %7617 = vmatprep.mubr.msk.f32.mxu1 %vm8325_vm4, %v8322_v58 }
 0x902   : > { %7638 = vmatpush3.msra.mxu0 %v3213_v5 }
 0x903   : > { %7639 = vmatprep.subr.mxu0 %v8322_v58 }
 0x904   : > { %7618 = vmatmul.mubr.msk.f32.gmra.mxu1 %vm2599_vm5, %v2965_v25 }
 0x905   : > { %7620 = vmatprep.mubr.msk.f32.mxu1 %vm8325_vm4, %v8322_v58 }
 0x908   : > { %7621 = vmatmul.mubr.msk.f32.gmra.mxu1 %vm2599_vm5, %v2967_v27 }
 0x909   : > { %7623 = vmatprep.mubr.msk.f32.mxu1 %vm8325_vm4, %v8322_v58 }
 0x90c   : > { %7624 = vmatmul.mubr.msk.f32.gmra.mxu1 %vm2599_vm5, %v2969_v37 }
 0x90d   : > { %7626 = vmatprep.mubr.msk.f32.mxu1 %vm8325_vm4, %v8322_v58 }
 0x910   : > { %7627 = vmatmul.mubr.msk.f32.gmra.mxu1 %vm2599_vm5, %v2971_v30 }
 0x911   : > { %7629 = vmatprep.mubr.msk.f32.mxu1 %vm8325_vm4, %v8322_v58 }
 0x914   : > { %7630 = vmatmul.mubr.msk.f32.gmra.mxu1 %vm2599_vm5, %v2973_v24 }
 0x915   : > { %7632 = vmatprep.mubr.msk.f32.mxu1 %vm8325_vm4, %v8322_v58 }
 0x918   : > { %7633 = vmatmul.mubr.msk.f32.gmra.mxu1 %vm2599_vm5, %v2975_v31 }
 0x94a   : > { %v9444_v38 = vpop.f32.mrf.mxu1 }
 0x94c   : > { %v7581_v29 = vpop.f32.mrf.mxu1 }
 0x94e   : > { %v9446_v43 = vpop.f32.mrf.mxu1 }
 0x94f   : > { %v2958_v4 = vpack.c.bf16 %v9446_v43, %v9444_v38 }
 0x950   : > { %v7584_v55 = vpop.f32.mrf.mxu1 }
 0x952   : > { %v9450_v52 = vpop.f32.mrf.mxu1 }
 0x954   : > { %v7587_v54 = vpop.f32.mrf.mxu1 }
 0x983   : > { %v9452_v62 = vpop.f32.mrf.mxu1 }
 0x984   : > { %v2959_v0 = vpack.c.bf16 %v9452_v62, %v9450_v52 }
 0x985   : > { %v7590_v53 = vpop.f32.mrf.mxu1 }
 0x987   : > { %v9456_v8 = vpop.f32.mrf.mxu1 }
 0x989   : > { %v7593_v10 = vpop.f32.mrf.mxu1 }
 0x98b   : > { %v9458_v13 = vpop.f32.mrf.mxu1 }
 0x98c   : > { %v2960_v20 = vpack.c.bf16 %v9458_v13, %v9456_v8 }
 0x98d   : > { %v7596_v21 = vpop.f32.mrf.mxu1 }
 0x9bc   : > { %v9462_v46 = vpop.f32.mrf.mxu1 }
 0x9be   : > { %v7599_v56 = vpop.f32.mrf.mxu1 }
 0x9c0   : > { %v3084_v63 = vpop.f32.mrf.mxu1 }
 0x9c1   : > { %v3118_v22 = vmul.f32 0.35355338, %v3084_v63 }
 0x9c2   : > { %v7616_v7 = vpop.f32.mrf.mxu1 }
 0x9c3   : > { %v3125_v61 = vsel %vm2735_vm7, %v3118_v22, -inf }
 0x9c4   : > { %3126 = vmax.xlane.f32.xlu0 %v3125_v61  ;;  %v3089_v9 = vpop.f32.mrf.mxu1 }
 0x9c5   : > { %v3119_v44 = vmul.f32 0.35355338, %v3089_v9 }
 0x9c6   : > { %v7619_v17 = vpop.f32.mrf.mxu1 }
 0x9c7   : > { %v3128_v12 = vsel %vm2735_vm7, %v3119_v44, -inf }
 0x9c8   : > { %3129 = vmax.xlane.f32.xlu1 %v3128_v12  ;;  %v3094_v3 = vpop.f32.mrf.mxu1 }
 0x9c9   : > { %v3120_v36 = vmul.f32 0.35355338, %v3094_v3 }
 0x9ca   : > { %v7622_v40 = vpop.f32.mrf.mxu1 }
 0x9cb   : > { %v3131_v42 = vsel %vm2735_vm7, %v3120_v36, -inf }
 0x9cc   : > { %3132 = vmax.xlane.f32.xlu0 %v3131_v42  ;;  %v3099_v57 = vpop.f32.mrf.mxu1 }
 0x9cd   : > { %v3121_v25 = vmul.f32 0.35355338, %v3099_v57 }
 0x9ce   : > { %v7625_v26 = vpop.f32.mrf.mxu1 }
 0x9cf   : > { %v3134_v27 = vsel %vm2735_vm7, %v3121_v25, -inf }
 0x9d0   : > { %3135 = vmax.xlane.f32.xlu0 %v3134_v27  ;;  %v3104_v37 = vpop.f32.mrf.mxu1 }
 0x9d1   : > { %v3122_v30 = vmul.f32 0.35355338, %v3104_v37 }
 0x9d2   : > { %v7628_v45 = vpop.f32.mrf.mxu1 }
 0x9d3   : > { %v3137_v32 = vsel %vm2735_vm7, %v3122_v30, -inf }
 0x9d4   : > { %3138 = vmax.xlane.f32.xlu0 %v3137_v32  ;;  %v3109_v24 = vpop.f32.mrf.mxu1 }
 0x9d5   : > { %v3123_v54 = vmul.f32 0.35355338, %v3109_v24 }
 0x9d6   : > { %v7631_v31 = vpop.f32.mrf.mxu1 }
 0x9d7   : > { %v3140_v53 = vsel %vm2735_vm7, %v3123_v54, -inf }
 0x9d8   : > { %v3114_v35 = vpop.f32.mrf.mxu1 }
 0x9d9   : > { %v9469_v5 = vmul.f32 0.35355338, %v3114_v35  ;;  %3210 = vrot.lane.b32.xlu1 %v9233_v59, %s10488_s24 }
 0x9da   : > { %v7634_v29 = vpop.f32.mrf.mxu1 }
 0x9db   : > { %v3143_v55 = vsel %vm2754_vm8, %v9469_v5, -inf }
 0x9dc   : > { %3144 = vmax.xlane.f32.xlu0 %v3143_v55 }
 0x9f2   : > { %3206 = vrot.lane.b32.xlu0 %v9223_v2, %s10488_s24 }
 0x9fd   : > { %3141 = vmax.xlane.f32.xlu1 %v3140_v53 }
 0xa0e   : > { %3208 = vrot.lane.b32.xlu1 %v9239_v1, %s10488_s24 }
 0xa4d   : > { %v3127_v10 = vpop.xlane.xlu0 %3126 }
 0xa4e   : > { %v3146_v21 = vsub.f32 %v3118_v22, %v3127_v10 }
 0xa50   : > { %v3153_v56 = vmul.f32 1.442695, %v3146_v21 }
 0xa51   : > { %v3130_v63 = vpop.xlane.xlu1 %3129 }
 0xa52   : > { %8151 = vpow2.f32 %v3153_v56  ;;  %v3147_v7 = vsub.f32 %v3119_v44, %v3130_v63 }
 0xa54   : > { %v3155_v61 = vmul.f32 1.442695, %v3147_v7 }
 0xa55   : > { %v3133_v9 = vpop.xlane.xlu0 %3132  ;;  %v3211_v17 = vpop.permute.xlu1 %3210 }
 0xa56   : > { %8153 = vpow2.f32 %v3155_v61  ;;  %v3148_v12 = vsub.f32 %v3120_v36, %v3133_v9  ;;  %7640 = vmatpush3.msra.mxu0 %v3211_v17  ;;  %v6698_v17 = vcombine.low %v9185_v16, %v9185_v16 }
 0xa57   : > { %7641 = vmatprep.subr.mxu0 %v8322_v58 }
 0xa58   : > { %v3157_v3 = vmul.f32 1.442695, %v3148_v12  ;;  %v6693_v12 = vcombine.low %v9190_v18, %v9190_v18 }
 0xa59   : > { %v3136_v40 = vpop.xlane.xlu0 %3135 }
 0xa5a   : > { %8155 = vpow2.f32 %v3157_v3  ;;  %v3149_v42 = vsub.f32 %v3121_v25, %v3136_v40 }
 0xa5c   : > { %v3159_v57 = vmul.f32 1.442695, %v3149_v42 }
 0xa5d   : > { %v3139_v26 = vpop.xlane.xlu0 %3138 }
 0xa5e   : > { %8157 = vpow2.f32 %v3159_v57  ;;  %v3150_v22 = vsub.f32 %v3122_v30, %v3139_v26 }
 0xa5f   : > { %v9481_v27 = vpop.eup %8151 }
 0xa60   : > { %v3161_v37 = vmul.f32 1.442695, %v3150_v22  ;;  %v3167_v44 = vsel %vm2735_vm7, %v9481_v27, 0.0 }
 0xa61   : > { %3168 = vadd.xlane.f32.xlu1 %v3167_v44 }
 0xa62   : > { %8159 = vpow2.f32 %v3161_v37 }
 0xa63   : > { %v9485_v36 = vpop.eup %8153 }
 0xa64   : > { %v3170_v45 = vsel %vm2735_vm7, %v9485_v36, 0.0 }
 0xa65   : > { %3171 = vadd.xlane.f32.xlu0 %v3170_v45  ;;  %v3145_v29 = vpop.xlane.xlu0 %3144 }
 0xa66   : > { %v3152_v56 = vsub.f32 %v9469_v5, %v3145_v29 }
 0xa67   : > { %v9489_v32 = vpop.eup %8155 }
 0xa68   : > { %v3173_v25 = vsel %vm2735_vm7, %v9489_v32, 0.0  ;;  %v3165_v7 = vmul.f32 1.442695, %v3152_v56 }
 0xa69   : > { %3174 = vadd.xlane.f32.xlu1 %v3173_v25  ;;  %v3207_v21 = vpop.permute.xlu0 %3206 }
 0xa6b   : > { %v9493_v30 = vpop.eup %8157 }
 0xa6c   : > { %v3176_v24 = vsel %vm2735_vm7, %v9493_v30, 0.0 }
 0xa6d   : > { %3177 = vadd.xlane.f32.xlu0 %v3176_v24 }
 0xa6f   : > { %v9497_v31 = vpop.eup %8159 }
 0xa70   : > { %v3179_v35 = vsel %vm2735_vm7, %v9497_v31, 0.0 }
 0xa71   : > { %3180 = vadd.xlane.f32.xlu1 %v3179_v35 }
 0xa82   : > { %3202 = vrot.lane.b32.xlu1 %v9229_v47, %s10488_s24 }
 0xa83   : > { %3204 = vrot.lane.b32.xlu0 %v9243_v39, %s10488_s24 }
 0xa86   : > { %3540 = vrot.lane.b32.xlu1 %v9219_v34, %s8329_s25  ;;  %v3142_v55 = vpop.xlane.xlu1 %3141 }
 0xa87   : > { %v3151_v53 = vsub.f32 %v3123_v54, %v3142_v55 }
 0xa89   : > { %v3163_v63 = vmul.f32 1.442695, %v3151_v53 }
 0xa8a   : > { %3538 = vrot.lane.b32.xlu1 %v9225_v15, %s8329_s25  ;;  %v3209_v10 = vpop.permute.xlu1 %3208 }
 0xa8b   : > { %7642 = vmatpush3.msra.mxu0 %v3209_v10  ;;  %8161 = vpow2.f32 %v3163_v63 }
 0xa8c   : > { %7643 = vmatprep.subr.mxu0 %v8322_v58  ;;  %8163 = vpow2.f32 %v3165_v7 }
 0xa8d   : > { %7644 = vmatpush3.msra.mxu0 %v3207_v21 }
 0xa8e   : > { %3536 = vrot.lane.b32.xlu1 %v9233_v59, %s8329_s25  ;;  %7645 = vmatprep.subr.mxu0 %v8322_v58 }
 0xa92   : > { %3534 = vrot.lane.b32.xlu1 %v9239_v1, %s8329_s25 }
 0xa96   : > { %3530 = vrot.lane.b32.xlu1 %v9243_v39, %s8329_s25 }
 0xa98   : > { %v9520_v5 = vpop.eup %8161 }
 0xa99   : > { %v3182_v54 = vsel %vm2735_vm7, %v9520_v5, 0.0  ;;  %v9526_v61 = vpop.eup %8163 }
 0xa9a   : > { %3514 = vrot.lane.b32.xlu1 %v9229_v47, %s10486_s26  ;;  %v3185_v9 = vsel %vm2754_vm8, %v9526_v61, 0.0 }
 0xa9e   : > { %3518 = vrot.lane.b32.xlu1 %v9223_v2, %s10486_s26 }
 0xaa2   : > { %3522 = vrot.lane.b32.xlu1 %v9233_v59, %s10486_s26  ;;  %3183 = vadd.xlane.f32.xlu0 %v3182_v54 }
 0xaa6   : > { %3526 = vrot.lane.b32.xlu1 %v9219_v34, %s10486_s26  ;;  %3186 = vadd.xlane.f32.xlu0 %v3185_v9 }
 0xaaa   : > { %3433 = vrot.lane.b32.xlu1 %v6698_v17, %s8331_s27 }
 0xabc   : > { %3350 = vrot.lane.b32.xlu0 %v6693_v12, %s8331_s27 }
 0xac0   : > { %3532 = vrot.lane.b32.xlu0 %v9223_v2, %s8329_s25 }
 0xac4   : > { %3528 = vrot.lane.b32.xlu0 %v9229_v47, %s8329_s25 }
 0xac8   : > { %3516 = vrot.lane.b32.xlu0 %v9243_v39, %s10486_s26 }
 0xacc   : > { %3520 = vrot.lane.b32.xlu0 %v9239_v1, %s10486_s26 }
 0xad0   : > { %3524 = vrot.lane.b32.xlu0 %v9225_v15, %s10486_s26 }
 0xad4   : > { %3766 = vrot.lane.b32.xlu0 %v9219_v34, %s10485_s28 }
 0xad8   : > { %3764 = vrot.lane.b32.xlu0 %v9225_v15, %s10485_s28 }
 0xaea   : > { %v3169_v16 = vpop.xlane.xlu1 %3168 }
 0xaeb   : > { %8165 = vrcp.f32 %v3169_v16 }
 0xaee   : > { %v3172_v18 = vpop.xlane.xlu0 %3171 }
 0xaef   : > { %8167 = vrcp.f32 %v3172_v18 }
 0xaf2   : > { %v3175_v3 = vpop.xlane.xlu1 %3174 }
 0xaf3   : > { %8169 = vrcp.f32 %v3175_v3 }
 0xaf6   : > { %v3178_v40 = vpop.xlane.xlu0 %3177 }
 0xaf7   : > { %8171 = vrcp.f32 %v3178_v40 }
 0xaf8   : > { %v8166_v26 = vpop.eup %8165 }
 0xaf9   : > { %v3195_v22 = vmul.f32 %v8166_v26, %v9481_v27 }
 0xafa   : > { %v3205_v42 = vpop.permute.xlu0 %3204  ;;  %v3181_v57 = vpop.xlane.xlu1 %3180 }
 0xafb   : > { %7646 = vmatpush3.msra.mxu0 %v3205_v42  ;;  %8173 = vrcp.f32 %v3181_v57 }
 0xafc   : > { %7647 = vmatprep.subr.mxu0 %v8322_v58  ;;  %v8168_v44 = vpop.eup %8167 }
 0xafd   : > { %v3196_v25 = vmul.f32 %v8168_v44, %v9485_v36 }
 0xafe   : > { %v3203_v37 = vpop.permute.xlu1 %3202 }
 0xaff   : > { %7648 = vmatpush3.msra.mxu0 %v3203_v37 }
 0xb00   : > { %7650 = vmatmul.mubr.msk.f32.vlgmr.msra.gmra.mxu0 %vm2735_vm7, %v3195_v22  ;;  %v8170_v24 = vpop.eup %8169 }
 0xb01   : > { %7652 = vmatprep.mubr.msk.f32.mxu0 %vm8325_vm4, %v8322_v58  ;;  %v3197_v35 = vmul.f32 %v8170_v24, %v9489_v32 }
 0xb02   : > { %v9559_v45 = vpop.permute.xlu1 %3540 }
 0xb04   : > { %7653 = vmatmul.mubr.msk.f32.gmra.mxu0 %vm2735_vm7, %v3196_v25  ;;  %v8172_v29 = vpop.eup %8171 }
 0xb05   : > { %7655 = vmatprep.mubr.msk.f32.mxu0 %vm8325_vm4, %v8322_v58  ;;  %v3198_v36 = vmul.f32 %v8172_v29, %v9493_v30 }
 0xb06   : > { %v9565_v27 = vpop.permute.xlu1 %3538 }
 0xb08   : > { %7656 = vmatmul.mubr.msk.f32.gmra.mxu0 %vm2735_vm7, %v3197_v35  ;;  %v8174_v53 = vpop.eup %8173 }
 0xb09   : > { %7658 = vmatprep.mubr.msk.f32.mxu0 %vm8325_vm4, %v8322_v58  ;;  %v3199_v32 = vmul.f32 %v8174_v53, %v9497_v31 }
 0xb0a   : > { %v9571_v55 = vpop.permute.xlu1 %3536 }
 0xb0c   : > { %7659 = vmatmul.mubr.msk.f32.gmra.mxu0 %vm2735_vm7, %v3198_v36 }
 0xb0d   : > { %7661 = vmatprep.mubr.msk.f32.mxu0 %vm8325_vm4, %v8322_v58 }
 0xb0e   : > { %v9577_v10 = vpop.permute.xlu1 %3534 }
 0xb10   : > { %7662 = vmatmul.mubr.msk.f32.gmra.mxu0 %vm2735_vm7, %v3199_v32 }
 0xb11   : > { %7664 = vmatprep.mubr.msk.f32.mxu0 %vm8325_vm4, %v8322_v58 }
 0xb12   : > { %v9583_v21 = vpop.permute.xlu1 %3530 }
 0xb16   : > { %v9585_v56 = vpop.permute.xlu1 %3514 }
 0xb1a   : > { %v9587_v30 = vpop.permute.xlu1 %3518 }
 0xb1e   : > { %v9589_v63 = vpop.permute.xlu1 %3522 }
 0xb22   : > { %v9591_v7 = vpop.permute.xlu1 %3526 }
 0xb26   : > { %v3434_v54 = vpop.permute.xlu1 %3433 }
 0xb27   : > { %8020 = vmatprep.subr.msk.bf16.mxu0 %vm3364_vm9, %v3434_v54  ;;  %v3448_v31 = vsel %vm3364_vm9, %v3434_v54, 0 }
 0xb28   : > { %7681 = vmatpush3.bf16.msra.mxu0 %v3448_v31 }
 0xb29   : > { %7725 = vmatprep.subr.mxu0 %v8322_v58 }
 0xb2b   : > { %v3184_v9 = vpop.xlane.xlu0 %3183 }
 0xb2c   : > { %8175 = vrcp.f32 %v3184_v9 }
 0xb2f   : > { %v3187_v17 = vpop.xlane.xlu0 %3186 }
 0xb30   : > { %8177 = vrcp.f32 %v3187_v17 }
 0xb33   : > { %v3351_v12 = vpop.permute.xlu0 %3350 }
 0xb34   : > { %8019 = vmatprep.subr.msk.bf16.mxu1 %vm3364_vm9, %v3351_v12  ;;  %v3366_v38 = vsel %vm3364_vm9, %v3351_v12, 0 }
 0xb35   : > { %7671 = vmatpush3.bf16.msra.mxu1 %v3366_v38 }
 0xb36   : > { %7690 = vmatprep.subr.mxu1 %v8322_v58 }
 0xb37   : > { %v3533_v16 = vpop.permute.xlu0 %3532 }
 0xb39   : > { %v8176_v18 = vpop.eup %8175 }
 0xb3a   : > { %v3200_v3 = vmul.f32 %v8176_v18, %v9520_v5 }
 0xb3b   : > { %v3529_v40 = vpop.permute.xlu0 %3528 }
 0xb3c   : > { %7665 = vmatmul.mubr.msk.f32.gmra.mxu0 %vm2735_vm7, %v3200_v3 }
 0xb3d   : > { %v8178_v42 = vpop.eup %8177  ;;  %7667 = vmatprep.mubr.msk.f32.mxu0 %vm8325_vm4, %v8322_v58 }
 0xb3e   : > { %v3201_v57 = vmul.f32 %v8178_v42, %v9526_v61  ;;  %v2961_v61 = vpack.c.bf16 %v9462_v46, %v9462_v46 }
 0xb3f   : > { %v9602_v26 = vpop.permute.xlu0 %3516 }
 0xb40   : > { %7668 = vmatmul.mubr.msk.f32.gmra.mxu0 %vm2735_vm7, %v3201_v57 }
 0xb41   : > { %7682 = vmatprep.mubr.msk.bf16.mxu0 %vm2599_vm5, %v2958_v4 }
 0xb43   : > { %v9609_v22 = vpop.permute.xlu0 %3520 }
 0xb44   : > { %7683 = vmatmul.mubr.msk.bf16.vlgmr.msra.gmra.mxu0 %vm2599_vm5, %v2959_v0 }
 0xb45   : > { %7686 = vmatprep.mubr.msk.bf16.mxu0 %vm2599_vm5, %v2960_v20 }
 0xb47   : > { %v9619_v5 = vpop.permute.xlu0 %3524 }
 0xb4b   : > { %v3767_v43 = vpop.permute.xlu0 %3766 }
 0xb4c   : > { %7687 = vmatmul.mubr.msk.bf16.gmra.mxu0 %vm2599_vm5, %v2961_v61 }
 0xb4d   : > { %7726 = vmatpush3.msk.msra.mxu0 %vm2855_vm6, %v3767_v43  ;;  %7739 = vmatprep.mubr.msk.f32.mxu0 %vm8325_vm4, %v8322_v58 }
 0xb4e   : > { %7727 = vmatprep.subr.mxu0 %v8322_v58 }
 0xb4f   : > { %v3765_v4 = vpop.permute.xlu0 %3764 }
 0xb50   : > { %7728 = vmatpush3.msra.mxu0 %v3765_v4 }
 0xb51   : > { %7729 = vmatprep.subr.mxu0 %v8322_v58 }
 0xbc0   : > { %v3311_v52 = vpop.f32.mrf.mxu0 }
 0xbc2   : > { %v7651_v62 = vpop.f32.mrf.mxu0 }
 0xbc4   : > { %v3316_v0 = vpop.f32.mrf.mxu0 }
 0xbc5   : > { %v3345_v8 = vpack.c.bf16 %v3316_v0, %v3311_v52 }
 0xbc6   : > { %v7654_v13 = vpop.f32.mrf.mxu0 }
 0xbc7   : > { %7672 = vmatprep.mubr.msk.bf16.mxu1 %vm2599_vm5, %v3345_v8 }
 0xbc8   : > { %v3321_v20 = vpop.f32.mrf.mxu0 }
 0xbca   : > { %v7657_v46 = vpop.f32.mrf.mxu0 }
 0xbcc   : > { %v3326_v37 = vpop.f32.mrf.mxu0 }
 0xbcd   : > { %v3346_v44 = vpack.c.bf16 %v3326_v37, %v3321_v20 }
 0xbce   : > { %v7660_v25 = vpop.f32.mrf.mxu0 }
 0xbcf   : > { %7673 = vmatmul.mubr.msk.bf16.vlgmr.msra.gmra.mxu1 %vm2599_vm5, %v3346_v44 }
 0xbd0   : > { %7691 = vmatpush3.xpose.msk.msra.mxu1 %vm2599_vm5, %v9559_v45  ;;  %v3331_v24 = vpop.f32.mrf.mxu0 }
 0xbd1   : > { %7692 = vmatprep.subr.mxu1 %v8322_v58 }
 0xbd2   : > { %v7663_v35 = vpop.f32.mrf.mxu0 }
 0xbd4   : > { %7693 = vmatpush3.xpose.msk.msra.mxu1 %vm2599_vm5, %v9565_v27 }
 0xbd5   : > { %7694 = vmatprep.subr.mxu1 %v8322_v58 }
 0xbd8   : > { %7695 = vmatpush3.xpose.msk.msra.mxu1 %vm2599_vm5, %v9571_v55 }
 0xbd9   : > { %7696 = vmatprep.subr.mxu1 %v8322_v58 }
 0xbdc   : > { %7697 = vmatpush3.xpose.msk.msra.mxu1 %vm2599_vm5, %v9577_v10 }
 0xbdd   : > { %7698 = vmatprep.subr.mxu1 %v8322_v58 }
 0xbe0   : > { %7699 = vmatpush3.xpose.msk.msra.mxu1 %vm2599_vm5, %v3533_v16 }
 0xbe1   : > { %7700 = vmatprep.subr.mxu1 %v8322_v58 }
 0xbe4   : > { %7701 = vmatpush3.xpose.msk.msra.mxu1 %vm2599_vm5, %v9583_v21 }
 0xbe5   : > { %7702 = vmatprep.subr.mxu1 %v8322_v58 }
 0xbe8   : > { %7703 = vmatpush3.xpose.msk.msra.mxu1 %vm2599_vm5, %v3529_v40 }
 0xbfc   : > { %v3336_v45 = vpop.f32.mrf.mxu0 }
 0xbfd   : > { %v3347_v27 = vpack.c.bf16 %v3336_v45, %v3331_v24 }
 0xbfe   : > { %v7666_v29 = vpop.f32.mrf.mxu0 }
 0xbff   : > { %7676 = vmatprep.mubr.msk.bf16.mxu1 %vm2599_vm5, %v3347_v27 }
 0xc00   : > { %v3341_v55 = vpop.f32.mrf.mxu0 }
 0xc01   : > { %v3348_v36 = vpack.c.bf16 %v3341_v55, %v3341_v55 }
 0xc02   : > { %v7669_v53 = vpop.f32.mrf.mxu0 }
 0xc03   : > { %7677 = vmatmul.mubr.msk.bf16.gmra.mxu1 %vm2599_vm5, %v3348_v36 }
 0xc04   : > { %v9653_v10 = vpop.f32.mrf.mxu0  ;;  %7704 = vmatprep.mubr.msk.f32.mxu1 %vm8325_vm4, %v8322_v58 }
 0xc06   : > { %v9657_v32 = vpop.f32.mrf.mxu0 }
 0xc08   : > { %v9659_v21 = vpop.f32.mrf.mxu0 }
 0xc0a   : > { %v9661_v54 = vpop.f32.mrf.mxu0 }
 0xc0b   : > { %7705 = vmatmul.mubr.msk.f32.vlgmr.msra.gmra.mxu1 %vm2599_vm5, %v9585_v56 }
 0xc0c   : > { %v9665_v31 = vpop.f32.mrf.mxu0  ;;  %7707 = vmatprep.mubr.msk.f32.mxu1 %vm8325_vm4, %v8322_v58 }
 0xc0e   : > { %v9669_v9 = vpop.f32.mrf.mxu0 }
 0xc0f   : > { %7708 = vmatmul.mubr.msk.f32.gmra.mxu1 %vm2599_vm5, %v9602_v26 }
 0xc10   : > { %v7689_v17 = vpop.f32.mrf.mxu0  ;;  %7710 = vmatprep.mubr.msk.f32.mxu1 %vm8325_vm4, %v8322_v58 }
 0xc13   : > { %7711 = vmatmul.mubr.msk.f32.gmra.mxu1 %vm2599_vm5, %v9587_v30 }
 0xc14   : > { %7713 = vmatprep.mubr.msk.f32.mxu1 %vm8325_vm4, %v8322_v58 }
 0xc17   : > { %7714 = vmatmul.mubr.msk.f32.gmra.mxu1 %vm2599_vm5, %v9609_v22 }
 0xc18   : > { %7716 = vmatprep.mubr.msk.f32.mxu1 %vm8325_vm4, %v8322_v58 }
 0xc1b   : > { %7717 = vmatmul.mubr.msk.f32.gmra.mxu1 %vm2599_vm5, %v9589_v63 }
 0xc1c   : > { %7719 = vmatprep.mubr.msk.f32.mxu1 %vm8325_vm4, %v8322_v58 }
 0xc1f   : > { %7720 = vmatmul.mubr.msk.f32.gmra.mxu1 %vm2599_vm5, %v9619_v5 }
 0xc20   : > { %7722 = vmatprep.mubr.msk.f32.mxu1 %vm8325_vm4, %v8322_v58 }
 0xc23   : > { %7723 = vmatmul.mubr.msk.f32.gmra.mxu1 %vm2599_vm5, %v9591_v7 }
 0xc8f   : > { %v9693_v56 = vpop.f32.mrf.mxu1 }
 0xc91   : > { %v9695_v30 = vpop.f32.mrf.mxu1 }
 0xc93   : > { %v9697_v12 = vpop.f32.mrf.mxu1 }
 0xc95   : > { %v9699_v16 = vpop.f32.mrf.mxu1 }
 0xcc3   : > { %v9701_v63 = vpop.f32.mrf.mxu1 }
 0xcc5   : > { %v9703_v18 = vpop.f32.mrf.mxu1 }
 0xcc7   : > { %v7679_v3 = vpop.f32.mrf.mxu1 }
 0xcc9   : > { %v9705_v40 = vpop.f32.mrf.mxu1 }
 0xccb   : > { %v3636_v42 = vpop.f32.mrf.mxu1 }
 0xccc   : > { %v3670_v57 = vmul.f32 0.35355338, %v3636_v42 }
 0xccd   : > { %v7706_v26 = vpop.f32.mrf.mxu1 }
 0xcce   : > { %v3677_v7 = vsel %vm2735_vm7, %v3670_v57, -inf }
 0xccf   : > { %3678 = vmax.xlane.f32.xlu0 %v3677_v7  ;;  %v3641_v22 = vpop.f32.mrf.mxu1 }
 0xcd0   : > { %v3671_v5 = vmul.f32 0.35355338, %v3641_v22 }
 0xcd1   : > { %v7709_v61 = vpop.f32.mrf.mxu1 }
 0xcd2   : > { %v3680_v38 = vsel %vm2735_vm7, %v3671_v5, -inf }
 0xcd3   : > { %3681 = vmax.xlane.f32.xlu1 %v3680_v38  ;;  %v3646_v43 = vpop.f32.mrf.mxu1 }
 0xcd4   : > { %v3672_v4 = vmul.f32 0.35355338, %v3646_v43 }
 0xcd5   : > { %v7712_v52 = vpop.f32.mrf.mxu1 }
 0xcd6   : > { %v3683_v62 = vsel %vm2735_vm7, %v3672_v4, -inf }
 0xcd7   : > { %3684 = vmax.xlane.f32.xlu0 %v3683_v62  ;;  %v3651_v0 = vpop.f32.mrf.mxu1 }
 0xcd8   : > { %v3673_v8 = vmul.f32 0.35355338, %v3651_v0 }
 0xcd9   : > { %v7715_v13 = vpop.f32.mrf.mxu1 }
 0xcda   : > { %v3686_v20 = vsel %vm2735_vm7, %v3673_v8, -inf }
 0xcdb   : > { %3687 = vmax.xlane.f32.xlu0 %v3686_v20  ;;  %v3656_v46 = vpop.f32.mrf.mxu1 }
 0xcdc   : > { %v9711_v37 = vmul.f32 0.35355338, %v3656_v46 }
 0xcdd   : > { %v7718_v44 = vpop.f32.mrf.mxu1 }
 0xcde   : > { %v3689_v25 = vsel %vm2735_vm7, %v9711_v37, -inf }
 0xcdf   : > { %3690 = vmax.xlane.f32.xlu0 %v3689_v25  ;;  %v3661_v24 = vpop.f32.mrf.mxu1 }
 0xce0   : > { %v9715_v35 = vmul.f32 0.35355338, %v3661_v24 }
 0xce1   : > { %v7721_v45 = vpop.f32.mrf.mxu1 }
 0xce2   : > { %v3692_v27 = vsel %vm2735_vm7, %v9715_v35, -inf }
 0xce3   : > { %3693 = vmax.xlane.f32.xlu1 %v3692_v27  ;;  %v3666_v29 = vpop.f32.mrf.mxu1 }
 0xce4   : > { %v9719_v55 = vmul.f32 0.35355338, %v3666_v29 }
 0xce5   : > { %v7724_v36 = vpop.f32.mrf.mxu1 }
 0xce6   : > { %v3695_v53 = vsel %vm2754_vm8, %v9719_v55, -inf }
 0xce7   : > { %3696 = vmax.xlane.f32.xlu0 %v3695_v53 }
 0xcf4   : > { %3760 = vrot.lane.b32.xlu1 %v9239_v1, %s10485_s28 }
 0xcf8   : > { %3758 = vrot.lane.b32.xlu1 %v9223_v2, %s10485_s28 }
 0xcfc   : > { %3756 = vrot.lane.b32.xlu1 %v9243_v39, %s10485_s28 }
 0xcfd   : > { %3762 = vrot.lane.b32.xlu0 %v9233_v59, %s10485_s28 }
 0xd58   : > { %v3679_v17 = vpop.xlane.xlu0 %3678 }
 0xd59   : > { %v3698_v3 = vsub.f32 %v3670_v57, %v3679_v17 }
 0xd5b   : > { %v3705_v42 = vmul.f32 1.442695, %v3698_v3 }
 0xd5c   : > { %v3682_v26 = vpop.xlane.xlu1 %3681 }
 0xd5d   : > { %8179 = vpow2.f32 %v3705_v42  ;;  %v3699_v7 = vsub.f32 %v3671_v5, %v3682_v26 }
 0xd5f   : > { %v3707_v22 = vmul.f32 1.442695, %v3699_v7 }
 0xd60   : > { %v3685_v61 = vpop.xlane.xlu0 %3684 }
 0xd61   : > { %8181 = vpow2.f32 %v3707_v22  ;;  %v3700_v38 = vsub.f32 %v3672_v4, %v3685_v61 }
 0xd63   : > { %v3709_v43 = vmul.f32 1.442695, %v3700_v38 }
 0xd64   : > { %v3688_v52 = vpop.xlane.xlu0 %3687 }
 0xd65   : > { %8183 = vpow2.f32 %v3709_v43  ;;  %v3701_v62 = vsub.f32 %v3673_v8, %v3688_v52 }
 0xd67   : > { %v3711_v0 = vmul.f32 1.442695, %v3701_v62 }
 0xd68   : > { %v3691_v57 = vpop.xlane.xlu0 %3690 }
 0xd69   : > { %8185 = vpow2.f32 %v3711_v0  ;;  %v3702_v3 = vsub.f32 %v9711_v37, %v3691_v57 }
 0xd6a   : > { %v9731_v13 = vpop.eup %8179 }
 0xd6b   : > { %v3719_v20 = vsel %vm2735_vm7, %v9731_v13, 0.0  ;;  %v3713_v7 = vmul.f32 1.442695, %v3702_v3 }
 0xd6c   : > { %3720 = vadd.xlane.f32.xlu1 %v3719_v20  ;;  %v3694_v46 = vpop.xlane.xlu1 %3693 }
 0xd6d   : > { %v3703_v17 = vsub.f32 %v9715_v35, %v3694_v46 }
 0xd6e   : > { %v9735_v44 = vpop.eup %8181 }
 0xd6f   : > { %v3722_v5 = vsel %vm2735_vm7, %v9735_v44, 0.0  ;;  %v3715_v42 = vmul.f32 1.442695, %v3703_v17 }
 0xd70   : > { %v3697_v4 = vpop.xlane.xlu0 %3696  ;;  %3723 = vadd.xlane.f32.xlu0 %v3722_v5  ;;  %v3761_v25 = vpop.permute.xlu1 %3760 }
 0xd71   : > { %v3704_v26 = vsub.f32 %v9719_v55, %v3697_v4  ;;  %8187 = vpow2.f32 %v3715_v42 }
 0xd72   : > { %v9739_v24 = vpop.eup %8183  ;;  %8189 = vpow2.f32 %v3713_v7 }
 0xd73   : > { %v3725_v8 = vsel %vm2735_vm7, %v9739_v24, 0.0  ;;  %v3717_v22 = vmul.f32 1.442695, %v3704_v26 }
 0xd74   : > { %v3763_v45 = vpop.permute.xlu0 %3762  ;;  %3726 = vadd.xlane.f32.xlu0 %v3725_v8  ;;  %v3759_v27 = vpop.permute.xlu1 %3758 }
 0xd75   : > { %7730 = vmatpush3.msra.mxu0 %v3763_v45  ;;  %8191 = vpow2.f32 %v3717_v22 }
 0xd76   : > { %v9743_v29 = vpop.eup %8185  ;;  %7731 = vmatprep.subr.mxu0 %v8322_v58 }
 0xd77   : > { %7732 = vmatpush3.msra.mxu0 %v3761_v25  ;;  %v3728_v36 = vsel %vm2735_vm7, %v9743_v29, 0.0 }
 0xd78   : > { %3729 = vadd.xlane.f32.xlu0 %v3728_v36  ;;  %7733 = vmatprep.subr.mxu0 %v8322_v58  ;;  %v3757_v53 = vpop.permute.xlu1 %3756 }
 0xd79   : > { %7734 = vmatpush3.msra.mxu0 %v3759_v27 }
 0xd7a   : > { %7735 = vmatprep.subr.mxu0 %v8322_v58 }
 0xd7b   : > { %7736 = vmatpush3.msra.mxu0 %v3757_v53 }
 0xd7c   : > { %7737 = vmatprep.subr.mxu0 %v8322_v58 }
 0xd7d   : > { %4016 = vrot.lane.b32.xlu1 %v9219_v34, %s10484_s15 }
 0xd7e   : > { %v9766_v61 = vpop.eup %8187 }
 0xd7f   : > { %v9768_v38 = vpop.eup %8189  ;;  %v3734_v43 = vsel %vm2735_vm7, %v9766_v61, 0.0 }
 0xd80   : > { %v3731_v37 = vsel %vm2735_vm7, %v9768_v38, 0.0 }
 0xd81   : > { %4014 = vrot.lane.b32.xlu1 %v9225_v15, %s10484_s15 }
 0xd82   : > { %v9772_v52 = vpop.eup %8191 }
 0xd83   : > { %v3737_v35 = vsel %vm2754_vm8, %v9772_v52, 0.0 }
 0xd85   : > { %4012 = vrot.lane.b32.xlu1 %v9233_v59, %s10484_s15 }
 0xd89   : > { %4010 = vrot.lane.b32.xlu1 %v9239_v1, %s10484_s15 }
 0xd8d   : > { %4008 = vrot.lane.b32.xlu1 %v9223_v2, %s10484_s15 }
 0xd8e   : > { %3754 = vrot.lane.b32.xlu0 %v9229_v47, %s10485_s28  ;;  %s491_s28 = scalar_lea.vmem %s10481_s14, %s10498_s30 }
 0xdad   : > { %3735 = vadd.xlane.f32.xlu0 %v3734_v43 }
 0xdb1   : > { %3732 = vadd.xlane.f32.xlu1 %v3731_v37  ;;  %3738 = vadd.xlane.f32.xlu0 %v3737_v35 }
 0xdc2   : > { %4006 = vrot.lane.b32.xlu1 %v9243_v39, %s10484_s15 }
 0xdc6   : > { %3990 = vrot.lane.b32.xlu1 %v9229_v47, %s10483_s16 }
 0xdc7   : > { %4004 = vrot.lane.b32.xlu0 %v9229_v47, %s10484_s15 }
 0xdca   : > { %3994 = vrot.lane.b32.xlu1 %v9223_v2, %s10483_s16 }
 0xdcb   : > { %3992 = vrot.lane.b32.xlu0 %v9243_v39, %s10483_s16 }
 0xdce   : > { %3998 = vrot.lane.b32.xlu1 %v9233_v59, %s10483_s16 }
 0xdcf   : > { %3996 = vrot.lane.b32.xlu0 %v9239_v1, %s10483_s16 }
 0xdd2   : > { %4002 = vrot.lane.b32.xlu1 %v9219_v34, %s10483_s16 }
 0xdd3   : > { %4000 = vrot.lane.b32.xlu0 %v9225_v15, %s10483_s16  ;;  %s485_s16 = scalar_lea.vmem %s10468_s1, %s6481_s17 }
 0xdf5   : > { %v3721_v55 = vpop.xlane.xlu1 %3720 }
 0xdf6   : > { %8193 = vrcp.f32 %v3721_v55 }
 0xdf9   : > { %v3724_v62 = vpop.xlane.xlu0 %3723  ;;  %v4017_v20 = vpop.permute.xlu1 %4016 }
 0xdfa   : > { %8195 = vrcp.f32 %v3724_v62 }
 0xdfd   : > { %v3727_v0 = vpop.xlane.xlu0 %3726  ;;  %v4015_v4 = vpop.permute.xlu1 %4014 }
 0xdfe   : > { %8197 = vrcp.f32 %v3727_v0 }
 0xe01   : > { %v3730_v57 = vpop.xlane.xlu0 %3729  ;;  %v4013_v36 = vpop.permute.xlu1 %4012 }
 0xe02   : > { %8199 = vrcp.f32 %v3730_v57 }
 0xe03   : > { %v8194_v46 = vpop.eup %8193 }
 0xe04   : > { %v3747_v5 = vmul.f32 %v8194_v46, %v9731_v13 }
 0xe05   : > { %v3755_v25 = vpop.permute.xlu0 %3754  ;;  %v4011_v17 = vpop.permute.xlu1 %4010 }
 0xe06   : > { %7738 = vmatpush3.msra.mxu0 %v3755_v25 }
 0xe07   : > { %v8196_v8 = vpop.eup %8195  ;;  %7740 = vmatmul.mubr.msk.f32.vlgmr.msra.gmra.mxu0 %vm2735_vm7, %v3747_v5  ;;  %7770 = vmatprep.subr.mxu0 %v8322_v58  ;;  %v9857_v5 = vpop.f32.mrf.mxu0 }
 0xe08   : > { %7771 = vmatpush3.xpose.msk.msra.mxu0 %vm2599_vm5, %v4017_v20  ;;  %7742 = vmatprep.mubr.msk.f32.mxu0 %vm8325_vm4, %v8322_v58  ;;  %v3748_v45 = vmul.f32 %v8196_v8, %v9735_v44 }
 0xe09   : > { %7772 = vmatprep.subr.mxu0 %v8322_v58 }
 0xe0b   : > { %v8198_v27 = vpop.eup %8197  ;;  %7743 = vmatmul.mubr.msk.f32.gmra.mxu0 %vm2735_vm7, %v3748_v45 }
 0xe0c   : > { %7773 = vmatpush3.xpose.msk.msra.mxu0 %vm2599_vm5, %v4015_v4  ;;  %7745 = vmatprep.mubr.msk.f32.mxu0 %vm8325_vm4, %v8322_v58  ;;  %v3749_v13 = vmul.f32 %v8198_v27, %v9739_v24  ;;  %v4009_v24 = vpop.permute.xlu1 %4008 }
 0xe0d   : > { %7774 = vmatprep.subr.mxu0 %v8322_v58 }
 0xe0f   : > { %v8200_v53 = vpop.eup %8199  ;;  %7746 = vmatmul.mubr.msk.f32.gmra.mxu0 %vm2735_vm7, %v3749_v13 }
 0xe10   : > { %7775 = vmatpush3.xpose.msk.msra.mxu0 %vm2599_vm5, %v4013_v36  ;;  %7748 = vmatprep.mubr.msk.f32.mxu0 %vm8325_vm4, %v8322_v58  ;;  %v3750_v44 = vmul.f32 %v8200_v53, %v9743_v29 }
 0xe11   : > { %7776 = vmatprep.subr.mxu0 %v8322_v58 }
 0xe13   : > { %7749 = vmatmul.mubr.msk.f32.gmra.mxu0 %vm2735_vm7, %v3750_v44 }
 0xe14   : > { %7777 = vmatpush3.xpose.msk.msra.mxu0 %vm2599_vm5, %v4011_v17  ;;  %7751 = vmatprep.mubr.msk.f32.mxu0 %vm8325_vm4, %v8322_v58 }
 0xe15   : > { %7778 = vmatprep.subr.mxu0 %v8322_v58 }
 0xe18   : > { %7779 = vmatpush3.xpose.msk.msra.mxu0 %vm2599_vm5, %v4009_v24 }
 0xe19   : > { %7780 = vmatprep.subr.mxu0 %v8322_v58 }
 0xe36   : > { %v3736_v3 = vpop.xlane.xlu0 %3735 }
 0xe3a   : > { %v3733_v42 = vpop.xlane.xlu1 %3732  ;;  %v3739_v29 = vpop.xlane.xlu0 %3738 }
 0xe3b   : > { %8201 = vrcp.f32 %v3733_v42 }
 0xe3c   : > { %8203 = vrcp.f32 %v3736_v3 }
 0xe3d   : > { %8205 = vrcp.f32 %v3739_v29 }
 0xe3e   : > { %v4007_v26 = vpop.permute.xlu1 %4006  ;;  %v4005_v7 = vpop.permute.xlu0 %4004 }
 0xe3f   : > { %7781 = vmatpush3.xpose.msk.msra.mxu0 %vm2599_vm5, %v4007_v26 }
 0xe40   : > { %7782 = vmatprep.subr.mxu0 %v8322_v58 }
 0xe43   : > { %7783 = vmatpush3.xpose.msk.msra.mxu0 %vm2599_vm5, %v4005_v7 }
 0xe48   : > { %v8202_v22 = vpop.eup %8201 }
 0xe49   : > { %v3751_v43 = vmul.f32 %v8202_v22, %v9768_v38  ;;  %v8204_v37 = vpop.eup %8203  ;;  %v3991_v38 = vpop.permute.xlu1 %3990 }
 0xe4a   : > { %v3752_v35 = vmul.f32 %v8204_v37, %v9766_v61  ;;  %v8206_v55 = vpop.eup %8205  ;;  %v3993_v61 = vpop.permute.xlu0 %3992 }
 0xe4b   : > { %7752 = vmatmul.mubr.msk.f32.gmra.mxu0 %vm2735_vm7, %v3751_v43  ;;  %v3753_v62 = vmul.f32 %v8206_v55, %v9772_v52 }
 0xe4c   : > { %7754 = vmatprep.mubr.msk.f32.mxu0 %vm8325_vm4, %v8322_v58 }
 0xe4d   : > { %v3995_v0 = vpop.permute.xlu1 %3994 }
 0xe4e   : > { %v3997_v52 = vpop.permute.xlu0 %3996 }
 0xe4f   : > { %7755 = vmatmul.mubr.msk.f32.gmra.mxu0 %vm2735_vm7, %v3752_v35 }
 0xe50   : > { %7757 = vmatprep.mubr.msk.f32.mxu0 %vm8325_vm4, %v8322_v58 }
 0xe51   : > { %v3999_v20 = vpop.permute.xlu1 %3998 }
 0xe52   : > { %v4001_v57 = vpop.permute.xlu0 %4000 }
 0xe53   : > { %7758 = vmatmul.mubr.msk.f32.gmra.mxu0 %vm2735_vm7, %v3753_v62 }
 0xe54   : > { %7784 = vmatprep.mubr.msk.f32.mxu0 %vm8325_vm4, %v8322_v58 }
 0xe55   : > { %v4003_v46 = vpop.permute.xlu1 %4002 }
 0xe57   : > { %7785 = vmatmul.mubr.msk.f32.vlgmr.msra.gmra.mxu0 %vm2599_vm5, %v3991_v38 }
 0xe58   : > { %7787 = vmatprep.mubr.msk.f32.mxu0 %vm8325_vm4, %v8322_v58 }
 0xe5b   : > { %7788 = vmatmul.mubr.msk.f32.gmra.mxu0 %vm2599_vm5, %v3993_v61 }
 0xe5c   : > { %7790 = vmatprep.mubr.msk.f32.mxu0 %vm8325_vm4, %v8322_v58 }
 0xe5f   : > { %7791 = vmatmul.mubr.msk.f32.gmra.mxu0 %vm2599_vm5, %v3995_v0 }
 0xe60   : > { %7793 = vmatprep.mubr.msk.f32.mxu0 %vm8325_vm4, %v8322_v58 }
 0xe63   : > { %7794 = vmatmul.mubr.msk.f32.gmra.mxu0 %vm2599_vm5, %v3997_v52 }
 0xe64   : > { %7796 = vmatprep.mubr.msk.f32.mxu0 %vm8325_vm4, %v8322_v58 }
 0xe67   : > { %7797 = vmatmul.mubr.msk.f32.gmra.mxu0 %vm2599_vm5, %v3999_v20 }
 0xe68   : > { %7799 = vmatprep.mubr.msk.f32.mxu0 %vm8325_vm4, %v8322_v58 }
 0xe6b   : > { %7800 = vmatmul.mubr.msk.f32.gmra.mxu0 %vm2599_vm5, %v4001_v57 }
 0xe6c   : > { %7802 = vmatprep.mubr.msk.f32.mxu0 %vm8325_vm4, %v8322_v58 }
 0xe6f   : > { %7803 = vmatmul.mubr.msk.f32.gmra.mxu0 %vm2599_vm5, %v4003_v46 }
 0xec7   : > { %v3863_v4 = vpop.f32.mrf.mxu0 }
 0xec9   : > { %v7741_v25 = vpop.f32.mrf.mxu0 }
 0xecb   : > { %v3868_v8 = vpop.f32.mrf.mxu0 }
 0xecc   : > { %v3897_v45 = vpack.c.bf16 %v3868_v8, %v3863_v4 }
 0xecd   : > { %v7744_v27 = vpop.f32.mrf.mxu0 }
 0xece   : > { %7762 = vmatprep.mubr.msk.bf16.mxu1 %vm2599_vm5, %v3897_v45  ;;  %v8309_v45 = vld [vmem:[%s10475_s8 + $0x8] sm:$0xf] }
 0xecf   : > { %v9860_v36 = vpop.f32.mrf.mxu0  ;;  %v6725_v27 = vcombine.low %v8309_v45, %v8309_v45 }
 0xed1   : > { %v7747_v13 = vpop.f32.mrf.mxu0 }
 0xed3   : > { %v9862_v53 = vpop.f32.mrf.mxu0 }
 0xed4   : > { %v3898_v44 = vpack.c.bf16 %v9862_v53, %v9860_v36 }
 0xed5   : > { %v7750_v17 = vpop.f32.mrf.mxu0 }
 0xf0b   : > { %v9866_v24 = vpop.f32.mrf.mxu0 }
 0xf0d   : > { %v7753_v3 = vpop.f32.mrf.mxu0 }
 0xf0f   : > { %v9868_v42 = vpop.f32.mrf.mxu0 }
 0xf10   : > { %v3899_v29 = vpack.c.bf16 %v9868_v42, %v9866_v24 }
 0xf11   : > { %v7756_v26 = vpop.f32.mrf.mxu0 }
 0xf13   : > { %v9872_v7 = vpop.f32.mrf.mxu0 }
 0xf15   : > { %v7759_v22 = vpop.f32.mrf.mxu0 }
 0xf17   : > { %v4112_v43 = vpop.f32.mrf.mxu0 }
 0xf18   : > { %v4146_v37 = vmul.f32 0.35355338, %v4112_v43 }
 0xf19   : > { %v7786_v35 = vpop.f32.mrf.mxu0 }
 0xf1a   : > { %v4153_v55 = vsel %vm2735_vm7, %v4146_v37, -inf }
 0xf1b   : > { %4154 = vmax.xlane.f32.xlu0 %v4153_v55  ;;  %v4117_v62 = vpop.f32.mrf.mxu0 }
 0xf1c   : > { %v4147_v38 = vmul.f32 0.35355338, %v4117_v62 }
 0xf1d   : > { %v7789_v61 = vpop.f32.mrf.mxu0 }
 0xf1e   : > { %v4156_v0 = vsel %vm2735_vm7, %v4147_v38, -inf }
 0xf1f   : > { %4157 = vmax.xlane.f32.xlu1 %v4156_v0  ;;  %v4122_v52 = vpop.f32.mrf.mxu0 }
 0xf20   : > { %v4148_v26 = vmul.f32 0.35355338, %v4122_v52 }
 0xf21   : > { %v7792_v20 = vpop.f32.mrf.mxu0 }
 0xf22   : > { %v4159_v35 = vsel %vm2735_vm7, %v4148_v26, -inf }
 0xf23   : > { %v4127_v57 = vpop.f32.mrf.mxu0 }
 0xf24   : > { %v4149_v43 = vmul.f32 0.35355338, %v4127_v57 }
 0xf25   : > { %v7795_v46 = vpop.f32.mrf.mxu0 }
 0xf26   : > { %v4162_v61 = vsel %vm2735_vm7, %v4149_v43, -inf }
 0xf27   : > { %v4132_v4 = vpop.f32.mrf.mxu0 }
 0xf28   : > { %v4150_v62 = vmul.f32 0.35355338, %v4132_v4 }
 0xf29   : > { %v7798_v25 = vpop.f32.mrf.mxu0 }
 0xf2b   : > { %v4137_v8 = vpop.f32.mrf.mxu0 }
 0xf2c   : > { %v4151_v22 = vmul.f32 0.35355338, %v4137_v8 }
 0xf2d   : > { %v7801_v13 = vpop.f32.mrf.mxu0 }
 0xf2e   : > { %v4168_v55 = vsel %vm2735_vm7, %v4151_v22, -inf }
 0xf2f   : > { %v4142_v17 = vpop.f32.mrf.mxu0 }
 0xf30   : > { %3902 = vrot.lane.b32.xlu1 %v6725_v27, %s8331_s27  ;;  %v4152_v0 = vmul.f32 0.35355338, %v4142_v17 }
 0xf31   : > { %4242 = vrot.lane.b32.xlu0 %v9219_v34, %s10482_s19  ;;  %v7804_v3 = vpop.f32.mrf.mxu0  ;;  %v4165_v34 = vsel %vm2735_vm7, %v4150_v62, -inf }
 0xf32   : > { %v4171_v20 = vsel %vm2754_vm8, %v4152_v0, -inf }
 0xf35   : > { %4240 = vrot.lane.b32.xlu0 %v9225_v15, %s10482_s19 }
 0xf54   : > { %4160 = vmax.xlane.f32.xlu0 %v4159_v35  ;;  %4169 = vmax.xlane.f32.xlu1 %v4168_v55 }
 0xf58   : > { %4163 = vmax.xlane.f32.xlu0 %v4162_v61 }
 0xf5c   : > { %4166 = vmax.xlane.f32.xlu0 %v4165_v34 }
 0xf60   : > { %4172 = vmax.xlane.f32.xlu0 %v4171_v20 }
 0xf65   : > { %4236 = vrot.lane.b32.xlu1 %v9239_v1, %s10482_s19  ;;  %v3900_v1 = vpack.c.bf16 %v9872_v7, %v9872_v7 }
 0xf69   : > { %4234 = vrot.lane.b32.xlu1 %v9223_v2, %s10482_s19 }
 0xf76   : > { %4238 = vrot.lane.b32.xlu0 %v9233_v59, %s10482_s19 }
 0xfa4   : > { %v4155_v15 = vpop.xlane.xlu0 %4154 }
 0xfa5   : > { %v4174_v52 = vsub.f32 %v4146_v37, %v4155_v15 }
 0xfa7   : > { %v4181_v57 = vmul.f32 1.442695, %v4174_v52 }
 0xfa8   : > { %v4158_v46 = vpop.xlane.xlu1 %4157  ;;  %v4243_v45 = vpop.permute.xlu0 %4242 }
 0xfa9   : > { %8207 = vpow2.f32 %v4181_v57  ;;  %v4175_v4 = vsub.f32 %v4147_v38, %v4158_v46 }
 0xfab   : > { %v4183_v25 = vmul.f32 1.442695, %v4175_v4 }
 0xfac   : > { %v3903_v8 = vpop.permute.xlu1 %3902  ;;  %v4241_v2 = vpop.permute.xlu0 %4240 }
 0xfad   : > { %8209 = vpow2.f32 %v4183_v25  ;;  %v3917_v27 = vsel %vm3364_vm9, %v3903_v8, 0  ;;  %8021 = vmatprep.subr.msk.bf16.mxu1 %vm3364_vm9, %v3903_v8 }
 0xfae   : > { %7761 = vmatpush3.bf16.msra.mxu1 %v3917_v27 }
 0xfaf   : > { %7805 = vmatprep.subr.mxu1 %v8322_v58 }
 0xfb1   : > { %7763 = vmatmul.mubr.msk.bf16.vlgmr.msra.gmra.mxu1 %vm2599_vm5, %v3898_v44 }
 0xfb2   : > { %7766 = vmatprep.mubr.msk.bf16.mxu1 %vm2599_vm5, %v3899_v29  ;;  %7806 = vmatpush3.msk.msra.mxu1 %vm2855_vm6, %v4243_v45 }
 0xfb3   : > { %7807 = vmatprep.subr.mxu1 %v8322_v58 }
 0xfb4   : > { %7808 = vmatpush3.msra.mxu1 %v4241_v2  ;;  %v8310_v2 = vld [vmem:[%s10475_s8 + $0xc] sm:$0xf] }
 0xfb5   : > { %7809 = vmatprep.subr.mxu1 %v8322_v58 }
 0xfb6   : > { %v9909_v59 = vpop.eup %8207 }
 0xfb7   : > { %v4195_v36 = vsel %vm2735_vm7, %v9909_v59, 0.0 }
 0xfb8   : > { %4196 = vadd.xlane.f32.xlu1 %v4195_v36  ;;  %v3493_v36 = vadd.f32 %v9653_v10, %v9693_v56 }
 0xfb9   : > { %7767 = vmatmul.mubr.msk.bf16.gmra.mxu1 %vm2599_vm5, %v3900_v1  ;;  %v6752_v1 = vcombine.low %v8310_v2, %v8310_v2 }
 0xfba   : > { %v9916_v53 = vpop.eup %8209  ;;  %7819 = vmatprep.mubr.msk.f32.mxu1 %vm8325_vm4, %v8322_v58 }
 0xfbb   : > { %v4198_v44 = vsel %vm2735_vm7, %v9916_v53, 0.0 }
 0xfbc   : > { %4199 = vadd.xlane.f32.xlu0 %v4198_v44 }
 0xfdd   : > { %v4161_v24 = vpop.xlane.xlu0 %4160  ;;  %v4170_v42 = vpop.xlane.xlu1 %4169 }
 0xfde   : > { %v4176_v29 = vsub.f32 %v4148_v26, %v4161_v24  ;;  %v4179_v7 = vsub.f32 %v4151_v22, %v4170_v42  ;;  %v3485_v24 = vadd.f32 %v9657_v32, %v9695_v30  ;;  %v3509_v32 = vadd.f32 %v9665_v31, %v9701_v63 }
 0xfe0   : > { %v4185_v37 = vmul.f32 1.442695, %v4176_v29  ;;  %v4191_v17 = vmul.f32 1.442695, %v4179_v7 }
 0xfe1   : > { %v4164_v38 = vpop.xlane.xlu0 %4163  ;;  %v4237_v15 = vpop.permute.xlu1 %4236 }
 0xfe2   : > { %8211 = vpow2.f32 %v4185_v37  ;;  %v4177_v13 = vsub.f32 %v4149_v43, %v4164_v38  ;;  %v3496_v37 = vadd.f32 %v9659_v21, %v9697_v12  ;;  %v3488_v38 = vadd.f32 %v9661_v54, %v9699_v16 }
 0xfe3   : > { %v3501_v21 = vadd.f32 %v9669_v9, %v9703_v18 }
 0xfe4   : > { %v4187_v3 = vmul.f32 1.442695, %v4177_v13 }
 0xfe5   : > { %v4167_v35 = vpop.xlane.xlu0 %4166  ;;  %v4235_v43 = vpop.permute.xlu1 %4234 }
 0xfe6   : > { %8213 = vpow2.f32 %v4187_v3  ;;  %v4178_v55 = vsub.f32 %v4150_v62, %v4167_v35 }
 0xfe7   : > { %8215 = vpow2.f32 %v4191_v17 }
 0xfe8   : > { %v4189_v61 = vmul.f32 1.442695, %v4178_v55 }
 0xfe9   : > { %v4173_v34 = vpop.xlane.xlu0 %4172 }
 0xfea   : > { %8217 = vpow2.f32 %v4189_v61  ;;  %v4180_v20 = vsub.f32 %v4152_v0, %v4173_v34 }
 0xfec   : > { %v4193_v52 = vmul.f32 1.442695, %v4180_v20 }
 0xfed   : > { %v4239_v57 = vpop.permute.xlu0 %4238 }
 0xfee   : > { %8219 = vpow2.f32 %v4193_v52  ;;  %7810 = vmatpush3.msra.mxu1 %v4239_v57 }
 0xfef   : > { %v9922_v26 = vpop.eup %8211  ;;  %7811 = vmatprep.subr.mxu1 %v8322_v58 }
 0xff0   : > { %7812 = vmatpush3.msra.mxu1 %v4237_v15  ;;  %v4201_v22 = vsel %vm2735_vm7, %v9922_v26, 0.0 }
 0xff1   : > { %4202 = vadd.xlane.f32.xlu0 %v4201_v22  ;;  %7813 = vmatprep.subr.mxu1 %v8322_v58 }
 0xff2   : > { %7814 = vmatpush3.msra.mxu1 %v4235_v43 }
 0xff3   : > { %v9928_v62 = vpop.eup %8213  ;;  %7815 = vmatprep.subr.mxu1 %v8322_v58 }
 0xff4   : > { %v4204_v0 = vsel %vm2735_vm7, %v9928_v62, 0.0  ;;  %v9933_v46 = vpop.eup %8215 }
 0xff5   : > { %4205 = vadd.xlane.f32.xlu0 %v4204_v0  ;;  %v4210_v8 = vsel %vm2735_vm7, %v9933_v46, 0.0 }
 0xff7   : > { %v9935_v4 = vpop.eup %8217 }
 0xff8   : > { %v4207_v25 = vsel %vm2735_vm7, %v9935_v4, 0.0 }
 0xff9   : > { %4208 = vadd.xlane.f32.xlu1 %v4207_v25  ;;  %4211 = vadd.xlane.f32.xlu0 %v4210_v8 }
 0xffb   : > { %v9941_v45 = vpop.eup %8219 }
 0xffc   : > { %v4213_v27 = vsel %vm2754_vm8, %v9941_v45, 0.0 }
 0xffd   : > { %4214 = vadd.xlane.f32.xlu0 %v4213_v27 }
0x100a   : > { %4232 = vrot.lane.b32.xlu1 %v9243_v39, %s10482_s19 }
0x100e   : > { %4378 = vrot.lane.b32.xlu1 %v6752_v1, %s8331_s27 }
0x1013   : > { %4230 = vrot.lane.b32.xlu0 %v9229_v47, %s10482_s19 }
0x1041   : > { %v4197_v10 = vpop.xlane.xlu1 %4196 }
0x1042   : > { %8221 = vrcp.f32 %v4197_v10 }
0x1045   : > { %v4200_v47 = vpop.xlane.xlu0 %4199 }
0x1046   : > { %8223 = vrcp.f32 %v4200_v47 }
0x104f   : > { %v8222_v20 = vpop.eup %8221 }
0x1050   : > { %v4223_v9 = vmul.f32 %v8222_v20, %v9909_v59 }
0x1053   : > { %v8224_v15 = vpop.eup %8223 }
0x1054   : > { %v4224_v52 = vmul.f32 %v8224_v15, %v9916_v53 }
0x1071   : > { %v7764_v44 = vpop.f32.mrf.mxu1 }
0x1072   : > { %v9957_v42 = vadd.f32 %v7764_v44, %v3493_v36 }
0x1073   : > { %v3953_v29 = vpop.f32.mrf.mxu1 }
0x1074   : > { %v9961_v7 = vadd.f32 %v3953_v29, %v3485_v24 }
0x1075   : > { %v7765_v39 = vpop.f32.mrf.mxu1 }
0x1076   : > { %v9965_v13 = vadd.f32 %v7765_v39, %v3496_v37 }
0x1077   : > { %v3956_v56 = vpop.f32.mrf.mxu1 }
0x1078   : > { %v9969_v30 = vadd.f32 %v3956_v56, %v3488_v38 }
0x1079   : > { %v7768_v17 = vpop.f32.mrf.mxu1 }
0x107a   : > { %v9973_v12 = vadd.f32 %v7768_v17, %v3509_v32  ;;  %v4203_v3 = vpop.xlane.xlu0 %4202 }
0x107b   : > { %v3969_v35 = vpop.f32.mrf.mxu1  ;;  %8225 = vrcp.f32 %v4203_v3 }
0x107c   : > { %v9975_v54 = vadd.f32 %v3969_v35, %v3501_v21 }
0x107d   : > { %v7769_v16 = vpop.f32.mrf.mxu1 }
0x107e   : > { %v4206_v55 = vpop.xlane.xlu0 %4205 }
0x107f   : > { %8227 = vrcp.f32 %v4206_v55  ;;  %v3972_v2 = vpop.f32.mrf.mxu1 }
0x1082   : > { %v4212_v61 = vpop.xlane.xlu0 %4211  ;;  %v4209_v34 = vpop.xlane.xlu1 %4208 }
0x1083   : > { %8229 = vrcp.f32 %v4209_v34 }
0x1084   : > { %8231 = vrcp.f32 %v4212_v61 }
0x1086   : > { %v4215_v31 = vpop.xlane.xlu0 %4214  ;;  %v4233_v63 = vpop.permute.xlu1 %4232 }
0x1087   : > { %7816 = vmatpush3.msra.mxu1 %v4233_v63  ;;  %8233 = vrcp.f32 %v4215_v31 }
0x1088   : > { %7817 = vmatprep.subr.mxu1 %v8322_v58  ;;  %v8226_v57 = vpop.eup %8225 }
0x1089   : > { %v4225_v59 = vmul.f32 %v8226_v57, %v9922_v26 }
0x108a   : > { %v4231_v18 = vpop.permute.xlu0 %4230  ;;  %v4379_v27 = vpop.permute.xlu1 %4378 }
0x108b   : > { %7818 = vmatpush3.msra.mxu1 %v4231_v18  ;;  %8022 = vmatprep.subr.msk.bf16.mxu0 %vm3364_vm9, %v4379_v27 }
0x108c   : > { %7820 = vmatmul.mubr.msk.f32.vlgmr.msra.gmra.mxu1 %vm2735_vm7, %v4223_v9  ;;  %v8228_v22 = vpop.eup %8227  ;;  %v10017_v9 = vld [vmem:[%s10474_s7 + $0x8] sm:$0xff] }
0x108d   : > { %7822 = vmatprep.mubr.msk.f32.mxu1 %vm8325_vm4, %v8322_v58  ;;  %v4226_v43 = vmul.f32 %v8228_v22, %v9928_v62  ;;  %v4476_v18 = vrot.slane %v10017_v9, %v9093_v19 }
0x1090   : > { %7823 = vmatmul.mubr.msk.f32.gmra.mxu1 %vm2735_vm7, %v4224_v52  ;;  %v8230_v0 = vpop.eup %8229 }
0x1091   : > { %7825 = vmatprep.mubr.msk.f32.mxu1 %vm8325_vm4, %v8322_v58  ;;  %v4227_v53 = vmul.f32 %v8230_v0, %v9935_v4  ;;  %v8232_v25 = vpop.eup %8231  ;;  %v4393_v4 = vsel %vm3364_vm9, %v4379_v27, 0 }
0x1092   : > { %v4228_v26 = vmul.f32 %v8232_v25, %v9933_v46  ;;  %7841 = vmatpush3.bf16.msra.mxu0 %v4393_v4 }
0x1094   : > { %7826 = vmatmul.mubr.msk.f32.gmra.mxu1 %vm2735_vm7, %v4225_v59  ;;  %v8234_v8 = vpop.eup %8233 }
0x1095   : > { %7828 = vmatprep.mubr.msk.f32.mxu1 %vm8325_vm4, %v8322_v58  ;;  %v4229_v62 = vmul.f32 %v8234_v8, %v9941_v45 }
0x1098   : > { %7829 = vmatmul.mubr.msk.f32.gmra.mxu1 %vm2735_vm7, %v4226_v43 }
0x1099   : > { %7831 = vmatprep.mubr.msk.f32.mxu1 %vm8325_vm4, %v8322_v58 }
0x109c   : > { %7832 = vmatmul.mubr.msk.f32.gmra.mxu1 %vm2735_vm7, %v4227_v53 }
0x109d   : > { %7834 = vmatprep.mubr.msk.f32.mxu1 %vm8325_vm4, %v8322_v58 }
0x10a0   : > { %7835 = vmatmul.mubr.msk.f32.gmra.mxu1 %vm2735_vm7, %v4228_v26 }
0x10a1   : > { %7837 = vmatprep.mubr.msk.f32.mxu1 %vm8325_vm4, %v8322_v58 }
0x10a4   : > { %7838 = vmatmul.mubr.msk.f32.gmra.mxu1 %vm2735_vm7, %v4229_v62 }
0x114c   : > { %v4339_v1 = vpop.f32.mrf.mxu1 }
0x114e   : > { %v7821_v36 = vpop.f32.mrf.mxu1 }
0x1150   : > { %v4344_v46 = vpop.f32.mrf.mxu1 }
0x1151   : > { %v4373_v44 = vpack.c.bf16 %v4344_v46, %v4339_v1 }
0x1152   : > { %v7824_v24 = vpop.f32.mrf.mxu1 }
0x1153   : > { %7842 = vmatprep.mubr.msk.bf16.mxu0 %vm2599_vm5, %v4373_v44 }
0x1154   : > { %v4349_v29 = vpop.f32.mrf.mxu1 }
0x1156   : > { %v7827_v37 = vpop.f32.mrf.mxu1 }
0x1158   : > { %v4354_v39 = vpop.f32.mrf.mxu1 }
0x1159   : > { %v4374_v45 = vpack.c.bf16 %v4354_v39, %v4349_v29 }
0x115a   : > { %v7830_v38 = vpop.f32.mrf.mxu1 }
0x115b   : > { %7843 = vmatmul.mubr.msk.bf16.vlgmr.msra.gmra.mxu0 %vm2599_vm5, %v4374_v45 }
0x115c   : > { %v4359_v47 = vpop.f32.mrf.mxu1 }
0x115e   : > { %v7833_v10 = vpop.f32.mrf.mxu1 }
0x1160   : > { %v4364_v56 = vpop.f32.mrf.mxu1 }
0x1161   : > { %v4375_v32 = vpack.c.bf16 %v4364_v56, %v4359_v47 }
0x1162   : > { %v7836_v17 = vpop.f32.mrf.mxu1 }
0x1163   : > { %7846 = vmatprep.mubr.msk.bf16.mxu0 %vm2599_vm5, %v4375_v32 }
0x1164   : > { %v4369_v21 = vpop.f32.mrf.mxu1 }
0x1165   : > { %v4376_v3 = vpack.c.bf16 %v4369_v21, %v4369_v21 }
0x1166   : > { %v7839_v35 = vpop.f32.mrf.mxu1 }
0x1167   : > { %7847 = vmatmul.mubr.msk.bf16.gmra.mxu0 %vm2599_vm5, %v4376_v3 }
0x121b   : > { %v7844_v16 = vpop.f32.mrf.mxu0 }
0x121c   : > { %v4461_v55 = vadd.f32 %v7844_v16, %v9957_v42 }
0x121d   : > { %v4429_v61 = vpop.f32.mrf.mxu0 }
0x121e   : > { %v4459_v34 = vadd.f32 %v4429_v61, %v9961_v7  ;;  %v4468_v63 = vadd.f32 %v4461_v55, %v9110_v14 }
0x121f   : > { %v7845_v31 = vpop.f32.mrf.mxu0 }
0x1220   : > { %v4466_v20 = vadd.f32 %v4459_v34, %v9100_v60  ;;  %v4462_v15 = vadd.f32 %v7845_v31, %v9965_v13  ;;  %v4479_v59 = vadd.f32 %v4476_v18, %v4468_v63 }
0x1221   : > { %v4432_v52 = vpop.f32.mrf.mxu0 }
0x1222   : > { %v10022_v42 = vadd.f32 %v4476_v18, %v4466_v20  ;;  %v4460_v7 = vadd.f32 %v4432_v52, %v9969_v30  ;;  %v4469_v57 = vadd.f32 %v4462_v15, %v9115_v23  ;;  %v4490_v13 = vsel %vm2229_vm2, %v4479_v59, 0.0 }
0x1224   : > { %v4467_v14 = vadd.f32 %v4460_v7, %v9105_v48  ;;  %v4484_v60 = vsel %vm2229_vm2, %v10022_v42, 0.0  ;;  %v4480_v25 = vadd.f32 %v4476_v18, %v4469_v57  ;;  %v3504_v48 = vadd.f32 %v9857_v5, %v9705_v40 }
0x1225   : > { %4485 = vadd.xlane.f32.xlu1 %v4484_v60 }
0x1226   : > { %v4478_v22 = vadd.f32 %v4476_v18, %v4467_v14  ;;  %v3988_v8 = vadd.f32 %v3972_v2, %v3504_v48 }
0x1227   : > { %v7848_v43 = vpop.f32.mrf.mxu0 }
0x1228   : > { %v4465_v0 = vadd.f32 %v7848_v43, %v9973_v12  ;;  %v4487_v53 = vsel %vm2229_vm2, %v4478_v22, 0.0  ;;  %v4493_v12 = vsel %vm2229_vm2, %v4480_v25, 0.0 }
0x1229   : > { %4491 = vadd.xlane.f32.xlu1 %v4490_v13  ;;  %4488 = vadd.xlane.f32.xlu0 %v4487_v53  ;;  %v4445_v30 = vpop.f32.mrf.mxu0  ;;  %v10086_v53 = vld [vmem:[%s485_s16] sm:$0xff]  ;;  %s10494_s16 = smov 40  }
0x122a   : > { %v4463_v23 = vadd.f32 %v4445_v30, %v9975_v54  ;;  %v4472_v62 = vadd.f32 %v4465_v0, %v9130_v41  ;;  %v8064_v30 = vld [vmem:[%s10475_s8 + $0x10] sm:$0xff]  }
0x122b   : > { %v7849_v26 = vpop.f32.mrf.mxu0 }
0x122c   : > { %v4470_v27 = vadd.f32 %v4463_v23, %v9120_v28  ;;  %v4483_v24 = vadd.f32 %v4476_v18, %v4472_v62  ;;  %v8336_v28 = vmov 0  }
0x122d   : > { %4494 = vadd.xlane.f32.xlu1 %v4493_v12  ;;  %v4448_v4 = vpop.f32.mrf.mxu0  ;;  %8048 = vset.pattern.permute.xlu0 %v8336_v28 }
0x122e   : > { %v4464_v1 = vadd.f32 %v4448_v4, %v3988_v8  ;;  %v4481_v36 = vadd.f32 %v4476_v18, %v4470_v27  ;;  %v4502_v5 = vsel %vm2248_vm3, %v4483_v24, 0.0  ;;  %8047 = vset.pattern.permute.xlu1 %v8336_v28 }
0x1230   : > { %v4471_v46 = vadd.f32 %v4464_v1, %v9125_v33  ;;  %v4496_v44 = vsel %vm2229_vm2, %v4481_v36, 0.0 }
0x1231   : > { %4497 = vadd.xlane.f32.xlu1 %v4496_v44 }
0x1232   : > { %v4482_v40 = vadd.f32 %v4476_v18, %v4471_v46 }
0x1234   : > { %v4499_v54 = vsel %vm2229_vm2, %v4482_v40, 0.0 }
0x1235   : > { %4503 = vadd.xlane.f32.xlu1 %v4502_v5  ;;  %4500 = vadd.xlane.f32.xlu0 %v4499_v54  ;;  %v4577_v5 = vsub.s32 2, %v9082_v50 }
0x12ae   : > { %v4486_v41 = vpop.xlane.xlu1 %4485 }
0x12af   : > { %v4505_v2 = vmul.f32 0.03125, %v4486_v41 }
0x12b1   : > { %v10043_v29 = vsub.f32 %v10022_v42, %v4505_v2 }
0x12b2   : > { %v4492_v33 = vpop.xlane.xlu1 %4491  ;;  %v4489_v37 = vpop.xlane.xlu0 %4488 }
0x12b3   : > { %v4507_v39 = vmul.f32 0.03125, %v4492_v33  ;;  %v4506_v45 = vmul.f32 0.03125, %v4489_v37  ;;  %v4519_v38 = vmul.f32 %v10043_v29, %v10043_v29 }
0x12b5   : > { %v10047_v47 = vsub.f32 %v4479_v59, %v4507_v39  ;;  %v10049_v10 = vsub.f32 %v4478_v22, %v4506_v45  ;;  %v4526_v56 = vsel %vm2229_vm2, %v4519_v38, 0.0  ;;  %v4588_v39 = vsub.s32 3, %v9082_v50 }
0x12b6   : > { %v4495_v32 = vpop.xlane.xlu1 %4494  ;;  %4527 = vadd.xlane.f32.xlu0 %v4526_v56  ;;  %v4578_v45 = vrot.slane %v10017_v9, %v4577_v5 }
0x12b7   : > { %v4508_v17 = vmul.f32 0.03125, %v4495_v32  ;;  %v4520_v21 = vmul.f32 %v10049_v10, %v10049_v10  ;;  %v4521_v3 = vmul.f32 %v10047_v47, %v10047_v47 }
0x12b9   : > { %v10056_v35 = vsub.f32 %v4480_v25, %v4508_v17  ;;  %v4529_v16 = vsel %vm2229_vm2, %v4520_v21, 0.0  ;;  %v4532_v55 = vsel %vm2229_vm2, %v4521_v3, 0.0  ;;  %v8063_v25 = vld [vmem:[%s10475_s8 + $0x18] sm:$0xff]   ;;  %v4589_v3 = vrot.slane %v10017_v9, %v4588_v39 }
0x12ba   : > { %4530 = vadd.xlane.f32.xlu1 %v4529_v16  ;;  %v4498_v61 = vpop.xlane.xlu1 %4497  ;;  %4533 = vadd.xlane.f32.xlu0 %v4532_v55 }
0x12bb   : > { %v4509_v34 = vmul.f32 0.03125, %v4498_v61  ;;  %v4522_v31 = vmul.f32 %v10056_v35, %v10056_v35  ;;  %7850 = vmatprep.subr.bf16.mxu1 %v8063_v25 }
0x12bc   : > { %7851 = vmatpush3.bf16.msra.mxu1 %v8063_v25 }
0x12bd   : > { %v10062_v63 = vsub.f32 %v4481_v36, %v4509_v34  ;;  %v4535_v20 = vsel %vm2229_vm2, %v4522_v31, 0.0  ;;  %7852 = vmatprep.subr.bf16.mxu1 %v8064_v30 }
0x12be   : > { %4536 = vadd.xlane.f32.xlu1 %v4535_v20  ;;  %v4504_v18 = vpop.xlane.xlu1 %4503  ;;  %v4501_v15 = vpop.xlane.xlu0 %4500 }
0x12bf   : > { %v4511_v52 = vmul.f32 0.03125, %v4504_v18  ;;  %v4510_v7 = vmul.f32 0.03125, %v4501_v15  ;;  %v4523_v57 = vmul.f32 %v10062_v63, %v10062_v63 }
0x12c0   : > { %7853 = vmatpush3.bf16.msra.mxu1 %v8064_v30 }
0x12c1   : > { %v10067_v14 = vsub.f32 %v4483_v24, %v4511_v52  ;;  %v10069_v60 = vsub.f32 %v4482_v40, %v4510_v7  ;;  %v4538_v59 = vsel %vm2229_vm2, %v4523_v57, 0.0  ;;  %7886 = vmatprep.subr.bf16.mxu1 %v8322_v58 }
0x12c2   : > { %4539 = vadd.xlane.f32.xlu0 %v4538_v59 }
0x12c3   : > { %v4525_v22 = vmul.f32 %v10067_v14, %v10067_v14  ;;  %v4524_v43 = vmul.f32 %v10069_v60, %v10069_v60 }
0x12c5   : > { %v4544_v0 = vsel %vm2248_vm3, %v4525_v22, 0.0  ;;  %v4541_v13 = vsel %vm2229_vm2, %v4524_v43, 0.0 }
0x12c6   : > { %4545 = vadd.xlane.f32.xlu0 %v4544_v0  ;;  %4542 = vadd.xlane.f32.xlu1 %v4541_v13 }
0x12d7   : > { %4868 = vperm.xlu1 %8047, %v10086_v53  }
0x133f   : > { %v4528_v48 = vpop.xlane.xlu0 %4527 }
0x1340   : > { %v4547_v23 = vmul.f32 0.03125, %v4528_v48  ;;  %v8066_v48 = vld [vmem:[%s10473_s6 + $0x10] sm:$0xff]  }
0x1342   : > { %v4554_v26 = vadd.f32 1e-05, %v4547_v23 }
0x1343   : > { %v4531_v8 = vpop.xlane.xlu1 %4530  ;;  %v4534_v62 = vpop.xlane.xlu0 %4533 }
0x1344   : > { %8235 = vrsqrt.f32 %v4554_v26  ;;  %v4548_v27 = vmul.f32 0.03125, %v4531_v8  ;;  %v4549_v12 = vmul.f32 0.03125, %v4534_v62  ;;  %v10121_v26 = vand.u32 127, %v2323_v6 }
0x1346   : > { %v4555_v4 = vadd.f32 1e-05, %v4548_v27  ;;  %v4556_v1 = vadd.f32 1e-05, %v4549_v12  ;;  %vm5060_vm12 = vcmp.le.s32.totalorder %v10121_v26, %v9082_v50 }
0x1347   : > { %v4537_v36 = vpop.xlane.xlu1 %4536 }
0x1348   : > { %8237 = vrsqrt.f32 %v4555_v4  ;;  %v4550_v46 = vmul.f32 0.03125, %v4537_v36 }
0x1349   : > { %8239 = vrsqrt.f32 %v4556_v1  ;;  %v8068_v1 = vld [vmem:[%s10473_s6] sm:$0xff]  }
0x134a   : > { %v4557_v44 = vadd.f32 1e-05, %v4550_v46  ;;  %v8069_v46 = vld [vmem:[%s10476_s9 + $0x38] sm:$0xff]  }
0x134b   : > { %v4540_v24 = vpop.xlane.xlu0 %4539  ;;  %7862 = vmatprep.subr.bf16.mxu0 %v8069_v46 }
0x134c   : > { %8241 = vrsqrt.f32 %v4557_v44  ;;  %v4551_v40 = vmul.f32 0.03125, %v4540_v24  ;;  %7863 = vmatpush3.bf16.msra.mxu0 %v8069_v46  ;;  %v8070_v44 = vld [vmem:[%s10476_s9 + $0x30] sm:$0xff]   ;;  %v8071_v24 = vld [vmem:[%s10476_s9 + $0x28] sm:$0xff]  }
0x134d   : > { %7864 = vmatprep.subr.bf16.mxu0 %v8070_v44 }
0x134e   : > { %v4558_v54 = vadd.f32 1e-05, %v4551_v40  ;;  %v8072_v40 = vld [vmem:[%s10476_s9 + $0x20] sm:$0xff]  }
0x134f   : > { %v4543_v28 = vpop.xlane.xlu1 %4542  ;;  %v4546_v41 = vpop.xlane.xlu0 %4545 }
0x1350   : > { %8243 = vrsqrt.f32 %v4558_v54  ;;  %v4552_v2 = vmul.f32 0.03125, %v4543_v28  ;;  %v4553_v33 = vmul.f32 0.03125, %v4546_v41  ;;  %7865 = vmatpush3.bf16.msra.mxu0 %v8070_v44  ;;  %v8073_v54 = vld [vmem:[%s10476_s9 + $0x18] sm:$0xff]   ;;  %v8074_v28 = vld [vmem:[%s10476_s9 + $0x10] sm:$0xff]   ;;  %v8075_v41 = vld [vmem:[%s10476_s9 + $0x8] sm:$0xff]  }
0x1351   : > { %v8236_v37 = vpop.eup %8235  ;;  %7866 = vmatprep.subr.bf16.mxu0 %v8071_v24 }
0x1352   : > { %v4559_v38 = vadd.f32 1e-05, %v4552_v2  ;;  %v4560_v56 = vadd.f32 1e-05, %v4553_v33  ;;  %v4568_v32 = vmul.f32 %v8236_v37, %v10043_v29  ;;  %v8076_v2 = vld [vmem:[%s10476_s9] sm:$0xff]   ;;  %v4603_v33 = vsub.s32 4, %v9082_v50 }
0x1353   : > { %v4869_v27 = vpop.permute.xlu1 %4868 }
0x1354   : > { %8245 = vrsqrt.f32 %v4559_v38  ;;  %v4579_v55 = vmul.f32 %v4578_v45, %v4568_v32  ;;  %vm4870_vm10 = vcmp.eq.s32.totalorder %v4869_v27, %v10121_v26  ;;  %7867 = vmatpush3.bf16.msra.mxu0 %v8071_v24  ;;  %v4604_v37 = vrot.slane %v10017_v9, %v4603_v33 }
0x1355   : > { %v8238_v17 = vpop.eup %8237  ;;  %8247 = vrsqrt.f32 %v4560_v56  ;;  %v6778_v6 = vsel %vm4870_vm10, 1.0, %v8322_v58  ;;  %7868 = vmatprep.subr.bf16.mxu0 %v8072_v40 }
0x1356   : > { %v8240_v21 = vpop.eup %8239  ;;  %v4569_v16 = vmul.f32 %v8238_v17, %v10049_v10  ;;  %v4590_v15 = vadd.f32 %v4589_v3, %v4579_v55  ;;  %v4873_v36 = vpack.c.bf16 %v6778_v6, %v6778_v6 }
0x1357   : > { %v4570_v61 = vmul.f32 %v8240_v21, %v10047_v47  ;;  %v8065_v47 = vld [vmem:[%s10473_s6 + $0x18] sm:$0xff]  }
0x1358   : > { %v4580_v34 = vmul.f32 %v4578_v45, %v4569_v16  ;;  %7869 = vmatpush3.bf16.msra.mxu0 %v8072_v40 }
0x1359   : > { %v8242_v31 = vpop.eup %8241  ;;  %v4581_v20 = vmul.f32 %v4578_v45, %v4570_v61  ;;  %7870 = vmatprep.subr.bf16.mxu0 %v8073_v54 }
0x135a   : > { %v4571_v18 = vmul.f32 %v8242_v31, %v10056_v35  ;;  %v4591_v29 = vadd.f32 %v4589_v3, %v4580_v34 }
0x135b   : > { %v4592_v59 = vadd.f32 %v4589_v3, %v4581_v20 }
0x135c   : > { %v4582_v52 = vmul.f32 %v4578_v45, %v4571_v18  ;;  %v4597_v7 = vpack.c.bf16 %v4591_v29, %v4590_v15  ;;  %7871 = vmatpush3.bf16.msra.mxu0 %v8073_v54 }
0x135d   : > { %v8244_v57 = vpop.eup %8243  ;;  %7872 = vmatprep.subr.bf16.mxu0 %v8074_v28 }
0x135e   : > { %v4593_v22 = vadd.f32 %v4589_v3, %v4582_v52  ;;  %7854 = vmatprep.mubr.msk.bf16.mxu1 %vm2229_vm2, %v4597_v7  ;;  %v4572_v43 = vmul.f32 %v8244_v57, %v10062_v63 }
0x1360   : > { %v4598_v10 = vpack.c.bf16 %v4593_v22, %v4592_v59  ;;  %v4583_v25 = vmul.f32 %v4578_v45, %v4572_v43  ;;  %7873 = vmatpush3.bf16.msra.mxu0 %v8074_v28 }
0x1361   : > { %v8246_v0 = vpop.eup %8245  ;;  %7874 = vmatprep.subr.bf16.mxu0 %v8075_v41 }
0x1362   : > { %v8248_v13 = vpop.eup %8247  ;;  %7855 = vmatmul.mubr.msk.bf16.vlgmr.msra.gmra.mxu1 %vm2229_vm2, %v4598_v10  ;;  %v4573_v35 = vmul.f32 %v8246_v0, %v10069_v60  ;;  %v4594_v8 = vadd.f32 %v4589_v3, %v4583_v25 }
0x1363   : > { %v4574_v30 = vmul.f32 %v8248_v13, %v10067_v14  ;;  %7887 = vmatpush3.bf16.msra.mxu1 %v8065_v47  ;;  %v8067_v14 = vld [vmem:[%s10473_s6 + $0x8] sm:$0xff]   ;;  %v4882_v13 = vld [vmem:[%s10472_s5] sm:$0xff] }
0x1364   : > { %7888 = vmatprep.subr.bf16.mxu1 %v8322_v58  ;;  %v4584_v63 = vmul.f32 %v4578_v45, %v4573_v35  ;;  %7875 = vmatpush3.bf16.msra.mxu0 %v8075_v41 }
0x1365   : > { %v4585_v23 = vmul.f32 %v4578_v45, %v4574_v30  ;;  %7876 = vmatprep.subr.bf16.mxu0 %v8076_v2 }
0x1366   : > { %v4595_v62 = vadd.f32 %v4589_v3, %v4584_v63 }
0x1367   : > { %7889 = vmatpush3.bf16.msra.mxu1 %v8066_v48  ;;  %v4596_v60 = vadd.f32 %v4589_v3, %v4585_v23 }
0x1368   : > { %v4599_v12 = vpack.c.bf16 %v4595_v62, %v4594_v8  ;;  %7890 = vmatprep.subr.bf16.mxu1 %v8322_v58  ;;  %7877 = vmatpush3.bf16.msra.mxu0 %v8076_v2 }
0x1369   : > { %v4600_v4 = vpack.c.bf16 %v4596_v60, %v4596_v60  ;;  %7911 = vmatprep.subr.mxu0 %v8322_v58 }
0x136a   : > { %7858 = vmatprep.mubr.msk.bf16.mxu1 %vm2229_vm2, %v4599_v12 }
0x136b   : > { %7859 = vmatmul.mubr.msk.bf16.gmra.mxu1 %vm2229_vm2, %v4600_v4 }
0x136c   : > { %7891 = vmatpush3.bf16.msra.mxu1 %v8067_v14  ;;  %7894 = vmatprep.mubr.msk.bf16.mxu1 %vm8325_vm4, %v8322_v58 }
0x136d   : > { %7892 = vmatprep.subr.bf16.mxu1 %v8322_v58 }
0x1370   : > { %7893 = vmatpush3.bf16.msra.mxu1 %v8068_v1 }
0x1371   : > { %7898 = vmatprep.subr.bf16.mxu1 %v8322_v58 }
0x1373   : > { %7895 = vmatmul.mubr.msk.bf16.vlgmr.msra.gmra.mxu1 %vm4907_vm11, %v4873_v36 }
0x1374   : > { %7902 = vmatprep.mubr.msk.bf16.mxu1 %vm8325_vm4, %v8322_v58 }
0x1422   : > { %v7856_v45 = vpop.f32.mrf.mxu1 }
0x1423   : > { %v10169_v38 = vadd.f32 %v7856_v45, %v4604_v37 }
0x1424   : > { %v4663_v56 = vpop.f32.mrf.mxu1 }
0x1425   : > { %v6765_v32 = vmul.f32 -1.702, %v10169_v38  ;;  %v10172_v17 = vadd.f32 %v4663_v56, %v4604_v37 }
0x1426   : > { %v7857_v21 = vpop.f32.mrf.mxu1 }
0x1427   : > { %v4711_v3 = vmul.f32 1.442695, %v6765_v32  ;;  %v6763_v16 = vmul.f32 -1.702, %v10172_v17  ;;  %v4675_v55 = vadd.f32 %v7857_v21, %v4604_v37 }
0x1428   : > { %v4666_v61 = vpop.f32.mrf.mxu1 }
0x1429   : > { %v4707_v34 = vmul.f32 1.442695, %v6763_v16  ;;  %v6766_v31 = vmul.f32 -1.702, %v4675_v55  ;;  %v4667_v20 = vadd.f32 %v4666_v61, %v4604_v37  ;;  %8249 = vpow2.f32 %v4711_v3 }
0x142b   : > { %8251 = vpow2.f32 %v4707_v34  ;;  %v4713_v18 = vmul.f32 1.442695, %v6766_v31  ;;  %v6764_v15 = vmul.f32 -1.702, %v4667_v20  ;;  %v7860_v29 = vpop.f32.mrf.mxu1 }
0x142c   : > { %v4688_v52 = vadd.f32 %v7860_v29, %v4604_v37 }
0x142d   : > { %8253 = vpow2.f32 %v4713_v18  ;;  %v4709_v7 = vmul.f32 1.442695, %v6764_v15  ;;  %v4679_v57 = vpop.f32.mrf.mxu1 }
0x142e   : > { %v6769_v59 = vmul.f32 -1.702, %v4688_v52  ;;  %v4680_v22 = vadd.f32 %v4679_v57, %v4604_v37 }
0x142f   : > { %8255 = vpow2.f32 %v4709_v7  ;;  %v7861_v43 = vpop.f32.mrf.mxu1 }
0x1430   : > { %v4719_v47 = vmul.f32 1.442695, %v6769_v59  ;;  %v6767_v10 = vmul.f32 -1.702, %v4680_v22 }
0x1431   : > { %v4682_v0 = vpop.f32.mrf.mxu1 }
0x1432   : > { %8257 = vpow2.f32 %v4719_v47  ;;  %v4715_v35 = vmul.f32 1.442695, %v6767_v10  ;;  %v4683_v25 = vadd.f32 %v4682_v0, %v4604_v37 }
0x1433   : > { %v4945_v30 = vpop.f32.mrf.mxu1 }
0x1434   : > { %8259 = vpow2.f32 %v4715_v35  ;;  %v6768_v48 = vmul.f32 -1.702, %v4683_v25  ;;  %v10178_v63 = vadd.f32 %v4945_v30, %v4882_v13  ;;  %v10203_v13 = vld [vmem:[%s10477_s10] sm:$0xf]  ;;  %v10208_v35 = vld [vmem:[%s10477_s10 + $0x4] sm:$0xf] }
0x1435   : > { %v7896_v23 = vpop.f32.mrf.mxu1 }
0x1436   : > { %v4717_v8 = vmul.f32 1.442695, %v6768_v48  ;;  %v4975_v62 = vsel %vm2229_vm2, %v10178_v63, 0.0  ;;  %v8250_v27 = vpop.eup %8249 }
0x1437   : > { %4976 = vadd.xlane.f32.xlu0 %v4975_v62  ;;  %v4948_v60 = vpop.f32.mrf.mxu1  ;;  %v4723_v1 = vadd.f32 1.0, %v8250_v27 }
0x1438   : > { %v8252_v12 = vpop.eup %8251  ;;  %8261 = vpow2.f32 %v4717_v8 }
0x1439   : > { %v4721_v14 = vadd.f32 1.0, %v8252_v12  ;;  %v7897_v4 = vpop.f32.mrf.mxu1 }
0x143a   : > { %v8254_v6 = vpop.eup %8253 }
0x143b   : > { %v4724_v36 = vadd.f32 1.0, %v8254_v6  ;;  %8263 = vrcp.f32 %v4721_v14 }
0x143c   : > { %v8256_v46 = vpop.eup %8255 }
0x143d   : > { %8265 = vrcp.f32 %v4724_v36  ;;  %v4722_v44 = vadd.f32 1.0, %v8256_v46 }
0x143e   : > { %8267 = vrcp.f32 %v4723_v1  ;;  %v4991_v1 = vrot.slane %v10017_v9, %v2462_v51 }
0x143f   : > { %v8258_v24 = vpop.eup %8257  ;;  %8269 = vrcp.f32 %v4722_v44  ;;  %v4996_v44 = vrot.slane %v10017_v9, %v2473_v49 }
0x1440   : > { %v4727_v54 = vadd.f32 1.0, %v8258_v24 }
0x1441   : > { %v8260_v40 = vpop.eup %8259 }
0x1442   : > { %v4725_v28 = vadd.f32 1.0, %v8260_v40  ;;  %8271 = vrcp.f32 %v4727_v54 }
0x1444   : > { %8273 = vrcp.f32 %v4725_v28  ;;  %v10228_v28 = vld [vmem:[%s10474_s7 + $0x10] sm:$0x3f] }
0x1445   : > { %v8262_v41 = vpop.eup %8261  ;;  %v5002_v51 = vrot.slane %v10228_v28, %v9085_v11 }
0x1446   : > { %v4726_v2 = vadd.f32 1.0, %v8262_v41 }
0x1448   : > { %8275 = vrcp.f32 %v4726_v2  ;;  %v8264_v37 = vpop.eup %8263 }
0x1449   : > { %v4742_v3 = vmul.f32 %v8264_v37, %v10172_v17 }
0x144a   : > { %v8266_v45 = vpop.eup %8265 }
0x144b   : > { %v8268_v56 = vpop.eup %8267  ;;  %v4745_v21 = vmul.f32 %v8266_v45, %v4675_v55 }
0x144c   : > { %v8270_v32 = vpop.eup %8269  ;;  %v4744_v61 = vmul.f32 %v8268_v56, %v10169_v38 }
0x144d   : > { %v4743_v16 = vmul.f32 %v8270_v32, %v4667_v20  ;;  %v8337_v32 = vmov -1e+09  }
0x144e   : > { %v4750_v31 = vpack.c.bf16 %v4745_v21, %v4744_v61  ;;  %v10253_v21 = vsel %vm5060_vm12, 0.0, %v8337_v32 }
0x144f   : > { %v4749_v34 = vpack.c.bf16 %v4743_v16, %v4742_v3  ;;  %v8272_v18 = vpop.eup %8271 }
0x1450   : > { %v4748_v7 = vmul.f32 %v8272_v18, %v4688_v52  ;;  %v10191_v52 = vld [vmem:[%s10477_s10 + $0x8] sm:$0xf] }
0x1451   : > { %7878 = vmatprep.mubr.bf16.mxu0 %v4749_v34  ;;  %v8274_v15 = vpop.eup %8273 }
0x1452   : > { %7879 = vmatmul.mubr.bf16.vlgmr.msra.gmra.mxu0 %v4750_v31  ;;  %v4746_v57 = vmul.f32 %v8274_v15, %v4680_v22  ;;  %v4752_v47 = vpack.c.bf16 %v4748_v7, %v4748_v7  ;;  %v10196_v22 = vld [vmem:[%s10477_s10 + $0xc] sm:$0xf] }
0x1453   : > { %v6785_v0 = vcombine.low %v10191_v52, %v10196_v22 }
0x1455   : > { %v8276_v29 = vpop.eup %8275  ;;  %7899 = vmatpush3.bf16.msra.mxu1 %v6785_v0 }
0x1456   : > { %v4747_v59 = vmul.f32 %v8276_v29, %v4683_v25  ;;  %7900 = vmatprep.subr.bf16.mxu1 %v8322_v58  ;;  %v6784_v25 = vcombine.low %v10203_v13, %v10208_v35 }
0x1458   : > { %v4751_v43 = vpack.c.bf16 %v4747_v59, %v4746_v57 }
0x1459   : > { %7901 = vmatpush3.bf16.msra.mxu1 %v6784_v25 }
0x145a   : > { %7882 = vmatprep.mubr.bf16.mxu0 %v4751_v43  ;;  %7906 = vmatprep.subr.mxu1 %v8322_v58 }
0x145b   : > { %7883 = vmatmul.mubr.bf16.gmra.mxu0 %v4752_v47 }
0x145c   : > { %7913 = vmatprep.mubr.msk.f32.mxu0 %vm8325_vm4, %v8322_v58 }
0x14c0   : > { %v4977_v17 = vpop.xlane.xlu0 %4976 }
0x14c1   : > { %v4978_v55 = vmul.f32 0.03125, %v4977_v17 }
0x14c3   : > { %v4979_v38 = vsub.f32 %v10178_v63, %v4978_v55 }
0x14c5   : > { %v4980_v20 = vmul.f32 %v4979_v38, %v4979_v38 }
0x14c7   : > { %v4981_v10 = vsel %vm2229_vm2, %v4980_v20, 0.0 }
0x14c8   : > { %4982 = vadd.xlane.f32.xlu0 %v4981_v10 }
0x1512   : > { %v7880_v30 = vpop.f32.mrf.mxu0 }
0x1513   : > { %v6793_v30 = vcombine.low %v10208_v35, %v10208_v35 }
0x1514   : > { %v10214_v48 = vpop.f32.mrf.mxu0 }
0x1516   : > { %v7881_v23 = vpop.f32.mrf.mxu0 }
0x1518   : > { %v4842_v8 = vpop.f32.mrf.mxu0 }
0x151b   : > { %v7884_v62 = vpop.f32.mrf.mxu0 }
0x151d   : > { %v4852_v27 = vpop.f32.mrf.mxu0 }
0x151f   : > { %v7885_v60 = vpop.f32.mrf.mxu0 }
0x1521   : > { %v4854_v12 = vpop.f32.mrf.mxu0 }
0x1551   : > { %v4983_v14 = vpop.xlane.xlu0 %4982 }
0x1552   : > { %v4984_v4 = vmul.f32 0.03125, %v4983_v14 }
0x1554   : > { %v4985_v6 = vadd.f32 1e-05, %v4984_v4 }
0x1556   : > { %8277 = vrsqrt.f32 %v4985_v6 }
0x1563   : > { %v8278_v36 = vpop.eup %8277 }
0x1564   : > { %v4987_v46 = vmul.f32 %v8278_v36, %v4979_v38 }
0x1566   : > { %v4992_v24 = vmul.f32 %v4991_v1, %v4987_v46 }
0x1568   : > { %v4997_v40 = vadd.f32 %v4996_v44, %v4992_v24 }
0x156a   : > { %v4998_v54 = vpack.c.bf16 %v4997_v40, %v4997_v40 }
0x156c   : > { %7903 = vmatmul.mubr.msk.bf16.vlgmr.msra.gmra.mxu1 %vm2229_vm2, %v4998_v54 }
0x156d   : > { %7908 = vmatprep.mubr.msk.f32.mxu1 %vm8325_vm4, %v8322_v58 }
0x162c   : > { %v5052_v41 = vpop.f32.mrf.mxu1 }
0x162d   : > { %v10232_v2 = vadd.f32 %v5052_v41, %v5002_v51 }
0x162e   : > { %v7904_v49 = vpop.f32.mrf.mxu1 }
0x162f   : > { %5231 = vrot.lane.b32.xlu1 %v10232_v2, %s8326_s22  ;;  %5063 = vrot.lane.b32.xlu0 %v10232_v2, %s8323_s20  ;;  %s10489_s20 = smov 56   ;;  %s10490_s22 = smov 112  }
0x1630   : > { %v5055_v9 = vpop.f32.mrf.mxu1 }
0x1632   : > { %v7905_v37 = vpop.f32.mrf.mxu1 }
0x1633   : > { %5229 = vrot.lane.b32.xlu1 %v10232_v2, %s8327_s23  ;;  %s10491_s23 = smov 48  }
0x16a1   : > { %v5064_v45 = vpop.permute.xlu0 %5063  ;;  %v5232_v56 = vpop.permute.xlu1 %5231 }
0x16a2   : > { %7907 = vmatpush3.xpose.msk.msra.mxu1 %vm2599_vm5, %v5064_v45 }
0x16a3   : > { %7916 = vmatprep.subr.mxu1 %v8322_v58 }
0x16a5   : > { %7909 = vmatmul.mubr.msk.f32.vlgmr.msra.gmra.mxu1 %vm2599_vm5, %v10232_v2  ;;  %v5230_v11 = vpop.permute.xlu1 %5229 }
0x16a6   : > { %7917 = vmatpush3.xpose.msk.msra.mxu1 %vm2599_vm5, %v5232_v56  ;;  %7918 = vmatprep.mubr.msk.f32.mxu1 %vm8325_vm4, %v8322_v58 }
0x16a7   : > { %7926 = vmatprep.subr.bf16.mxu1 %v8322_v58 }
0x16a9   : > { %7919 = vmatmul.mubr.msk.f32.vlgmr.msra.gmra.mxu1 %vm2599_vm5, %v5230_v11 }
0x16aa   : > { %7928 = vmatprep.mubr.msk.bf16.mxu1 %vm8325_vm4, %v8322_v58 }
0x1765   : > { %v5135_v3 = vpop.f32.mrf.mxu1 }
0x1766   : > { %v5139_v16 = vmul.f32 0.35355338, %v5135_v3  ;;  %v6795_v3 = vcombine.low %v10203_v13, %v10203_v13 }
0x1767   : > { %v7910_v61 = vpop.f32.mrf.mxu1 }
0x1768   : > { %v5140_v34 = vadd.f32 %v5139_v16, %v10253_v21 }
0x1769   : > { %v5303_v31 = vpop.f32.mrf.mxu1 }
0x176a   : > { %v5307_v18 = vmul.f32 0.35355338, %v5303_v31  ;;  %v5141_v15 = vsel %vm2599_vm5, %v5140_v34, -inf }
0x176b   : > { %5142 = vmax.xlane.f32.xlu1 %v5141_v15  ;;  %v7920_v29 = vpop.f32.mrf.mxu1 }
0x176c   : > { %v5308_v7 = vadd.f32 %v5307_v18, %v10253_v21 }
0x176e   : > { %v5309_v57 = vsel %vm2599_vm5, %v5308_v7, -inf }
0x176f   : > { %5310 = vmax.xlane.f32.xlu0 %v5309_v57 }
0x17f4   : > { %v5143_v59 = vpop.xlane.xlu1 %5142 }
0x17f5   : > { %v5144_v43 = vsub.f32 %v5140_v34, %v5143_v59 }
0x17f7   : > { %v5145_v47 = vmul.f32 1.442695, %v5144_v43 }
0x17f8   : > { %v5311_v17 = vpop.xlane.xlu0 %5310 }
0x17f9   : > { %8279 = vpow2.f32 %v5145_v47  ;;  %v5312_v55 = vsub.f32 %v5308_v7, %v5311_v17 }
0x17fb   : > { %v5313_v38 = vmul.f32 1.442695, %v5312_v55 }
0x17fd   : > { %8281 = vpow2.f32 %v5313_v38 }
0x1806   : > { %v8280_v20 = vpop.eup %8279 }
0x1807   : > { %v5147_v10 = vsel %vm2599_vm5, %v8280_v20, 0.0 }
0x1808   : > { %5148 = vadd.xlane.f32.xlu1 %v5147_v10 }
0x180a   : > { %v8282_v0 = vpop.eup %8281 }
0x180b   : > { %v5315_v25 = vsel %vm2599_vm5, %v8282_v0, 0.0 }
0x180c   : > { %5316 = vadd.xlane.f32.xlu0 %v5315_v25 }
0x1819   : > { %5152 = vrot.lane.b32.xlu1 %v10232_v2, %s8324_s21  ;;  %s10492_s21 = smov 72  }
0x181d   : > { %5398 = vrot.lane.b32.xlu1 %v6793_v30, %s8331_s27 }
0x1821   : > { %5497 = vrot.lane.b32.xlu1 %v10232_v2, %s8329_s25  ;;  %s10493_s25 = smov 104  }
0x1822   : > { %5320 = vrot.lane.b32.xlu0 %v10232_v2, %s10489_s20 }
0x1825   : > { %5495 = vrot.lane.b32.xlu1 %v10232_v2, %s10490_s22 }
0x1829   : > { %5586 = vrot.lane.b32.xlu1 %v10232_v2, %s10491_s23 }
0x1891   : > { %v5149_v23 = vpop.xlane.xlu1 %5148 }
0x1892   : > { %8283 = vrcp.f32 %v5149_v23 }
0x1895   : > { %v5153_v8 = vpop.permute.xlu1 %5152  ;;  %v5317_v62 = vpop.xlane.xlu0 %5316 }
0x1896   : > { %8285 = vrcp.f32 %v5317_v62  ;;  %7912 = vmatpush3.msra.mxu0 %v5153_v8 }
0x1897   : > { %7921 = vmatprep.subr.mxu0 %v8322_v58 }
0x1899   : > { %v5399_v35 = vpop.permute.xlu1 %5398  ;;  %v5321_v14 = vpop.permute.xlu0 %5320 }
0x189a   : > { %v5404_v27 = vsel %vm3364_vm9, %v5399_v35, 0 }
0x189b   : > { %7927 = vmatpush3.bf16.msra.mxu1 %v5404_v27 }
0x189c   : > { %7938 = vmatprep.subr.mxu1 %v8322_v58 }
0x189d   : > { %v5498_v40 = vpop.permute.xlu1 %5497 }
0x189f   : > { %v8284_v60 = vpop.eup %8283 }
0x18a0   : > { %v5151_v12 = vmul.f32 %v8284_v60, %v8280_v20 }
0x18a1   : > { %v5496_v54 = vpop.permute.xlu1 %5495 }
0x18a2   : > { %7914 = vmatmul.mubr.msk.f32.vlgmr.msra.gmra.mxu0 %vm2599_vm5, %v5151_v12 }
0x18a3   : > { %v8286_v4 = vpop.eup %8285  ;;  %7922 = vmatpush3.msra.mxu0 %v5321_v14  ;;  %7923 = vmatprep.mubr.msk.f32.mxu0 %vm8325_vm4, %v8322_v58 }
0x18a4   : > { %v5319_v6 = vmul.f32 %v8286_v4, %v8282_v0  ;;  %7932 = vmatprep.subr.bf16.mxu0 %v8322_v58 }
0x18a5   : > { %v5587_v29 = vpop.permute.xlu1 %5586 }
0x18a6   : > { %7924 = vmatmul.mubr.msk.f32.vlgmr.msra.gmra.mxu0 %vm2599_vm5, %v5319_v6 }
0x18a7   : > { %7934 = vmatprep.mubr.msk.bf16.mxu0 %vm8325_vm4, %v8322_v58 }
0x1962   : > { %v5224_v1 = vpop.f32.mrf.mxu0 }
0x1963   : > { %v5228_v15 = vpack.c.bf16 %v5224_v1, %v5224_v1 }
0x1964   : > { %v7915_v36 = vpop.f32.mrf.mxu0 }
0x1966   : > { %v5392_v46 = vpop.f32.mrf.mxu0 }
0x1967   : > { %v5396_v44 = vpack.c.bf16 %v5392_v46, %v5392_v46 }
0x1968   : > { %v7925_v24 = vpop.f32.mrf.mxu0 }
0x1969   : > { %7929 = vmatmul.mubr.msk.bf16.vlgmr.msra.gmra.mxu1 %vm2599_vm5, %v5396_v44 }
0x196a   : > { %7939 = vmatpush3.xpose.msk.msra.mxu1 %vm2599_vm5, %v5498_v40  ;;  %7940 = vmatprep.mubr.msk.f32.mxu1 %vm8325_vm4, %v8322_v58 }
0x196b   : > { %7948 = vmatprep.subr.bf16.mxu1 %v8322_v58 }
0x1971   : > { %7941 = vmatmul.mubr.msk.f32.vlgmr.msra.gmra.mxu1 %vm2599_vm5, %v5496_v54 }
0x1972   : > { %7950 = vmatprep.mubr.msk.bf16.mxu1 %vm8325_vm4, %v8322_v58 }
0x1a29   : > { %v10292_v51 = vpop.f32.mrf.mxu1 }
0x1a2b   : > { %v7930_v41 = vpop.f32.mrf.mxu1 }
0x1a2d   : > { %v5443_v49 = vpop.f32.mrf.mxu1 }
0x1a2f   : > { %v7931_v9 = vpop.f32.mrf.mxu1 }
0x1a31   : > { %v5569_v37 = vpop.f32.mrf.mxu1 }
0x1a32   : > { %v5573_v45 = vmul.f32 0.35355338, %v5569_v37 }
0x1a33   : > { %v7942_v56 = vpop.f32.mrf.mxu1 }
0x1a34   : > { %v5574_v11 = vadd.f32 %v5573_v45, %v10253_v21 }
0x1a36   : > { %v5575_v32 = vsel %vm2599_vm5, %v5574_v11, -inf }
0x1a37   : > { %5576 = vmax.xlane.f32.xlu0 %v5575_v32 }
0x1a4d   : > { %5447 = vrot.lane.b32.xlu0 %v6795_v3, %s8331_s27  ;;  %v4755_v3 = vsub.s32 5, %v9082_v50 }
0x1a51   : > { %5715 = vrot.lane.b32.xlu0 %v10232_v2, %s10492_s21 }
0x1ac0   : > { %v5577_v16 = vpop.xlane.xlu0 %5576 }
0x1ac1   : > { %v5578_v61 = vsub.f32 %v5574_v11, %v5577_v16  ;;  %v8312_v16 = vld [vmem:[%s10474_s7 + $0x8] sm:$0xff] }
0x1ac3   : > { %v5579_v34 = vmul.f32 1.442695, %v5578_v61 }
0x1ac4   : > { %v5448_v31 = vpop.permute.xlu0 %5447 }
0x1ac5   : > { %8287 = vpow2.f32 %v5579_v34  ;;  %v5453_v18 = vsel %vm3364_vm9, %v5448_v31, 0  ;;  %v5935_v31 = vrot.slane %v10228_v28, %v9093_v19 }
0x1ac6   : > { %7933 = vmatpush3.bf16.msra.mxu0 %v5453_v18 }
0x1ac7   : > { %7943 = vmatprep.subr.mxu0 %v8322_v58 }
0x1ac8   : > { %v5716_v47 = vpop.permute.xlu0 %5715 }
0x1ac9   : > { %7935 = vmatmul.mubr.msk.bf16.vlgmr.msra.gmra.mxu0 %vm2599_vm5, %v5228_v15 }
0x1aca   : > { %7944 = vmatpush3.msra.mxu0 %v5587_v29  ;;  %7945 = vmatprep.mubr.msk.f32.mxu0 %vm8325_vm4, %v8322_v58 }
0x1acb   : > { %7954 = vmatprep.subr.mxu0 %v8322_v58 }
0x1ad2   : > { %v8288_v13 = vpop.eup %8287 }
0x1ad3   : > { %v5581_v7 = vsel %vm2599_vm5, %v8288_v13, 0.0 }
0x1ad4   : > { %5582 = vadd.xlane.f32.xlu1 %v5581_v7 }
0x1ae5   : > { %5713 = vrot.lane.b32.xlu1 %v10232_v2, %s10493_s25 }
0x1b5d   : > { %v5583_v57 = vpop.xlane.xlu1 %5582 }
0x1b5e   : > { %8289 = vrcp.f32 %v5583_v57 }
0x1b61   : > { %v5714_v17 = vpop.permute.xlu1 %5713 }
0x1b6b   : > { %v8290_v59 = vpop.eup %8289 }
0x1b6c   : > { %v5585_v43 = vmul.f32 %v8290_v59, %v8288_v13 }
0x1b6e   : > { %7946 = vmatmul.mubr.msk.f32.vlgmr.msra.gmra.mxu0 %vm2599_vm5, %v5585_v43 }
0x1b6f   : > { %7955 = vmatpush3.xpose.msk.msra.mxu0 %vm2599_vm5, %v5716_v47  ;;  %7956 = vmatprep.mubr.msk.f32.mxu0 %vm8325_vm4, %v8322_v58 }
0x1b70   : > { %7959 = vmatprep.subr.mxu0 %v8322_v58 }
0x1b72   : > { %7957 = vmatmul.mubr.msk.f32.vlgmr.msra.gmra.mxu0 %vm2599_vm5, %v5714_v17 }
0x1b73   : > { %7961 = vmatprep.mubr.msk.f32.mxu0 %vm8325_vm4, %v8322_v58 }
0x1b89   : > { %v5489_v55 = vpop.f32.mrf.mxu0 }
0x1b8a   : > { %v5490_v54 = vadd.f32 %v5489_v55, %v10292_v51  ;;  %v4756_v51 = vrot.slane %v8312_v16, %v4755_v3 }
0x1b8b   : > { %v7936_v38 = vpop.f32.mrf.mxu0 }
0x1b8c   : > { %v4840_v15 = vadd.f32 %v10214_v48, %v4756_v51  ;;  %v8084_v38 = vld [vmem:[%s10477_s10 + $0x10] sm:$0xff]  }
0x1b8d   : > { %v5492_v20 = vpop.f32.mrf.mxu0 }
0x1b8e   : > { %v10357_v59 = vadd.f32 %v4840_v15, %v10022_v42  ;;  %v8083_v42 = vld [vmem:[%s10477_s10 + $0x18] sm:$0xff]  }
0x1b8f   : > { %v7937_v10 = vpop.f32.mrf.mxu0 }
0x1b90   : > { %v6228_v19 = vsel %vm6227_vm13, %v10357_v59, 0.0 }
0x1c2e   : > { %v5658_v0 = vpop.f32.mrf.mxu0 }
0x1c2f   : > { %v5662_v44 = vpack.c.bf16 %v5658_v0, %v5658_v0 }
0x1c30   : > { %v7947_v25 = vpop.f32.mrf.mxu0 }
0x1c31   : > { %v5953_v25 = vrot.slane %v10228_v28, %v4577_v5 }
0x1c32   : > { %v5787_v30 = vpop.f32.mrf.mxu0 }
0x1c33   : > { %v5791_v23 = vmul.f32 0.35355338, %v5787_v30 }
0x1c34   : > { %v7958_v8 = vpop.f32.mrf.mxu0 }
0x1c35   : > { %v5792_v62 = vadd.f32 %v5791_v23, %v10253_v21  ;;  %v6800_v21 = vcombine.low %v10191_v52, %v10191_v52  ;;  %v5958_v8 = vrot.slane %v10228_v28, %v4588_v39  ;;  %v8085_v39 = vld [vmem:[%s10478_s11 + $0x38] sm:$0xff]  }
0x1c37   : > { %v5793_v35 = vsel %vm2599_vm5, %v5792_v62, -inf }
0x1c38   : > { %5794 = vmax.xlane.f32.xlu0 %v5793_v35 }
0x1c4e   : > { %5804 = vrot.lane.b32.xlu0 %v10232_v2, %s10494_s16  ;;  %v6805_v2 = vcombine.low %v10196_v22, %v10196_v22 }
0x1c52   : > { %5882 = vrot.lane.b32.xlu0 %v6805_v2, %s8331_s27  ;;  %v8087_v2 = vld [vmem:[%s10478_s11 + $0x28] sm:$0xff]  }
0x1cc1   : > { %v5795_v27 = vpop.xlane.xlu0 %5794 }
0x1cc2   : > { %v5796_v60 = vsub.f32 %v5792_v62, %v5795_v27 }
0x1cc4   : > { %v5797_v12 = vmul.f32 1.442695, %v5796_v60  ;;  %v6122_v60 = vcvt.s32.f32 %v10086_v53 }
0x1cc5   : > { %v5805_v14 = vpop.permute.xlu0 %5804 }
0x1cc6   : > { %8291 = vpow2.f32 %v5797_v12  ;;  %7960 = vmatpush3.msra.mxu0 %v5805_v14  ;;  %v6124_v12 = vsel %vm6123_vm14, %v6122_v60, -inf }
0x1cc7   : > { %7970 = vmatprep.subr.bf16.mxu0 %v8322_v58  ;;  %v6125_v5 = vrot.slane %v6124_v12, 4 }
0x1cc9   : > { %v5883_v22 = vpop.permute.xlu0 %5882  ;;  %v6126_v14 = vmax.f32 %v6124_v12, %v6125_v5 }
0x1cca   : > { %v5888_v40 = vsel %vm3364_vm9, %v5883_v22, 0 }
0x1cd3   : > { %v8292_v4 = vpop.eup %8291 }
0x1cd4   : > { %v5799_v6 = vsel %vm2599_vm5, %v8292_v4, 0.0 }
0x1cd5   : > { %5800 = vadd.xlane.f32.xlu1 %v5799_v6 }
0x1ce6   : > { %5664 = vrot.lane.b32.xlu1 %v6800_v21, %s8331_s27  ;;  %v8086_v21 = vld [vmem:[%s10478_s11 + $0x30] sm:$0xff]  }
0x1d5e   : > { %v5801_v1 = vpop.xlane.xlu1 %5800 }
0x1d5f   : > { %8293 = vrcp.f32 %v5801_v1 }
0x1d62   : > { %v5665_v36 = vpop.permute.xlu1 %5664 }
0x1d63   : > { %v5670_v46 = vsel %vm3364_vm9, %v5665_v36, 0  ;;  %v8088_v36 = vld [vmem:[%s10478_s11 + $0x20] sm:$0xff]  }
0x1d64   : > { %7949 = vmatpush3.bf16.msra.mxu1 %v5670_v46  ;;  %v6131_v46 = vcvt.s32.f32 %v9082_v50  ;;  %v8093_v50 = vld [vmem:[%s10479_s12 + $0x8] sm:$0xff]  }
0x1d65   : > { %7964 = vmatprep.subr.bf16.mxu1 %v8322_v58 }
0x1d67   : > { %7951 = vmatmul.mubr.msk.bf16.vlgmr.msra.gmra.mxu1 %vm2599_vm5, %v5662_v44  ;;  %v8089_v44 = vld [vmem:[%s10478_s11 + $0x18] sm:$0xff]  }
0x1d68   : > { %7966 = vmatprep.mubr.msk.bf16.mxu1 %vm8325_vm4, %v8322_v58  ;;  %7965 = vmatpush3.bf16.msra.mxu1 %v5888_v40 }
0x1d69   : > { %7978 = vmatprep.subr.bf16.mxu1 %v8322_v58 }
0x1d6c   : > { %v8294_v52 = vpop.eup %8293 }
0x1d6d   : > { %v5803_v24 = vmul.f32 %v8294_v52, %v8292_v4  ;;  %v6127_v4 = vrot.slane %v6126_v14, 2 }
0x1d6f   : > { %7962 = vmatmul.mubr.msk.f32.vlgmr.msra.gmra.mxu0 %vm2599_vm5, %v5803_v24  ;;  %v6128_v6 = vmax.f32 %v6126_v14, %v6127_v4  ;;  %v8090_v24 = vld [vmem:[%s10478_s11 + $0x10] sm:$0xff]   ;;  %v8313_v14 = vld [vmem:[%s10474_s7] sm:$0xff] }
0x1d70   : > { %7974 = vmatprep.mubr.msk.bf16.mxu0 %vm8325_vm4, %v8322_v58  ;;  %7971 = vmatpush3.bf16.msra.mxu0 %v8083_v42  ;;  %v6242_v4 = vrot.slane %v8313_v14, 2 }
0x1d71   : > { %7972 = vmatprep.subr.bf16.mxu0 %v8322_v58  ;;  %v6129_v53 = vrot.slane %v6128_v6, 1 }
0x1d73   : > { %v6130_v1 = vmax.f32 %v6128_v6, %v6129_v53 }
0x1d74   : > { %7973 = vmatpush3.bf16.msra.mxu0 %v8084_v38 }
0x1d75   : > { %7998 = vmatprep.subr.mxu0 %v8322_v58  ;;  %vm6132_vm15 = vcmp.eq.f32.partialorder %v6122_v60, %v6130_v1 }
0x1d76   : > { %v6133_v52 = vsel %vm6132_vm15, %v6131_v46, 8.0 }
0x1d77   : > { %v6134_v22 = vsel %vm6123_vm14, %v6133_v52, inf }
0x1d78   : > { %v6135_v40 = vrot.slane %v6134_v22, 4 }
0x1e27   : > { %v5706_v41 = vpop.f32.mrf.mxu1 }
0x1e28   : > { %v5712_v49 = vadd.f32 %v5706_v41, %v5490_v54  ;;  %v8091_v54 = vld [vmem:[%s10478_s11 + $0x8] sm:$0xff]   ;;  %v6136_v41 = vmin.f32 %v6134_v22, %v6135_v40  ;;  %v6317_v22 = vrot.slane %v8313_v14, 4 }
0x1e29   : > { %v7952_v9 = vpop.f32.mrf.mxu1 }
0x1e2a   : > { %v6137_v9 = vrot.slane %v6136_v41, 2 }
0x1e2b   : > { %v5709_v37 = vpop.f32.mrf.mxu1 }
0x1e2c   : > { %v6138_v37 = vmin.f32 %v6136_v41, %v6137_v9  ;;  %v6320_v41 = vrot.slane %v8313_v14, 5 }
0x1e2d   : > { %v7953_v45 = vpop.f32.mrf.mxu1 }
0x1e2e   : > { %v6139_v45 = vrot.slane %v6138_v37, 1 }
0x1e2f   : > { %v5876_v56 = vpop.f32.mrf.mxu0 }
0x1e30   : > { %v5880_v11 = vpack.c.bf16 %v5876_v56, %v5876_v56  ;;  %v6140_v56 = vmin.f32 %v6138_v37, %v6139_v45 }
0x1e31   : > { %v7963_v32 = vpop.f32.mrf.mxu0 }
0x1e32   : > { %7967 = vmatmul.mubr.msk.bf16.vlgmr.msra.gmra.mxu1 %vm2599_vm5, %v5880_v11  ;;  %v5964_v11 = vrot.slane %v10228_v28, %v4603_v33  ;;  %v6032_v33 = vrot.slane %v10228_v28, %v4755_v3 }
0x1e33   : > { %7994 = vmatprep.mubr.msk.bf16.mxu1 %vm8325_vm4, %v8322_v58  ;;  %7979 = vmatpush3.bf16.msra.mxu1 %v8085_v39 }
0x1e34   : > { %7980 = vmatprep.subr.bf16.mxu1 %v8322_v58 }
0x1e37   : > { %7981 = vmatpush3.bf16.msra.mxu1 %v8086_v21  ;;  %v6245_v21 = vrot.slane %v8313_v14, 3 }
0x1e38   : > { %7982 = vmatprep.subr.bf16.mxu1 %v8322_v58 }
0x1e3b   : > { %7983 = vmatpush3.bf16.msra.mxu1 %v8087_v2 }
0x1e3c   : > { %7984 = vmatprep.subr.bf16.mxu1 %v8322_v58 }
0x1e3f   : > { %7985 = vmatpush3.bf16.msra.mxu1 %v8088_v36 }
0x1e40   : > { %7986 = vmatprep.subr.bf16.mxu1 %v8322_v58 }
0x1e43   : > { %7987 = vmatpush3.bf16.msra.mxu1 %v8089_v44 }
0x1e44   : > { %7988 = vmatprep.subr.bf16.mxu1 %v8322_v58 }
0x1e47   : > { %7989 = vmatpush3.bf16.msra.mxu1 %v8090_v24 }
0x1e48   : > { %7990 = vmatprep.subr.bf16.mxu1 %v8322_v58 }
0x1e4b   : > { %7991 = vmatpush3.bf16.msra.mxu1 %v8091_v54 }
0x1e4c   : > { %7992 = vmatprep.subr.bf16.mxu1 %v8322_v58 }
0x1ef2   : > { %v5924_v61 = vpop.f32.mrf.mxu1 }
0x1ef3   : > { %v5930_v34 = vadd.f32 %v5924_v61, %v5712_v49  ;;  %v8092_v49 = vld [vmem:[%s10478_s11] sm:$0xff]  }
0x1ef4   : > { %v7968_v18 = vpop.f32.mrf.mxu1  ;;  %7993 = vmatpush3.bf16.msra.mxu1 %v8092_v49 }
0x1ef5   : > { %v5931_v29 = vadd.f32 %v5930_v34, %v10178_v63 }
0x1ef6   : > { %v5927_v13 = vpop.f32.mrf.mxu1 }
0x1ef7   : > { %v10354_v7 = vadd.f32 %v5935_v31, %v5931_v29 }
0x1ef8   : > { %v7969_v57 = vpop.f32.mrf.mxu1 }
0x1ef9   : > { %v5937_v43 = vsel %vm2229_vm2, %v10354_v7, 0.0 }
0x1efa   : > { %5938 = vadd.xlane.f32.xlu1 %v5937_v43 }
0x1efe   : > { %6229 = vadd.xlane.f32.xlu1 %v6228_v19  ;;  %v6141_v19 = vcvt.s32.f32 %v10121_v26 }
0x1f83   : > { %v5939_v47 = vpop.xlane.xlu1 %5938 }
0x1f84   : > { %v5940_v48 = vmul.f32 0.03125, %v5939_v47 }
0x1f86   : > { %v5941_v63 = vsub.f32 %v10354_v7, %v5940_v48 }
0x1f87   : > { %v6230_v26 = vpop.xlane.xlu1 %6229 }
0x1f88   : > { %v5942_v17 = vmul.f32 %v5941_v63, %v5941_v63  ;;  %v6231_v28 = vmul.f32 0.03125, %v6230_v26 }
0x1f8a   : > { %v5943_v55 = vsel %vm2229_vm2, %v5942_v17, 0.0  ;;  %v6232_v3 = vsub.f32 %v10357_v59, %v6231_v28 }
0x1f8b   : > { %5944 = vadd.xlane.f32.xlu0 %v5943_v55 }
0x1fa1   : > { %6144 = vperm.xlu0 %8048, %v6140_v56  }
0x2014   : > { %v5945_v20 = vpop.xlane.xlu0 %5944 }
0x2015   : > { %v5946_v10 = vmul.f32 0.03125, %v5945_v20 }
0x2017   : > { %v5947_v0 = vadd.f32 1e-05, %v5946_v10 }
0x2019   : > { %8295 = vrsqrt.f32 %v5947_v0  ;;  %v6233_v0 = vmul.f32 %v6232_v3, %v6232_v3 }
0x201c   : > { %v6145_v47 = vpop.permute.xlu0 %6144 }
0x201d   : > { %vm6147_vm0 = vcmp.eq.f32.partialorder %v6141_v19, %v6145_v47 }
0x201e   : > { %v6819_v42 = vsel %vm6147_vm0, 1.0, %v8322_v58 }
0x2026   : > { %v8296_v30 = vpop.eup %8295 }
0x2027   : > { %v5949_v23 = vmul.f32 %v8296_v30, %v5941_v63  ;;  %v6234_v30 = vsel %vm6227_vm13, %v6233_v0, 0.0 }
0x2029   : > { %v5954_v62 = vmul.f32 %v5953_v25, %v5949_v23  ;;  %v8094_v23 = vld [vmem:[%s10479_s12] sm:$0xff]  }
0x202b   : > { %v5959_v35 = vadd.f32 %v5958_v8, %v5954_v62 }
0x202d   : > { %v5960_v27 = vpack.c.bf16 %v5959_v35, %v5959_v35 }
0x202f   : > { %7975 = vmatmul.mubr.msk.bf16.vlgmr.msra.gmra.mxu0 %vm2229_vm2, %v5960_v27 }
0x2030   : > { %8000 = vmatprep.mubr.msk.f32.mxu0 %vm8325_vm4, %v8322_v58 }
0x20ef   : > { %v6014_v32 = vpop.f32.mrf.mxu0 }
0x20f0   : > { %v6015_v16 = vadd.f32 %v6014_v32, %v5964_v11 }
0x20f1   : > { %v7976_v51 = vpop.f32.mrf.mxu0 }
0x20f2   : > { %v6810_v61 = vmul.f32 -1.702, %v6015_v16 }
0x20f3   : > { %v6017_v34 = vpop.f32.mrf.mxu0 }
0x20f4   : > { %v6022_v31 = vmul.f32 1.442695, %v6810_v61 }
0x20f5   : > { %v7977_v18 = vpop.f32.mrf.mxu0 }
0x20f6   : > { %8297 = vpow2.f32 %v6022_v31 }
0x2103   : > { %v8298_v15 = vpop.eup %8297 }
0x2104   : > { %v6024_v29 = vadd.f32 1.0, %v8298_v15 }
0x2106   : > { %8299 = vrcp.f32 %v6024_v29 }
0x2113   : > { %v8300_v13 = vpop.eup %8299 }
0x2114   : > { %v6027_v57 = vmul.f32 %v8300_v13, %v6015_v16 }
0x2116   : > { %v6028_v43 = vpack.c.bf16 %v6027_v57, %v6027_v57 }
0x2118   : > { %7995 = vmatmul.mubr.bf16.vlgmr.msra.gmra.mxu1 %v6028_v43 }
0x21d8   : > { %v6115_v48 = vpop.f32.mrf.mxu1 }
0x21d9   : > { %v6116_v63 = vadd.f32 %v6115_v48, %v6032_v33 }
0x21da   : > { %v7996_v17 = vpop.f32.mrf.mxu1 }
0x21db   : > { %v6121_v55 = vadd.f32 %v6116_v63, %v10354_v7 }
0x21dc   : > { %v6118_v38 = vpop.f32.mrf.mxu1 }
0x21dd   : > { %7999 = vmatpush3.msra.mxu0 %v6121_v55 }
0x21de   : > { %v7997_v20 = vpop.f32.mrf.mxu1  ;;  %8001 = vmatmul.mubr.msk.f32.vlgmr.msra.gmra.mxu0 %vm2599_vm5, %v6819_v42  ;;  %8003 = vmatprep.subr.bf16.mxu0 %v8322_v58 }
0x21df   : > { %8007 = vmatprep.mubr.msk.bf16.mxu0 %vm8325_vm4, %v8322_v58  ;;  %8004 = vmatpush3.bf16.msra.mxu0 %v8093_v50 }
0x21e0   : > { %8005 = vmatprep.subr.bf16.mxu0 %v8322_v58 }
0x21e3   : > { %8006 = vmatpush3.bf16.msra.mxu0 %v8094_v23 }
0x21e4   : > { %8011 = vmatprep.subr.bf16.mxu0 %v8322_v58 }
0x229e   : > { %v6219_v7 = vpop.f32.mrf.mxu0 }
0x229f   : > { %v6304_v10 = vsel %vm6227_vm13, %v6219_v7, 0.0 }
0x22a0   : > { %6305 = vadd.xlane.f32.xlu1 %v6304_v10  ;;  %v8002_v25 = vpop.f32.mrf.mxu0 }
0x22a4   : > { %6235 = vadd.xlane.f32.xlu1 %v6234_v30 }
0x22b5   : > { %6326 = vrot.lane.b32.xlu1 %v8093_v50, %s10490_s22 }
0x2329   : > { %v6306_v8 = vpop.xlane.xlu1 %6305 }
0x232a   : > { %v6307_v59 = vmul.f32 0.03125, %v6306_v8 }
0x232c   : > { %v6308_v62 = vsub.f32 %v6219_v7, %v6307_v59 }
0x232d   : > { %v6236_v35 = vpop.xlane.xlu1 %6235 }
0x232e   : > { %v6237_v27 = vmul.f32 0.03125, %v6236_v35  ;;  %v6309_v60 = vmul.f32 %v6308_v62, %v6308_v62 }
0x2330   : > { %v6238_v12 = vadd.f32 1e-05, %v6237_v27  ;;  %v6310_v5 = vsel %vm6227_vm13, %v6309_v60, 0.0 }
0x2331   : > { %6311 = vadd.xlane.f32.xlu1 %v6310_v5  ;;  %v6327_v36 = vpop.permute.xlu1 %6326 }
0x2332   : > { %8301 = vrsqrt.f32 %v6238_v12 }
0x233f   : > { %v8302_v39 = vpop.eup %8301 }
0x2340   : > { %v6240_v6 = vmul.f32 %v8302_v39, %v6232_v3 }
0x2342   : > { %v6244_v53 = vmul.f32 %v6242_v4, %v6240_v6  ;;  %6324 = vrot.lane.b32.xlu1 %v8094_v23, %s10490_s22 }
0x2344   : > { %v6247_v2 = vadd.f32 %v6245_v21, %v6244_v53 }
0x2346   : > { %v6248_v1 = vpack.c.bf16 %v6247_v2, %v6247_v2 }
0x2348   : > { %8008 = vmatmul.mubr.msk.bf16.vlgmr.msra.gmra.mxu0 %vm2229_vm2, %v6248_v1 }
0x2349   : > { %8012 = vmatpush3.bf16.msra.mxu0 %v6327_v36  ;;  %8015 = vmatprep.mubr.msk.bf16.mxu0 %vm8325_vm4, %v8322_v58 }
0x234a   : > { %8013 = vmatprep.subr.bf16.mxu0 %v8322_v58 }
0x23ba   : > { %v6312_v46 = vpop.xlane.xlu1 %6311 }
0x23bb   : > { %v6313_v44 = vmul.f32 0.03125, %v6312_v46 }
0x23bd   : > { %v6314_v52 = vadd.f32 1e-05, %v6313_v44 }
0x23be   : > { %v6325_v24 = vpop.permute.xlu1 %6324 }
0x23bf   : > { %8303 = vrsqrt.f32 %v6314_v52  ;;  %8014 = vmatpush3.bf16.msra.mxu0 %v6325_v24 }
0x23cc   : > { %v8304_v40 = vpop.eup %8303 }
0x23cd   : > { %v6316_v54 = vmul.f32 %v8304_v40, %v6308_v62 }
0x23cf   : > { %v6319_v49 = vmul.f32 %v6317_v22, %v6316_v54 }
0x23d1   : > { %v6322_v9 = vadd.f32 %v6320_v41, %v6319_v49 }
0x23d3   : > { %v6323_v37 = vpack.c.bf16 %v6322_v9, %v6322_v9 }
0x23d5   : > { %8016 = vmatmul.mubr.msk.bf16.vlgmr.msra.gmra.mxu0 %vm2229_vm2, %v6323_v37 }
0x2408   : > { %v6298_v45 = vpop.f32.mrf.mxu0 }
0x2409   : > { %v6373_v56 = vmul.f32 %v6298_v45, %v6298_v45 }
0x240a   : > { %v8009_v11 = vpop.f32.mrf.mxu0 }
0x240b   : > { %v6375_v58 = vsel %vm6374_vm1, %v6373_v56, 0.0 }
0x240c   : > { %6376 = vadd.xlane.f32.xlu1 %v6375_v58  ;;  %v6301_v32 = vpop.f32.mrf.mxu0 }
0x240e   : > { %v8010_v16 = vpop.f32.mrf.mxu0 }
0x2495   : > { %v6377_v51 = vpop.xlane.xlu1 %6376  ;;  %v6367_v61 = vpop.f32.mrf.mxu0 }
0x2496   : > { %v6378_v34 = vadd.f32 1e-12, %v6377_v51  ;;  %v6381_v31 = vmul.f32 %v6367_v61, %v6367_v61 }
0x2497   : > { %v8017_v18 = vpop.f32.mrf.mxu0 }
0x2498   : > { %8305 = vrsqrt.f32 %v6378_v34  ;;  %v6382_v15 = vsel %vm6374_vm1, %v6381_v31, 0.0 }
0x2499   : > { %6383 = vadd.xlane.f32.xlu0 %v6382_v15  ;;  %v6370_v29 = vpop.f32.mrf.mxu0 }
0x249b   : > { %v8018_v13 = vpop.f32.mrf.mxu0 }
0x24a5   : > { %v8306_v57 = vpop.eup %8305 }
0x24a6   : > { %v6380_v43 = vmul.f32 %v8306_v57, %v6298_v45 }
0x24a8   : > { %6388 = vst.msk [vmem:[%s488_s18] sm:$0x1] %vm6374_vm1, %v6380_v43 }
0x2522   : > { %v6384_v19 = vpop.xlane.xlu0 %6383 }
0x2523   : > { %v6385_v33 = vadd.f32 1e-12, %v6384_v19 }
0x2525   : > { %8307 = vrsqrt.f32 %v6385_v33 }
0x2532   : > { %v8308_v47 = vpop.eup %8307 }
0x2533   : > { %v6387_v48 = vmul.f32 %v8308_v47, %v6367_v61 }
0x2535   : > { %6389 = vst.msk [vmem:[%s491_s28] sm:$0x1] %vm6374_vm1, %v6387_v48 }
0x2536 PF: > { %s25_s29 = sadd.s32 1, %s8320_s29  }
0x2537   : > { %p22_p5 = scmp.ge.s32.totalorder %s25_s29, 4  }
0x2539   :  { %24 = sbr.rel (!%p22_p5) target bundleno = 1 (0x1), region = 117 }

</bundles_post_ra>
